<compile_context>
chip_gen: v7x
topology: tpu7x:2x2x1
jax: 0.10.0
libtpu: 0.0.40
codegen_flags: <defaults>
</compile_context>

<pallas_src>
import functools

import jax
import jax.numpy as jnp
from jax import lax
from jax.experimental import pallas as pl
from jax.experimental.pallas import tpu as pltpu


# ----------------------------- in-kernel helpers -----------------------------

_TRANS_B = (((1,), (1,)), ((), ()))  # contract last dims: q @ k^T with no transpose op


def _mm(a, b):
    """MXU matmul: bf16 operands, f32 accumulation."""
    return jnp.dot(a.astype(jnp.bfloat16), b.astype(jnp.bfloat16),
                   preferred_element_type=jnp.float32)


def _layer_norm(x, gamma, beta):
    """x: [S, D] f32, gamma/beta: [1, D] f32 (eps matches torch LayerNorm default)."""
    mu = jnp.mean(x, axis=-1, keepdims=True)
    var = jnp.mean(jnp.square(x - mu), axis=-1, keepdims=True)
    return (x - mu) * lax.rsqrt(var + 1e-5) * gamma + beta


def _block(h, ln_ref, wqkv_ref, wo_ref, w1_ref, w2_ref, l, n_heads):
    """Pre-norm transformer block, fully in-VMEM.  h: [S, D] f32."""
    # --- attention sub-block (LN fused with the QKV matmuls) ---
    x = _layer_norm(h, ln_ref[l, 0], ln_ref[l, 1])
    attn = None
    for hh in range(n_heads):                      # static unroll (n_heads is tiny)
        # 1/sqrt(head_dim) is pre-folded into the Q weights on the host.
        qh = _mm(x, wqkv_ref[l, 0, hh])            # [S, hd]
        kh = _mm(x, wqkv_ref[l, 1, hh])
        vh = _mm(x, wqkv_ref[l, 2, hh])
        s = lax.dot_general(qh.astype(jnp.bfloat16), kh.astype(jnp.bfloat16),
                            _TRANS_B, preferred_element_type=jnp.float32)
        e = jnp.exp(s - jnp.max(s, axis=-1, keepdims=True))
        p = e * pl.reciprocal(jnp.sum(e, axis=-1, keepdims=True), approx=True)
        oh = jnp.dot(p.astype(jnp.bfloat16), vh.astype(jnp.bfloat16),
                     preferred_element_type=jnp.float32)          # [S, hd]
        contrib = _mm(oh, wo_ref[l, hh])                          # [S, D]
        attn = contrib if attn is None else attn + contrib        # == concat(heads) @ w_o
    h = h + attn

    # --- MLP sub-block (LN fused with the first matmul; 4D hidden is lane-dense) ---
    x = _layer_norm(h, ln_ref[l, 2], ln_ref[l, 3])
    # TODO(synk): tanh-approx GELU; PyTorch nn.GELU default is the exact erf form.
    hid = jax.nn.gelu(_mm(x, w1_ref[l]))
    h = h + _mm(hid, w2_ref[l])
    return h


# ------------------------------- fused kernel --------------------------------

def _titok_kernel(xp_ref,                                   # [1, T, C*p*p]  f32
                  e_patch_w_ref,                            # [C*p*p, D]     bf16
                  e_lat_pos_ref,                            # [L, D] f32  (latent_tok + pos[:L])
                  e_img_pos_ref,                            # [T, D] f32  (pos[L:])
                  e_ln_ref,                                 # [NL, 4, 1, D]  f32
                  e_wqkv_ref,                               # [NL, 3, H, D, hd] bf16
                  e_wo_ref,                                 # [NL, H, hd, D] bf16
                  e_w1_ref, e_w2_ref,                       # [NL, D, 4D], [NL, 4D, D] bf16
                  e_proj_out_ref,                           # [D, lc]        bf16
                  d_proj_in_ref,                            # [lc, D]        bf16
                  d_lat_pos_ref,                            # [L, D] f32  (pos[:L])
                  d_img_pos_ref,                            # [T, D] f32  (image_tok + pos[L:])
                  d_ln_ref, d_wqkv_ref, d_wo_ref, d_w1_ref, d_w2_ref,
                  d_out_ln_ref,                             # [2, 1, D]      f32
                  d_out_w_ref, d_out_b_ref,                 # [D, C*p*p] bf16, [1, C*p*p] f32
                  rec_ref, z_ref,                           # outs: [1,T,C*p*p], [1,L,lc]
                  *, n_heads, latent_size):
    n_layers = e_w1_ref.shape[0]

    # --------------------------- Encoder ---------------------------
    # PatchProjIn + pos-enc epilogue; latent tokens arrive with pos already folded in.
    x_tok = _mm(xp_ref[0], e_patch_w_ref[...]) + e_img_pos_ref[...]       # [T, D]
    h = jnp.concatenate([e_lat_pos_ref[...], x_tok], axis=0)             # [L+T, D]
    for l in range(n_layers):
        h = _block(h, e_ln_ref, e_wqkv_ref, e_wo_ref, e_w1_ref, e_w2_ref, l, n_heads)
    z = _mm(h[:latent_size], e_proj_out_ref[...])                        # [L, lc]
    z_ref[0] = z

    # --------------------------- Decoder ---------------------------
    # noise_decoder_inputs == 0.0  ->  decoder consumes z directly (clone).
    hz = _mm(z, d_proj_in_ref[...]) + d_lat_pos_ref[...]                  # [L, D]
    h = jnp.concatenate([hz, d_img_pos_ref[...]], axis=0)                 # [L+T, D]
    for l in range(n_layers):
        h = _block(h, d_ln_ref, d_wqkv_ref, d_wo_ref, d_w1_ref, d_w2_ref, l, n_heads)
    h = _layer_norm(h[latent_size:], d_out_ln_ref[0], d_out_ln_ref[1])    # PatchProjOut LN
    rec_ref[0] = _mm(h, d_out_w_ref[...]) + d_out_b_ref[...]              # fused bias epilogue


# ------------------------------ host-side glue --------------------------------

def patchify(x, p):
    """NCHW -> [B, n_tokens, C*p*p]; (c, ph, pw)-major features (torch Conv2d order)."""
    B, C, H, W = x.shape
    nH, nW = H // p, W // p
    x = x.reshape(B, C, nH, p, nW, p).transpose(0, 2, 4, 1, 3, 5)
    return x.reshape(B, nH * nW, C * p * p)


def unpatchify(x, C, p, nH, nW):
    B = x.shape[0]
    x = x.reshape(B, nH, nW, C, p, p).transpose(0, 3, 1, 4, 2, 5)
    return x.reshape(B, C, nH * p, nW * p)


def _pack_stack(params, n_heads):
    """Stacked per-layer weights -> kernel layout (per-head pre-split, bf16 MXU operands).

      w_qkv [NL, D, 3D] -> [NL, 3, H, D, hd]   (q|k|v major, then head; Q pre-scaled)
      w_o   [NL, D, D]  -> [NL, H, hd, D]      (rows head-major)
      ln    4x [NL, D]  -> [NL, 4, 1, D]       (ln1_g, ln1_b, ln2_g, ln2_b; stays f32)
    """
    NL, D, _ = params["w_qkv"].shape
    hd = D // n_heads
    w_qkv = params["w_qkv"].reshape(NL, D, 3, n_heads, hd).transpose(0, 2, 3, 1, 4)
    # Fold the attention scale into the Q projection (trace-time, bf16-exact for pow2).
    w_qkv = w_qkv.at[:, 0].multiply(1.0 / (hd ** 0.5))
    w_o = params["w_o"].reshape(NL, n_heads, hd, D)
    ln = jnp.stack([params["ln1_g"], params["ln1_b"],
                    params["ln2_g"], params["ln2_b"]], axis=1)[:, :, None, :]
    return (ln.astype(jnp.float32),
            w_qkv.astype(jnp.bfloat16),
            w_o.astype(jnp.bfloat16),
            params["w1"].astype(jnp.bfloat16),
            params["w2"].astype(jnp.bfloat16))


def titok_vae_forward(params, x, cfg):
    B, C, H, W = x.shape
    p = cfg["patch_size"]
    nh = cfg["n_heads"]
    L = cfg["latent_size"]
    lc = cfg["latent_channels"]
    nH, nW = H // p, W // p
    T = nH * nW
    Cpp = C * p * p

    xp = patchify(x, p).astype(jnp.float32)                         # [B, T, Cpp]

    enc, dec = params["encoder"], params["decoder"]
    e_ln, e_wqkv, e_wo, e_w1, e_w2 = _pack_stack(enc, nh)
    d_ln, d_wqkv, d_wo, d_w1, d_w2 = _pack_stack(dec, nh)

    # Fold the learned pos-enc into the parameter token halves (parameter + parameter):
    e_lat_pos = (enc["latent_tokens"] + enc["pos_enc"][:L]).astype(jnp.float32)   # [L, D]
    e_img_pos = enc["pos_enc"][L:].astype(jnp.float32)                            # [T, D]
    d_lat_pos = dec["pos_enc"][:L].astype(jnp.float32)                            # [L, D]
    d_img_pos = (dec["image_tokens"] + dec["pos_enc"][L:]).astype(jnp.float32)    # [T, D]

    inputs = (
        xp,
        enc["patch_w"].astype(jnp.bfloat16),
        e_lat_pos, e_img_pos,
        e_ln, e_wqkv, e_wo, e_w1, e_w2,
        enc["proj_out_w"].astype(jnp.bfloat16),
        dec["proj_in_w"].astype(jnp.bfloat16),
        d_lat_pos, d_img_pos,
        d_ln, d_wqkv, d_wo, d_w1, d_w2,
        jnp.stack([dec["out_ln_g"], dec["out_ln_b"]], axis=0)[:, None, :].astype(jnp.float32),
        dec["out_w"].astype(jnp.bfloat16),
        dec["out_b"].reshape(1, Cpp).astype(jnp.float32),
    )

    def batch_spec(shape):                       # blocked over the batch grid axis
        rest = (0,) * (len(shape) - 1)
        return pl.BlockSpec((1,) + tuple(shape[1:]), lambda b: (b,) + rest)

    def full_spec(shape):                        # grid-invariant full-array block (weights)
        zeros = (0,) * len(shape)
        return pl.BlockSpec(tuple(shape), lambda b: zeros)

    in_specs = [batch_spec(xp.shape)] + [full_spec(a.shape) for a in inputs[1:]]

    rec_tok, z = pl.pallas_call(
        functools.partial(_titok_kernel, n_heads=nh, latent_size=L),
        out_shape=(jax.ShapeDtypeStruct((B, T, Cpp), jnp.float32),
                   jax.ShapeDtypeStruct((B, L, lc), jnp.float32)),
        grid=(B,),
        in_specs=in_specs,
        out_specs=(batch_spec((B, T, Cpp)), batch_spec((B, L, lc))),
        compiler_params=pltpu.CompilerParams(
            dimension_semantics=("parallel",)),   # v7x: shard batch over both TensorCores
    )(*inputs)

    rec = unpatchify(rec_tok, C, p, nH, nW)
    return rec, z


# -------------------------------- param init ----------------------------------

def _randn(key, shape, scale=0.02):
    return jax.random.normal(key, shape, dtype=jnp.float32) * scale


def init_params(key, cfg):
    d = cfg["d_model"]
    C, p = cfg["channels"], cfg["patch_size"]
    T = (cfg["sample_size"] // p) ** 2
    L = cfg["latent_size"]
    lc = cfg["latent_channels"]
    NL = cfg["n_layers"]

    def layer_stack(k):
        ks = jax.random.split(k, 4)
        return {
            "ln1_g": jnp.ones((NL, d), jnp.float32), "ln1_b": jnp.zeros((NL, d), jnp.float32),
            "ln2_g": jnp.ones((NL, d), jnp.float32), "ln2_b": jnp.zeros((NL, d), jnp.float32),
            "w_qkv": _randn(ks[0], (NL, d, 3 * d)),
            "w_o":   _randn(ks[1], (NL, d, d)),
            "w1":    _randn(ks[2], (NL, d, 4 * d)),
            "w2":    _randn(ks[3], (NL, 4 * d, d)),
        }

    k_enc, k_dec = jax.random.split(key)
    ke = jax.random.split(k_enc, 5)
    kd = jax.random.split(k_dec, 5)

    encoder = {
        "patch_w": _randn(ke[0], (C * p * p, d)),        # Conv2d(C, d, p, p) weight, flat+T
        "latent_tokens": _randn(ke[1], (L, d)),
        "pos_enc": _randn(ke[2], (T + L, d)),
        "proj_out_w": _randn(ke[3], (d, lc)),
        **layer_stack(ke[4]),
    }
    decoder = {
        "proj_in_w": _randn(kd[0], (lc, d)),
        "image_tokens": _randn(kd[1], (T, d)),
        "pos_enc": _randn(kd[2], (T + L, d)),
        "out_ln_g": jnp.ones((d,), jnp.float32),
        "out_ln_b": jnp.zeros((d,), jnp.float32),
        "out_w": _randn(kd[3], (d, C * p * p)),
        "out_b": jnp.zeros((C * p * p,), jnp.float32),
        **layer_stack(kd[4]),
    }
    return {"encoder": encoder, "decoder": decoder}


# ----------------------------------- main --------------------------------------

if __name__ == "__main__":
    cfg = dict(
        sample_size=16,
        patch_size=4,
        channels=4,
        d_model=32,
        n_heads=2,
        n_layers=2,
        latent_size=8,           # number of latent tokens
        latent_channels=4,
        noise_decoder_inputs=0.0,
    )

    key = jax.random.PRNGKey(0)
    k_param, k_input = jax.random.split(key)
    params = init_params(k_param, cfg)

    x = jax.random.normal(k_input, (2, cfg["channels"], cfg["sample_size"],
                                    cfg["sample_size"]), dtype=jnp.float32)  # NCHW

    fwd = jax.jit(lambda pr, xx: titok_vae_forward(pr, xx, cfg))
    rec, z = fwd(params, x)
    rec = jax.block_until_ready(rec)
    z = jax.block_until_ready(z)

    assert rec.shape == x.shape, rec.shape
    assert z.shape == (2, cfg["latent_size"], cfg["latent_channels"]), z.shape
    assert bool(jnp.isfinite(rec).all()) and bool(jnp.isfinite(z).all())
    print("KERNEL_OK")
</pallas_src>

<mosaic_0001>
module attributes {stable_mosaic.version = 11 : i64} {
  func.func @_titok_kernel(%arg0: i32, %arg1: memref<1x16x64xf32, #tpu.memory_space<vmem>>, %arg2: memref<64x32xbf16, #tpu.memory_space<vmem>>, %arg3: memref<8x32xf32, #tpu.memory_space<vmem>>, %arg4: memref<16x32xf32, #tpu.memory_space<vmem>>, %arg5: memref<2x4x1x32xf32, #tpu.memory_space<vmem>>, %arg6: memref<2x3x2x32x16xbf16, #tpu.memory_space<vmem>>, %arg7: memref<2x2x16x32xbf16, #tpu.memory_space<vmem>>, %arg8: memref<2x32x128xbf16, #tpu.memory_space<vmem>>, %arg9: memref<2x128x32xbf16, #tpu.memory_space<vmem>>, %arg10: memref<32x4xbf16, #tpu.memory_space<vmem>>, %arg11: memref<4x32xbf16, #tpu.memory_space<vmem>>, %arg12: memref<8x32xf32, #tpu.memory_space<vmem>>, %arg13: memref<16x32xf32, #tpu.memory_space<vmem>>, %arg14: memref<2x4x1x32xf32, #tpu.memory_space<vmem>>, %arg15: memref<2x3x2x32x16xbf16, #tpu.memory_space<vmem>>, %arg16: memref<2x2x16x32xbf16, #tpu.memory_space<vmem>>, %arg17: memref<2x32x128xbf16, #tpu.memory_space<vmem>>, %arg18: memref<2x128x32xbf16, #tpu.memory_space<vmem>>, %arg19: memref<2x1x32xf32, #tpu.memory_space<vmem>>, %arg20: memref<32x64xbf16, #tpu.memory_space<vmem>>, %arg21: memref<1x64xf32, #tpu.memory_space<vmem>>, %arg22: memref<1x16x64xf32, #tpu.memory_space<vmem>>, %arg23: memref<1x8x4xf32, #tpu.memory_space<vmem>>) attributes {dimension_semantics = [#tpu.dimension_semantics<parallel>], iteration_bounds = array<i64: 2>, scalar_prefetch = 0 : i64, scratch_operands = 0 : i64, tpu.core_type = #tpu.core_type<tc>, window_params = [{transform_indices = @transform_0, window_bounds = array<i64: 1, 16, 64>}, {pipeline_mode = #tpu.pipeline_mode<synchronous>, transform_indices = @transform_1, window_bounds = array<i64: 64, 32>}, {pipeline_mode = #tpu.pipeline_mode<synchronous>, transform_indices = @transform_2, window_bounds = array<i64: 8, 32>}, {pipeline_mode = #tpu.pipeline_mode<synchronous>, transform_indices = @transform_3, window_bounds = array<i64: 16, 32>}, {pipeline_mode = #tpu.pipeline_mode<synchronous>, transform_indices = @transform_4, window_bounds = array<i64: 2, 4, 1, 32>}, {pipeline_mode = #tpu.pipeline_mode<synchronous>, transform_indices = @transform_5, window_bounds = array<i64: 2, 3, 2, 32, 16>}, {pipeline_mode = #tpu.pipeline_mode<synchronous>, transform_indices = @transform_6, window_bounds = array<i64: 2, 2, 16, 32>}, {pipeline_mode = #tpu.pipeline_mode<synchronous>, transform_indices = @transform_7, window_bounds = array<i64: 2, 32, 128>}, {pipeline_mode = #tpu.pipeline_mode<synchronous>, transform_indices = @transform_8, window_bounds = array<i64: 2, 128, 32>}, {pipeline_mode = #tpu.pipeline_mode<synchronous>, transform_indices = @transform_9, window_bounds = array<i64: 32, 4>}, {pipeline_mode = #tpu.pipeline_mode<synchronous>, transform_indices = @transform_10, window_bounds = array<i64: 4, 32>}, {pipeline_mode = #tpu.pipeline_mode<synchronous>, transform_indices = @transform_11, window_bounds = array<i64: 8, 32>}, {pipeline_mode = #tpu.pipeline_mode<synchronous>, transform_indices = @transform_12, window_bounds = array<i64: 16, 32>}, {pipeline_mode = #tpu.pipeline_mode<synchronous>, transform_indices = @transform_13, window_bounds = array<i64: 2, 4, 1, 32>}, {pipeline_mode = #tpu.pipeline_mode<synchronous>, transform_indices = @transform_14, window_bounds = array<i64: 2, 3, 2, 32, 16>}, {pipeline_mode = #tpu.pipeline_mode<synchronous>, transform_indices = @transform_15, window_bounds = array<i64: 2, 2, 16, 32>}, {pipeline_mode = #tpu.pipeline_mode<synchronous>, transform_indices = @transform_16, window_bounds = array<i64: 2, 32, 128>}, {pipeline_mode = #tpu.pipeline_mode<synchronous>, transform_indices = @transform_17, window_bounds = array<i64: 2, 128, 32>}, {pipeline_mode = #tpu.pipeline_mode<synchronous>, transform_indices = @transform_18, window_bounds = array<i64: 2, 1, 32>}, {pipeline_mode = #tpu.pipeline_mode<synchronous>, transform_indices = @transform_19, window_bounds = array<i64: 32, 64>}, {pipeline_mode = #tpu.pipeline_mode<synchronous>, transform_indices = @transform_20, window_bounds = array<i64: 1, 64>}, {transform_indices = @transform_21, window_bounds = array<i64: 1, 16, 64>}, {transform_indices = @transform_22, window_bounds = array<i64: 1, 8, 4>}]} {
    %c0 = arith.constant 0 : index
    %c0_0 = arith.constant 0 : index
    %c0_1 = arith.constant 0 : index
    %0 = vector.load %arg1[%c0, %c0_0, %c0_1] : memref<1x16x64xf32, #tpu.memory_space<vmem>>, vector<1x16x64xf32>
    %1 = vector.shape_cast %0 : vector<1x16x64xf32> to vector<16x64xf32>
    %c0_2 = arith.constant 0 : index
    %c0_3 = arith.constant 0 : index
    %2 = vector.load %arg2[%c0_2, %c0_3] : memref<64x32xbf16, #tpu.memory_space<vmem>>, vector<64x32xbf16>
    %3 = arith.truncf %1 : vector<16x64xf32> to vector<16x64xbf16>
    %cst = arith.constant dense<0.000000e+00> : vector<16x32xf32>
    %4 = tpu.matmul %3, %2, %cst {dimension_numbers = #tpu.dot_dimension_numbers<[1], [0], [0], [1], [0, 0, 1, 1], [], []>} : vector<16x64xbf16>, vector<64x32xbf16>, vector<16x32xf32> -> vector<16x32xf32>
    %c0_4 = arith.constant 0 : index
    %c0_5 = arith.constant 0 : index
    %5 = vector.load %arg4[%c0_4, %c0_5] : memref<16x32xf32, #tpu.memory_space<vmem>>, vector<16x32xf32>
    %6 = arith.addf %4, %5 : vector<16x32xf32>
    %c0_6 = arith.constant 0 : index
    %c0_7 = arith.constant 0 : index
    %7 = vector.load %arg3[%c0_6, %c0_7] : memref<8x32xf32, #tpu.memory_space<vmem>>, vector<8x32xf32>
    %8 = tpu.concatenate %7, %6 in 0 : vector<8x32xf32>, vector<16x32xf32> -> vector<24x32xf32>
    %c0_8 = arith.constant 0 : index
    %c0_9 = arith.constant 0 : index
    %c0_10 = arith.constant 0 : index
    %c0_11 = arith.constant 0 : index
    %9 = vector.load %arg5[%c0_8, %c0_9, %c0_10, %c0_11] : memref<2x4x1x32xf32, #tpu.memory_space<vmem>>, vector<1x1x1x32xf32>
    %10 = vector.shape_cast %9 : vector<1x1x1x32xf32> to vector<1x32xf32>
    %c0_12 = arith.constant 0 : index
    %c1 = arith.constant 1 : index
    %c0_13 = arith.constant 0 : index
    %c0_14 = arith.constant 0 : index
    %11 = vector.load %arg5[%c0_12, %c1, %c0_13, %c0_14] : memref<2x4x1x32xf32, #tpu.memory_space<vmem>>, vector<1x1x1x32xf32>
    %12 = vector.shape_cast %11 : vector<1x1x1x32xf32> to vector<1x32xf32>
    %cst_15 = arith.constant dense<0.000000e+00> : vector<24xf32>
    %13 = vector.multi_reduction <add>, %8, %cst_15 [1] : vector<24x32xf32> to vector<24xf32>
    %14 = vector.shape_cast %13 : vector<24xf32> to vector<24x1xf32>
    %cst_16 = arith.constant 3.200000e+01 : f32
    %15 = vector.broadcast %cst_16 : f32 to vector<24x1xf32>
    %16 = arith.divf %14, %15 : vector<24x1xf32>
    %17 = vector.broadcast %16 : vector<24x1xf32> to vector<24x32xf32>
    %18 = arith.subf %8, %17 : vector<24x32xf32>
    %19 = arith.mulf %18, %18 : vector<24x32xf32>
    %cst_17 = arith.constant dense<0.000000e+00> : vector<24xf32>
    %20 = vector.multi_reduction <add>, %19, %cst_17 [1] : vector<24x32xf32> to vector<24xf32>
    %21 = vector.shape_cast %20 : vector<24xf32> to vector<24x1xf32>
    %cst_18 = arith.constant 3.200000e+01 : f32
    %22 = vector.broadcast %cst_18 : f32 to vector<24x1xf32>
    %23 = arith.divf %21, %22 : vector<24x1xf32>
    %24 = vector.broadcast %16 : vector<24x1xf32> to vector<24x32xf32>
    %25 = arith.subf %8, %24 : vector<24x32xf32>
    %cst_19 = arith.constant 9.99999974E-6 : f32
    %26 = vector.broadcast %cst_19 : f32 to vector<24x1xf32>
    %27 = arith.addf %23, %26 : vector<24x1xf32>
    %28 = math.rsqrt %27 : vector<24x1xf32>
    %29 = vector.broadcast %28 : vector<24x1xf32> to vector<24x32xf32>
    %30 = arith.mulf %25, %29 : vector<24x32xf32>
    %31 = vector.broadcast %10 : vector<1x32xf32> to vector<24x32xf32>
    %32 = arith.mulf %30, %31 : vector<24x32xf32>
    %33 = vector.broadcast %12 : vector<1x32xf32> to vector<24x32xf32>
    %34 = arith.addf %32, %33 : vector<24x32xf32>
    %c0_20 = arith.constant 0 : index
    %c0_21 = arith.constant 0 : index
    %c0_22 = arith.constant 0 : index
    %c0_23 = arith.constant 0 : index
    %c0_24 = arith.constant 0 : index
    %35 = vector.load %arg6[%c0_20, %c0_21, %c0_22, %c0_23, %c0_24] : memref<2x3x2x32x16xbf16, #tpu.memory_space<vmem>>, vector<1x1x1x32x16xbf16>
    %36 = vector.shape_cast %35 : vector<1x1x1x32x16xbf16> to vector<32x16xbf16>
    %37 = arith.truncf %34 : vector<24x32xf32> to vector<24x32xbf16>
    %cst_25 = arith.constant dense<0.000000e+00> : vector<24x16xf32>
    %38 = tpu.matmul %37, %36, %cst_25 {dimension_numbers = #tpu.dot_dimension_numbers<[1], [0], [0], [1], [0, 0, 1, 1], [], []>} : vector<24x32xbf16>, vector<32x16xbf16>, vector<24x16xf32> -> vector<24x16xf32>
    %c0_26 = arith.constant 0 : index
    %c1_27 = arith.constant 1 : index
    %c0_28 = arith.constant 0 : index
    %c0_29 = arith.constant 0 : index
    %c0_30 = arith.constant 0 : index
    %39 = vector.load %arg6[%c0_26, %c1_27, %c0_28, %c0_29, %c0_30] : memref<2x3x2x32x16xbf16, #tpu.memory_space<vmem>>, vector<1x1x1x32x16xbf16>
    %40 = vector.shape_cast %39 : vector<1x1x1x32x16xbf16> to vector<32x16xbf16>
    %41 = arith.truncf %34 : vector<24x32xf32> to vector<24x32xbf16>
    %cst_31 = arith.constant dense<0.000000e+00> : vector<24x16xf32>
    %42 = tpu.matmul %41, %40, %cst_31 {dimension_numbers = #tpu.dot_dimension_numbers<[1], [0], [0], [1], [0, 0, 1, 1], [], []>} : vector<24x32xbf16>, vector<32x16xbf16>, vector<24x16xf32> -> vector<24x16xf32>
    %c0_32 = arith.constant 0 : index
    %c2 = arith.constant 2 : index
    %c0_33 = arith.constant 0 : index
    %c0_34 = arith.constant 0 : index
    %c0_35 = arith.constant 0 : index
    %43 = vector.load %arg6[%c0_32, %c2, %c0_33, %c0_34, %c0_35] : memref<2x3x2x32x16xbf16, #tpu.memory_space<vmem>>, vector<1x1x1x32x16xbf16>
    %44 = vector.shape_cast %43 : vector<1x1x1x32x16xbf16> to vector<32x16xbf16>
    %45 = arith.truncf %34 : vector<24x32xf32> to vector<24x32xbf16>
    %cst_36 = arith.constant dense<0.000000e+00> : vector<24x16xf32>
    %46 = tpu.matmul %45, %44, %cst_36 {dimension_numbers = #tpu.dot_dimension_numbers<[1], [0], [0], [1], [0, 0, 1, 1], [], []>} : vector<24x32xbf16>, vector<32x16xbf16>, vector<24x16xf32> -> vector<24x16xf32>
    %47 = arith.truncf %38 : vector<24x16xf32> to vector<24x16xbf16>
    %48 = arith.truncf %42 : vector<24x16xf32> to vector<24x16xbf16>
    %cst_37 = arith.constant dense<0.000000e+00> : vector<24x24xf32>
    %49 = tpu.matmul %47, %48, %cst_37 {dimension_numbers = #tpu.dot_dimension_numbers<[1], [1], [0], [0], [0, 0, 1, 0], [], []>} : vector<24x16xbf16>, vector<24x16xbf16>, vector<24x24xf32> -> vector<24x24xf32>
    %cst_38 = arith.constant dense<0xFF800000> : vector<24xf32>
    %50 = vector.multi_reduction <maximumf>, %49, %cst_38 [1] : vector<24x24xf32> to vector<24xf32>
    %51 = vector.shape_cast %50 : vector<24xf32> to vector<24x1xf32>
    %52 = vector.broadcast %51 : vector<24x1xf32> to vector<24x24xf32>
    %53 = arith.subf %49, %52 : vector<24x24xf32>
    %54 = math.exp %53 : vector<24x24xf32>
    %cst_39 = arith.constant dense<0.000000e+00> : vector<24xf32>
    %55 = vector.multi_reduction <add>, %54, %cst_39 [1] : vector<24x24xf32> to vector<24xf32>
    %56 = vector.shape_cast %55 : vector<24xf32> to vector<24x1xf32>
    %57 = tpu.reciprocal %56 {approx = true} : vector<24x1xf32> -> vector<24x1xf32>
    %58 = vector.broadcast %57 : vector<24x1xf32> to vector<24x24xf32>
    %59 = arith.mulf %54, %58 : vector<24x24xf32>
    %60 = arith.truncf %59 : vector<24x24xf32> to vector<24x24xbf16>
    %61 = arith.truncf %46 : vector<24x16xf32> to vector<24x16xbf16>
    %cst_40 = arith.constant dense<0.000000e+00> : vector<24x16xf32>
    %62 = tpu.matmul %60, %61, %cst_40 {dimension_numbers = #tpu.dot_dimension_numbers<[1], [0], [0], [1], [0, 0, 1, 1], [], []>} : vector<24x24xbf16>, vector<24x16xbf16>, vector<24x16xf32> -> vector<24x16xf32>
    %c0_41 = arith.constant 0 : index
    %c0_42 = arith.constant 0 : index
    %c0_43 = arith.constant 0 : index
    %c0_44 = arith.constant 0 : index
    %63 = vector.load %arg7[%c0_41, %c0_42, %c0_43, %c0_44] : memref<2x2x16x32xbf16, #tpu.memory_space<vmem>>, vector<1x1x16x32xbf16>
    %64 = vector.shape_cast %63 : vector<1x1x16x32xbf16> to vector<16x32xbf16>
    %65 = arith.truncf %62 : vector<24x16xf32> to vector<24x16xbf16>
    %cst_45 = arith.constant dense<0.000000e+00> : vector<24x32xf32>
    %66 = tpu.matmul %65, %64, %cst_45 {dimension_numbers = #tpu.dot_dimension_numbers<[1], [0], [0], [1], [0, 0, 1, 1], [], []>} : vector<24x16xbf16>, vector<16x32xbf16>, vector<24x32xf32> -> vector<24x32xf32>
    %c0_46 = arith.constant 0 : index
    %c0_47 = arith.constant 0 : index
    %c1_48 = arith.constant 1 : index
    %c0_49 = arith.constant 0 : index
    %c0_50 = arith.constant 0 : index
    %67 = vector.load %arg6[%c0_46, %c0_47, %c1_48, %c0_49, %c0_50] : memref<2x3x2x32x16xbf16, #tpu.memory_space<vmem>>, vector<1x1x1x32x16xbf16>
    %68 = vector.shape_cast %67 : vector<1x1x1x32x16xbf16> to vector<32x16xbf16>
    %69 = arith.truncf %34 : vector<24x32xf32> to vector<24x32xbf16>
    %cst_51 = arith.constant dense<0.000000e+00> : vector<24x16xf32>
    %70 = tpu.matmul %69, %68, %cst_51 {dimension_numbers = #tpu.dot_dimension_numbers<[1], [0], [0], [1], [0, 0, 1, 1], [], []>} : vector<24x32xbf16>, vector<32x16xbf16>, vector<24x16xf32> -> vector<24x16xf32>
    %c0_52 = arith.constant 0 : index
    %c1_53 = arith.constant 1 : index
    %c1_54 = arith.constant 1 : index
    %c0_55 = arith.constant 0 : index
    %c0_56 = arith.constant 0 : index
    %71 = vector.load %arg6[%c0_52, %c1_53, %c1_54, %c0_55, %c0_56] : memref<2x3x2x32x16xbf16, #tpu.memory_space<vmem>>, vector<1x1x1x32x16xbf16>
    %72 = vector.shape_cast %71 : vector<1x1x1x32x16xbf16> to vector<32x16xbf16>
    %73 = arith.truncf %34 : vector<24x32xf32> to vector<24x32xbf16>
    %cst_57 = arith.constant dense<0.000000e+00> : vector<24x16xf32>
    %74 = tpu.matmul %73, %72, %cst_57 {dimension_numbers = #tpu.dot_dimension_numbers<[1], [0], [0], [1], [0, 0, 1, 1], [], []>} : vector<24x32xbf16>, vector<32x16xbf16>, vector<24x16xf32> -> vector<24x16xf32>
    %c0_58 = arith.constant 0 : index
    %c2_59 = arith.constant 2 : index
    %c1_60 = arith.constant 1 : index
    %c0_61 = arith.constant 0 : index
    %c0_62 = arith.constant 0 : index
    %75 = vector.load %arg6[%c0_58, %c2_59, %c1_60, %c0_61, %c0_62] : memref<2x3x2x32x16xbf16, #tpu.memory_space<vmem>>, vector<1x1x1x32x16xbf16>
    %76 = vector.shape_cast %75 : vector<1x1x1x32x16xbf16> to vector<32x16xbf16>
    %77 = arith.truncf %34 : vector<24x32xf32> to vector<24x32xbf16>
    %cst_63 = arith.constant dense<0.000000e+00> : vector<24x16xf32>
    %78 = tpu.matmul %77, %76, %cst_63 {dimension_numbers = #tpu.dot_dimension_numbers<[1], [0], [0], [1], [0, 0, 1, 1], [], []>} : vector<24x32xbf16>, vector<32x16xbf16>, vector<24x16xf32> -> vector<24x16xf32>
    %79 = arith.truncf %70 : vector<24x16xf32> to vector<24x16xbf16>
    %80 = arith.truncf %74 : vector<24x16xf32> to vector<24x16xbf16>
    %cst_64 = arith.constant dense<0.000000e+00> : vector<24x24xf32>
    %81 = tpu.matmul %79, %80, %cst_64 {dimension_numbers = #tpu.dot_dimension_numbers<[1], [1], [0], [0], [0, 0, 1, 0], [], []>} : vector<24x16xbf16>, vector<24x16xbf16>, vector<24x24xf32> -> vector<24x24xf32>
    %cst_65 = arith.constant dense<0xFF800000> : vector<24xf32>
    %82 = vector.multi_reduction <maximumf>, %81, %cst_65 [1] : vector<24x24xf32> to vector<24xf32>
    %83 = vector.shape_cast %82 : vector<24xf32> to vector<24x1xf32>
    %84 = vector.broadcast %83 : vector<24x1xf32> to vector<24x24xf32>
    %85 = arith.subf %81, %84 : vector<24x24xf32>
    %86 = math.exp %85 : vector<24x24xf32>
    %cst_66 = arith.constant dense<0.000000e+00> : vector<24xf32>
    %87 = vector.multi_reduction <add>, %86, %cst_66 [1] : vector<24x24xf32> to vector<24xf32>
    %88 = vector.shape_cast %87 : vector<24xf32> to vector<24x1xf32>
    %89 = tpu.reciprocal %88 {approx = true} : vector<24x1xf32> -> vector<24x1xf32>
    %90 = vector.broadcast %89 : vector<24x1xf32> to vector<24x24xf32>
    %91 = arith.mulf %86, %90 : vector<24x24xf32>
    %92 = arith.truncf %91 : vector<24x24xf32> to vector<24x24xbf16>
    %93 = arith.truncf %78 : vector<24x16xf32> to vector<24x16xbf16>
    %cst_67 = arith.constant dense<0.000000e+00> : vector<24x16xf32>
    %94 = tpu.matmul %92, %93, %cst_67 {dimension_numbers = #tpu.dot_dimension_numbers<[1], [0], [0], [1], [0, 0, 1, 1], [], []>} : vector<24x24xbf16>, vector<24x16xbf16>, vector<24x16xf32> -> vector<24x16xf32>
    %c0_68 = arith.constant 0 : index
    %c1_69 = arith.constant 1 : index
    %c0_70 = arith.constant 0 : index
    %c0_71 = arith.constant 0 : index
    %95 = vector.load %arg7[%c0_68, %c1_69, %c0_70, %c0_71] : memref<2x2x16x32xbf16, #tpu.memory_space<vmem>>, vector<1x1x16x32xbf16>
    %96 = vector.shape_cast %95 : vector<1x1x16x32xbf16> to vector<16x32xbf16>
    %97 = arith.truncf %94 : vector<24x16xf32> to vector<24x16xbf16>
    %cst_72 = arith.constant dense<0.000000e+00> : vector<24x32xf32>
    %98 = tpu.matmul %97, %96, %cst_72 {dimension_numbers = #tpu.dot_dimension_numbers<[1], [0], [0], [1], [0, 0, 1, 1], [], []>} : vector<24x16xbf16>, vector<16x32xbf16>, vector<24x32xf32> -> vector<24x32xf32>
    %99 = arith.addf %66, %98 : vector<24x32xf32>
    %100 = arith.addf %8, %99 : vector<24x32xf32>
    %c0_73 = arith.constant 0 : index
    %c2_74 = arith.constant 2 : index
    %c0_75 = arith.constant 0 : index
    %c0_76 = arith.constant 0 : index
    %101 = vector.load %arg5[%c0_73, %c2_74, %c0_75, %c0_76] : memref<2x4x1x32xf32, #tpu.memory_space<vmem>>, vector<1x1x1x32xf32>
    %102 = vector.shape_cast %101 : vector<1x1x1x32xf32> to vector<1x32xf32>
    %c0_77 = arith.constant 0 : index
    %c3 = arith.constant 3 : index
    %c0_78 = arith.constant 0 : index
    %c0_79 = arith.constant 0 : index
    %103 = vector.load %arg5[%c0_77, %c3, %c0_78, %c0_79] : memref<2x4x1x32xf32, #tpu.memory_space<vmem>>, vector<1x1x1x32xf32>
    %104 = vector.shape_cast %103 : vector<1x1x1x32xf32> to vector<1x32xf32>
    %cst_80 = arith.constant dense<0.000000e+00> : vector<24xf32>
    %105 = vector.multi_reduction <add>, %100, %cst_80 [1] : vector<24x32xf32> to vector<24xf32>
    %106 = vector.shape_cast %105 : vector<24xf32> to vector<24x1xf32>
    %cst_81 = arith.constant 3.200000e+01 : f32
    %107 = vector.broadcast %cst_81 : f32 to vector<24x1xf32>
    %108 = arith.divf %106, %107 : vector<24x1xf32>
    %109 = vector.broadcast %108 : vector<24x1xf32> to vector<24x32xf32>
    %110 = arith.subf %100, %109 : vector<24x32xf32>
    %111 = arith.mulf %110, %110 : vector<24x32xf32>
    %cst_82 = arith.constant dense<0.000000e+00> : vector<24xf32>
    %112 = vector.multi_reduction <add>, %111, %cst_82 [1] : vector<24x32xf32> to vector<24xf32>
    %113 = vector.shape_cast %112 : vector<24xf32> to vector<24x1xf32>
    %cst_83 = arith.constant 3.200000e+01 : f32
    %114 = vector.broadcast %cst_83 : f32 to vector<24x1xf32>
    %115 = arith.divf %113, %114 : vector<24x1xf32>
    %116 = vector.broadcast %108 : vector<24x1xf32> to vector<24x32xf32>
    %117 = arith.subf %100, %116 : vector<24x32xf32>
    %cst_84 = arith.constant 9.99999974E-6 : f32
    %118 = vector.broadcast %cst_84 : f32 to vector<24x1xf32>
    %119 = arith.addf %115, %118 : vector<24x1xf32>
    %120 = math.rsqrt %119 : vector<24x1xf32>
    %121 = vector.broadcast %120 : vector<24x1xf32> to vector<24x32xf32>
    %122 = arith.mulf %117, %121 : vector<24x32xf32>
    %123 = vector.broadcast %102 : vector<1x32xf32> to vector<24x32xf32>
    %124 = arith.mulf %122, %123 : vector<24x32xf32>
    %125 = vector.broadcast %104 : vector<1x32xf32> to vector<24x32xf32>
    %126 = arith.addf %124, %125 : vector<24x32xf32>
    %c0_85 = arith.constant 0 : index
    %c0_86 = arith.constant 0 : index
    %c0_87 = arith.constant 0 : index
    %127 = vector.load %arg8[%c0_85, %c0_86, %c0_87] : memref<2x32x128xbf16, #tpu.memory_space<vmem>>, vector<1x32x128xbf16>
    %128 = vector.shape_cast %127 : vector<1x32x128xbf16> to vector<32x128xbf16>
    %129 = arith.truncf %126 : vector<24x32xf32> to vector<24x32xbf16>
    %cst_88 = arith.constant dense<0.000000e+00> : vector<24x128xf32>
    %130 = tpu.matmul %129, %128, %cst_88 {dimension_numbers = #tpu.dot_dimension_numbers<[1], [0], [0], [1], [0, 0, 1, 1], [], []>} : vector<24x32xbf16>, vector<32x128xbf16>, vector<24x128xf32> -> vector<24x128xf32>
    %131 = arith.mulf %130, %130 : vector<24x128xf32>
    %132 = arith.mulf %130, %131 : vector<24x128xf32>
    %cst_89 = arith.constant 4.471500e-02 : f32
    %133 = vector.broadcast %cst_89 : f32 to vector<24x128xf32>
    %134 = arith.mulf %133, %132 : vector<24x128xf32>
    %135 = arith.addf %130, %134 : vector<24x128xf32>
    %cst_90 = arith.constant 0.797884583 : f32
    %136 = vector.broadcast %cst_90 : f32 to vector<24x128xf32>
    %137 = arith.mulf %136, %135 : vector<24x128xf32>
    %138 = math.tanh %137 : vector<24x128xf32>
    %cst_91 = arith.constant 1.000000e+00 : f32
    %139 = vector.broadcast %cst_91 : f32 to vector<24x128xf32>
    %140 = arith.addf %139, %138 : vector<24x128xf32>
    %cst_92 = arith.constant 5.000000e-01 : f32
    %141 = vector.broadcast %cst_92 : f32 to vector<24x128xf32>
    %142 = arith.mulf %141, %140 : vector<24x128xf32>
    %143 = arith.mulf %130, %142 : vector<24x128xf32>
    %c0_93 = arith.constant 0 : index
    %c0_94 = arith.constant 0 : index
    %c0_95 = arith.constant 0 : index
    %144 = vector.load %arg9[%c0_93, %c0_94, %c0_95] : memref<2x128x32xbf16, #tpu.memory_space<vmem>>, vector<1x128x32xbf16>
    %145 = vector.shape_cast %144 : vector<1x128x32xbf16> to vector<128x32xbf16>
    %146 = arith.truncf %143 : vector<24x128xf32> to vector<24x128xbf16>
    %cst_96 = arith.constant dense<0.000000e+00> : vector<24x32xf32>
    %147 = tpu.matmul %146, %145, %cst_96 {dimension_numbers = #tpu.dot_dimension_numbers<[1], [0], [0], [1], [0, 0, 1, 1], [], []>} : vector<24x128xbf16>, vector<128x32xbf16>, vector<24x32xf32> -> vector<24x32xf32>
    %148 = arith.addf %100, %147 : vector<24x32xf32>
    %c1_97 = arith.constant 1 : index
    %c0_98 = arith.constant 0 : index
    %c0_99 = arith.constant 0 : index
    %c0_100 = arith.constant 0 : index
    %149 = vector.load %arg5[%c1_97, %c0_98, %c0_99, %c0_100] : memref<2x4x1x32xf32, #tpu.memory_space<vmem>>, vector<1x1x1x32xf32>
    %150 = vector.shape_cast %149 : vector<1x1x1x32xf32> to vector<1x32xf32>
    %c1_101 = arith.constant 1 : index
    %c1_102 = arith.constant 1 : index
    %c0_103 = arith.constant 0 : index
    %c0_104 = arith.constant 0 : index
    %151 = vector.load %arg5[%c1_101, %c1_102, %c0_103, %c0_104] : memref<2x4x1x32xf32, #tpu.memory_space<vmem>>, vector<1x1x1x32xf32>
    %152 = vector.shape_cast %151 : vector<1x1x1x32xf32> to vector<1x32xf32>
    %cst_105 = arith.constant dense<0.000000e+00> : vector<24xf32>
    %153 = vector.multi_reduction <add>, %148, %cst_105 [1] : vector<24x32xf32> to vector<24xf32>
    %154 = vector.shape_cast %153 : vector<24xf32> to vector<24x1xf32>
    %cst_106 = arith.constant 3.200000e+01 : f32
    %155 = vector.broadcast %cst_106 : f32 to vector<24x1xf32>
    %156 = arith.divf %154, %155 : vector<24x1xf32>
    %157 = vector.broadcast %156 : vector<24x1xf32> to vector<24x32xf32>
    %158 = arith.subf %148, %157 : vector<24x32xf32>
    %159 = arith.mulf %158, %158 : vector<24x32xf32>
    %cst_107 = arith.constant dense<0.000000e+00> : vector<24xf32>
    %160 = vector.multi_reduction <add>, %159, %cst_107 [1] : vector<24x32xf32> to vector<24xf32>
    %161 = vector.shape_cast %160 : vector<24xf32> to vector<24x1xf32>
    %cst_108 = arith.constant 3.200000e+01 : f32
    %162 = vector.broadcast %cst_108 : f32 to vector<24x1xf32>
    %163 = arith.divf %161, %162 : vector<24x1xf32>
    %164 = vector.broadcast %156 : vector<24x1xf32> to vector<24x32xf32>
    %165 = arith.subf %148, %164 : vector<24x32xf32>
    %cst_109 = arith.constant 9.99999974E-6 : f32
    %166 = vector.broadcast %cst_109 : f32 to vector<24x1xf32>
    %167 = arith.addf %163, %166 : vector<24x1xf32>
    %168 = math.rsqrt %167 : vector<24x1xf32>
    %169 = vector.broadcast %168 : vector<24x1xf32> to vector<24x32xf32>
    %170 = arith.mulf %165, %169 : vector<24x32xf32>
    %171 = vector.broadcast %150 : vector<1x32xf32> to vector<24x32xf32>
    %172 = arith.mulf %170, %171 : vector<24x32xf32>
    %173 = vector.broadcast %152 : vector<1x32xf32> to vector<24x32xf32>
    %174 = arith.addf %172, %173 : vector<24x32xf32>
    %c1_110 = arith.constant 1 : index
    %c0_111 = arith.constant 0 : index
    %c0_112 = arith.constant 0 : index
    %c0_113 = arith.constant 0 : index
    %c0_114 = arith.constant 0 : index
    %175 = vector.load %arg6[%c1_110, %c0_111, %c0_112, %c0_113, %c0_114] : memref<2x3x2x32x16xbf16, #tpu.memory_space<vmem>>, vector<1x1x1x32x16xbf16>
    %176 = vector.shape_cast %175 : vector<1x1x1x32x16xbf16> to vector<32x16xbf16>
    %177 = arith.truncf %174 : vector<24x32xf32> to vector<24x32xbf16>
    %cst_115 = arith.constant dense<0.000000e+00> : vector<24x16xf32>
    %178 = tpu.matmul %177, %176, %cst_115 {dimension_numbers = #tpu.dot_dimension_numbers<[1], [0], [0], [1], [0, 0, 1, 1], [], []>} : vector<24x32xbf16>, vector<32x16xbf16>, vector<24x16xf32> -> vector<24x16xf32>
    %c1_116 = arith.constant 1 : index
    %c1_117 = arith.constant 1 : index
    %c0_118 = arith.constant 0 : index
    %c0_119 = arith.constant 0 : index
    %c0_120 = arith.constant 0 : index
    %179 = vector.load %arg6[%c1_116, %c1_117, %c0_118, %c0_119, %c0_120] : memref<2x3x2x32x16xbf16, #tpu.memory_space<vmem>>, vector<1x1x1x32x16xbf16>
    %180 = vector.shape_cast %179 : vector<1x1x1x32x16xbf16> to vector<32x16xbf16>
    %181 = arith.truncf %174 : vector<24x32xf32> to vector<24x32xbf16>
    %cst_121 = arith.constant dense<0.000000e+00> : vector<24x16xf32>
    %182 = tpu.matmul %181, %180, %cst_121 {dimension_numbers = #tpu.dot_dimension_numbers<[1], [0], [0], [1], [0, 0, 1, 1], [], []>} : vector<24x32xbf16>, vector<32x16xbf16>, vector<24x16xf32> -> vector<24x16xf32>
    %c1_122 = arith.constant 1 : index
    %c2_123 = arith.constant 2 : index
    %c0_124 = arith.constant 0 : index
    %c0_125 = arith.constant 0 : index
    %c0_126 = arith.constant 0 : index
    %183 = vector.load %arg6[%c1_122, %c2_123, %c0_124, %c0_125, %c0_126] : memref<2x3x2x32x16xbf16, #tpu.memory_space<vmem>>, vector<1x1x1x32x16xbf16>
    %184 = vector.shape_cast %183 : vector<1x1x1x32x16xbf16> to vector<32x16xbf16>
    %185 = arith.truncf %174 : vector<24x32xf32> to vector<24x32xbf16>
    %cst_127 = arith.constant dense<0.000000e+00> : vector<24x16xf32>
    %186 = tpu.matmul %185, %184, %cst_127 {dimension_numbers = #tpu.dot_dimension_numbers<[1], [0], [0], [1], [0, 0, 1, 1], [], []>} : vector<24x32xbf16>, vector<32x16xbf16>, vector<24x16xf32> -> vector<24x16xf32>
    %187 = arith.truncf %178 : vector<24x16xf32> to vector<24x16xbf16>
    %188 = arith.truncf %182 : vector<24x16xf32> to vector<24x16xbf16>
    %cst_128 = arith.constant dense<0.000000e+00> : vector<24x24xf32>
    %189 = tpu.matmul %187, %188, %cst_128 {dimension_numbers = #tpu.dot_dimension_numbers<[1], [1], [0], [0], [0, 0, 1, 0], [], []>} : vector<24x16xbf16>, vector<24x16xbf16>, vector<24x24xf32> -> vector<24x24xf32>
    %cst_129 = arith.constant dense<0xFF800000> : vector<24xf32>
    %190 = vector.multi_reduction <maximumf>, %189, %cst_129 [1] : vector<24x24xf32> to vector<24xf32>
    %191 = vector.shape_cast %190 : vector<24xf32> to vector<24x1xf32>
    %192 = vector.broadcast %191 : vector<24x1xf32> to vector<24x24xf32>
    %193 = arith.subf %189, %192 : vector<24x24xf32>
    %194 = math.exp %193 : vector<24x24xf32>
    %cst_130 = arith.constant dense<0.000000e+00> : vector<24xf32>
    %195 = vector.multi_reduction <add>, %194, %cst_130 [1] : vector<24x24xf32> to vector<24xf32>
    %196 = vector.shape_cast %195 : vector<24xf32> to vector<24x1xf32>
    %197 = tpu.reciprocal %196 {approx = true} : vector<24x1xf32> -> vector<24x1xf32>
    %198 = vector.broadcast %197 : vector<24x1xf32> to vector<24x24xf32>
    %199 = arith.mulf %194, %198 : vector<24x24xf32>
    %200 = arith.truncf %199 : vector<24x24xf32> to vector<24x24xbf16>
    %201 = arith.truncf %186 : vector<24x16xf32> to vector<24x16xbf16>
    %cst_131 = arith.constant dense<0.000000e+00> : vector<24x16xf32>
    %202 = tpu.matmul %200, %201, %cst_131 {dimension_numbers = #tpu.dot_dimension_numbers<[1], [0], [0], [1], [0, 0, 1, 1], [], []>} : vector<24x24xbf16>, vector<24x16xbf16>, vector<24x16xf32> -> vector<24x16xf32>
    %c1_132 = arith.constant 1 : index
    %c0_133 = arith.constant 0 : index
    %c0_134 = arith.constant 0 : index
    %c0_135 = arith.constant 0 : index
    %203 = vector.load %arg7[%c1_132, %c0_133, %c0_134, %c0_135] : memref<2x2x16x32xbf16, #tpu.memory_space<vmem>>, vector<1x1x16x32xbf16>
    %204 = vector.shape_cast %203 : vector<1x1x16x32xbf16> to vector<16x32xbf16>
    %205 = arith.truncf %202 : vector<24x16xf32> to vector<24x16xbf16>
    %cst_136 = arith.constant dense<0.000000e+00> : vector<24x32xf32>
    %206 = tpu.matmul %205, %204, %cst_136 {dimension_numbers = #tpu.dot_dimension_numbers<[1], [0], [0], [1], [0, 0, 1, 1], [], []>} : vector<24x16xbf16>, vector<16x32xbf16>, vector<24x32xf32> -> vector<24x32xf32>
    %c1_137 = arith.constant 1 : index
    %c0_138 = arith.constant 0 : index
    %c1_139 = arith.constant 1 : index
    %c0_140 = arith.constant 0 : index
    %c0_141 = arith.constant 0 : index
    %207 = vector.load %arg6[%c1_137, %c0_138, %c1_139, %c0_140, %c0_141] : memref<2x3x2x32x16xbf16, #tpu.memory_space<vmem>>, vector<1x1x1x32x16xbf16>
    %208 = vector.shape_cast %207 : vector<1x1x1x32x16xbf16> to vector<32x16xbf16>
    %209 = arith.truncf %174 : vector<24x32xf32> to vector<24x32xbf16>
    %cst_142 = arith.constant dense<0.000000e+00> : vector<24x16xf32>
    %210 = tpu.matmul %209, %208, %cst_142 {dimension_numbers = #tpu.dot_dimension_numbers<[1], [0], [0], [1], [0, 0, 1, 1], [], []>} : vector<24x32xbf16>, vector<32x16xbf16>, vector<24x16xf32> -> vector<24x16xf32>
    %c1_143 = arith.constant 1 : index
    %c1_144 = arith.constant 1 : index
    %c1_145 = arith.constant 1 : index
    %c0_146 = arith.constant 0 : index
    %c0_147 = arith.constant 0 : index
    %211 = vector.load %arg6[%c1_143, %c1_144, %c1_145, %c0_146, %c0_147] : memref<2x3x2x32x16xbf16, #tpu.memory_space<vmem>>, vector<1x1x1x32x16xbf16>
    %212 = vector.shape_cast %211 : vector<1x1x1x32x16xbf16> to vector<32x16xbf16>
    %213 = arith.truncf %174 : vector<24x32xf32> to vector<24x32xbf16>
    %cst_148 = arith.constant dense<0.000000e+00> : vector<24x16xf32>
    %214 = tpu.matmul %213, %212, %cst_148 {dimension_numbers = #tpu.dot_dimension_numbers<[1], [0], [0], [1], [0, 0, 1, 1], [], []>} : vector<24x32xbf16>, vector<32x16xbf16>, vector<24x16xf32> -> vector<24x16xf32>
    %c1_149 = arith.constant 1 : index
    %c2_150 = arith.constant 2 : index
    %c1_151 = arith.constant 1 : index
    %c0_152 = arith.constant 0 : index
    %c0_153 = arith.constant 0 : index
    %215 = vector.load %arg6[%c1_149, %c2_150, %c1_151, %c0_152, %c0_153] : memref<2x3x2x32x16xbf16, #tpu.memory_space<vmem>>, vector<1x1x1x32x16xbf16>
    %216 = vector.shape_cast %215 : vector<1x1x1x32x16xbf16> to vector<32x16xbf16>
    %217 = arith.truncf %174 : vector<24x32xf32> to vector<24x32xbf16>
    %cst_154 = arith.constant dense<0.000000e+00> : vector<24x16xf32>
    %218 = tpu.matmul %217, %216, %cst_154 {dimension_numbers = #tpu.dot_dimension_numbers<[1], [0], [0], [1], [0, 0, 1, 1], [], []>} : vector<24x32xbf16>, vector<32x16xbf16>, vector<24x16xf32> -> vector<24x16xf32>
    %219 = arith.truncf %210 : vector<24x16xf32> to vector<24x16xbf16>
    %220 = arith.truncf %214 : vector<24x16xf32> to vector<24x16xbf16>
    %cst_155 = arith.constant dense<0.000000e+00> : vector<24x24xf32>
    %221 = tpu.matmul %219, %220, %cst_155 {dimension_numbers = #tpu.dot_dimension_numbers<[1], [1], [0], [0], [0, 0, 1, 0], [], []>} : vector<24x16xbf16>, vector<24x16xbf16>, vector<24x24xf32> -> vector<24x24xf32>
    %cst_156 = arith.constant dense<0xFF800000> : vector<24xf32>
    %222 = vector.multi_reduction <maximumf>, %221, %cst_156 [1] : vector<24x24xf32> to vector<24xf32>
    %223 = vector.shape_cast %222 : vector<24xf32> to vector<24x1xf32>
    %224 = vector.broadcast %223 : vector<24x1xf32> to vector<24x24xf32>
    %225 = arith.subf %221, %224 : vector<24x24xf32>
    %226 = math.exp %225 : vector<24x24xf32>
    %cst_157 = arith.constant dense<0.000000e+00> : vector<24xf32>
    %227 = vector.multi_reduction <add>, %226, %cst_157 [1] : vector<24x24xf32> to vector<24xf32>
    %228 = vector.shape_cast %227 : vector<24xf32> to vector<24x1xf32>
    %229 = tpu.reciprocal %228 {approx = true} : vector<24x1xf32> -> vector<24x1xf32>
    %230 = vector.broadcast %229 : vector<24x1xf32> to vector<24x24xf32>
    %231 = arith.mulf %226, %230 : vector<24x24xf32>
    %232 = arith.truncf %231 : vector<24x24xf32> to vector<24x24xbf16>
    %233 = arith.truncf %218 : vector<24x16xf32> to vector<24x16xbf16>
    %cst_158 = arith.constant dense<0.000000e+00> : vector<24x16xf32>
    %234 = tpu.matmul %232, %233, %cst_158 {dimension_numbers = #tpu.dot_dimension_numbers<[1], [0], [0], [1], [0, 0, 1, 1], [], []>} : vector<24x24xbf16>, vector<24x16xbf16>, vector<24x16xf32> -> vector<24x16xf32>
    %c1_159 = arith.constant 1 : index
    %c1_160 = arith.constant 1 : index
    %c0_161 = arith.constant 0 : index
    %c0_162 = arith.constant 0 : index
    %235 = vector.load %arg7[%c1_159, %c1_160, %c0_161, %c0_162] : memref<2x2x16x32xbf16, #tpu.memory_space<vmem>>, vector<1x1x16x32xbf16>
    %236 = vector.shape_cast %235 : vector<1x1x16x32xbf16> to vector<16x32xbf16>
    %237 = arith.truncf %234 : vector<24x16xf32> to vector<24x16xbf16>
    %cst_163 = arith.constant dense<0.000000e+00> : vector<24x32xf32>
    %238 = tpu.matmul %237, %236, %cst_163 {dimension_numbers = #tpu.dot_dimension_numbers<[1], [0], [0], [1], [0, 0, 1, 1], [], []>} : vector<24x16xbf16>, vector<16x32xbf16>, vector<24x32xf32> -> vector<24x32xf32>
    %239 = arith.addf %206, %238 : vector<24x32xf32>
    %240 = arith.addf %148, %239 : vector<24x32xf32>
    %c1_164 = arith.constant 1 : index
    %c2_165 = arith.constant 2 : index
    %c0_166 = arith.constant 0 : index
    %c0_167 = arith.constant 0 : index
    %241 = vector.load %arg5[%c1_164, %c2_165, %c0_166, %c0_167] : memref<2x4x1x32xf32, #tpu.memory_space<vmem>>, vector<1x1x1x32xf32>
    %242 = vector.shape_cast %241 : vector<1x1x1x32xf32> to vector<1x32xf32>
    %c1_168 = arith.constant 1 : index
    %c3_169 = arith.constant 3 : index
    %c0_170 = arith.constant 0 : index
    %c0_171 = arith.constant 0 : index
    %243 = vector.load %arg5[%c1_168, %c3_169, %c0_170, %c0_171] : memref<2x4x1x32xf32, #tpu.memory_space<vmem>>, vector<1x1x1x32xf32>
    %244 = vector.shape_cast %243 : vector<1x1x1x32xf32> to vector<1x32xf32>
    %cst_172 = arith.constant dense<0.000000e+00> : vector<24xf32>
    %245 = vector.multi_reduction <add>, %240, %cst_172 [1] : vector<24x32xf32> to vector<24xf32>
    %246 = vector.shape_cast %245 : vector<24xf32> to vector<24x1xf32>
    %cst_173 = arith.constant 3.200000e+01 : f32
    %247 = vector.broadcast %cst_173 : f32 to vector<24x1xf32>
    %248 = arith.divf %246, %247 : vector<24x1xf32>
    %249 = vector.broadcast %248 : vector<24x1xf32> to vector<24x32xf32>
    %250 = arith.subf %240, %249 : vector<24x32xf32>
    %251 = arith.mulf %250, %250 : vector<24x32xf32>
    %cst_174 = arith.constant dense<0.000000e+00> : vector<24xf32>
    %252 = vector.multi_reduction <add>, %251, %cst_174 [1] : vector<24x32xf32> to vector<24xf32>
    %253 = vector.shape_cast %252 : vector<24xf32> to vector<24x1xf32>
    %cst_175 = arith.constant 3.200000e+01 : f32
    %254 = vector.broadcast %cst_175 : f32 to vector<24x1xf32>
    %255 = arith.divf %253, %254 : vector<24x1xf32>
    %256 = vector.broadcast %248 : vector<24x1xf32> to vector<24x32xf32>
    %257 = arith.subf %240, %256 : vector<24x32xf32>
    %cst_176 = arith.constant 9.99999974E-6 : f32
    %258 = vector.broadcast %cst_176 : f32 to vector<24x1xf32>
    %259 = arith.addf %255, %258 : vector<24x1xf32>
    %260 = math.rsqrt %259 : vector<24x1xf32>
    %261 = vector.broadcast %260 : vector<24x1xf32> to vector<24x32xf32>
    %262 = arith.mulf %257, %261 : vector<24x32xf32>
    %263 = vector.broadcast %242 : vector<1x32xf32> to vector<24x32xf32>
    %264 = arith.mulf %262, %263 : vector<24x32xf32>
    %265 = vector.broadcast %244 : vector<1x32xf32> to vector<24x32xf32>
    %266 = arith.addf %264, %265 : vector<24x32xf32>
    %c1_177 = arith.constant 1 : index
    %c0_178 = arith.constant 0 : index
    %c0_179 = arith.constant 0 : index
    %267 = vector.load %arg8[%c1_177, %c0_178, %c0_179] : memref<2x32x128xbf16, #tpu.memory_space<vmem>>, vector<1x32x128xbf16>
    %268 = vector.shape_cast %267 : vector<1x32x128xbf16> to vector<32x128xbf16>
    %269 = arith.truncf %266 : vector<24x32xf32> to vector<24x32xbf16>
    %cst_180 = arith.constant dense<0.000000e+00> : vector<24x128xf32>
    %270 = tpu.matmul %269, %268, %cst_180 {dimension_numbers = #tpu.dot_dimension_numbers<[1], [0], [0], [1], [0, 0, 1, 1], [], []>} : vector<24x32xbf16>, vector<32x128xbf16>, vector<24x128xf32> -> vector<24x128xf32>
    %271 = arith.mulf %270, %270 : vector<24x128xf32>
    %272 = arith.mulf %270, %271 : vector<24x128xf32>
    %cst_181 = arith.constant 4.471500e-02 : f32
    %273 = vector.broadcast %cst_181 : f32 to vector<24x128xf32>
    %274 = arith.mulf %273, %272 : vector<24x128xf32>
    %275 = arith.addf %270, %274 : vector<24x128xf32>
    %cst_182 = arith.constant 0.797884583 : f32
    %276 = vector.broadcast %cst_182 : f32 to vector<24x128xf32>
    %277 = arith.mulf %276, %275 : vector<24x128xf32>
    %278 = math.tanh %277 : vector<24x128xf32>
    %cst_183 = arith.constant 1.000000e+00 : f32
    %279 = vector.broadcast %cst_183 : f32 to vector<24x128xf32>
    %280 = arith.addf %279, %278 : vector<24x128xf32>
    %cst_184 = arith.constant 5.000000e-01 : f32
    %281 = vector.broadcast %cst_184 : f32 to vector<24x128xf32>
    %282 = arith.mulf %281, %280 : vector<24x128xf32>
    %283 = arith.mulf %270, %282 : vector<24x128xf32>
    %c1_185 = arith.constant 1 : index
    %c0_186 = arith.constant 0 : index
    %c0_187 = arith.constant 0 : index
    %284 = vector.load %arg9[%c1_185, %c0_186, %c0_187] : memref<2x128x32xbf16, #tpu.memory_space<vmem>>, vector<1x128x32xbf16>
    %285 = vector.shape_cast %284 : vector<1x128x32xbf16> to vector<128x32xbf16>
    %286 = arith.truncf %283 : vector<24x128xf32> to vector<24x128xbf16>
    %cst_188 = arith.constant dense<0.000000e+00> : vector<24x32xf32>
    %287 = tpu.matmul %286, %285, %cst_188 {dimension_numbers = #tpu.dot_dimension_numbers<[1], [0], [0], [1], [0, 0, 1, 1], [], []>} : vector<24x128xbf16>, vector<128x32xbf16>, vector<24x32xf32> -> vector<24x32xf32>
    %288 = arith.addf %240, %287 : vector<24x32xf32>
    %289 = vector.extract_strided_slice %288 {offsets = [0, 0], sizes = [8, 32], strides = [1, 1]} : vector<24x32xf32> to vector<8x32xf32>
    %c0_189 = arith.constant 0 : index
    %c0_190 = arith.constant 0 : index
    %290 = vector.load %arg10[%c0_189, %c0_190] : memref<32x4xbf16, #tpu.memory_space<vmem>>, vector<32x4xbf16>
    %291 = arith.truncf %289 : vector<8x32xf32> to vector<8x32xbf16>
    %cst_191 = arith.constant dense<0.000000e+00> : vector<8x4xf32>
    %292 = tpu.matmul %291, %290, %cst_191 {dimension_numbers = #tpu.dot_dimension_numbers<[1], [0], [0], [1], [0, 0, 1, 1], [], []>} : vector<8x32xbf16>, vector<32x4xbf16>, vector<8x4xf32> -> vector<8x4xf32>
    %c0_192 = arith.constant 0 : index
    %c0_193 = arith.constant 0 : index
    %c0_194 = arith.constant 0 : index
    %293 = vector.load %arg23[%c0_192, %c0_193, %c0_194] : memref<1x8x4xf32, #tpu.memory_space<vmem>>, vector<1x8x4xf32>
    %294 = vector.shape_cast %293 : vector<1x8x4xf32> to vector<8x4xf32>
    %295 = vector.shape_cast %292 : vector<8x4xf32> to vector<1x8x4xf32>
    tpu.vector_store %arg23[%c0_192, %c0_193, %c0_194], %295 {strides = array<i32>} : memref<1x8x4xf32, #tpu.memory_space<vmem>>, vector<1x8x4xf32>,
    %c0_195 = arith.constant 0 : index
    %c0_196 = arith.constant 0 : index
    %296 = vector.load %arg11[%c0_195, %c0_196] : memref<4x32xbf16, #tpu.memory_space<vmem>>, vector<4x32xbf16>
    %297 = arith.truncf %292 : vector<8x4xf32> to vector<8x4xbf16>
    %cst_197 = arith.constant dense<0.000000e+00> : vector<8x32xf32>
    %298 = tpu.matmul %297, %296, %cst_197 {dimension_numbers = #tpu.dot_dimension_numbers<[1], [0], [0], [1], [0, 0, 1, 1], [], []>} : vector<8x4xbf16>, vector<4x32xbf16>, vector<8x32xf32> -> vector<8x32xf32>
    %c0_198 = arith.constant 0 : index
    %c0_199 = arith.constant 0 : index
    %299 = vector.load %arg12[%c0_198, %c0_199] : memref<8x32xf32, #tpu.memory_space<vmem>>, vector<8x32xf32>
    %300 = arith.addf %298, %299 : vector<8x32xf32>
    %c0_200 = arith.constant 0 : index
    %c0_201 = arith.constant 0 : index
    %301 = vector.load %arg13[%c0_200, %c0_201] : memref<16x32xf32, #tpu.memory_space<vmem>>, vector<16x32xf32>
    %302 = tpu.concatenate %300, %301 in 0 : vector<8x32xf32>, vector<16x32xf32> -> vector<24x32xf32>
    %c0_202 = arith.constant 0 : index
    %c0_203 = arith.constant 0 : index
    %c0_204 = arith.constant 0 : index
    %c0_205 = arith.constant 0 : index
    %303 = vector.load %arg14[%c0_202, %c0_203, %c0_204, %c0_205] : memref<2x4x1x32xf32, #tpu.memory_space<vmem>>, vector<1x1x1x32xf32>
    %304 = vector.shape_cast %303 : vector<1x1x1x32xf32> to vector<1x32xf32>
    %c0_206 = arith.constant 0 : index
    %c1_207 = arith.constant 1 : index
    %c0_208 = arith.constant 0 : index
    %c0_209 = arith.constant 0 : index
    %305 = vector.load %arg14[%c0_206, %c1_207, %c0_208, %c0_209] : memref<2x4x1x32xf32, #tpu.memory_space<vmem>>, vector<1x1x1x32xf32>
    %306 = vector.shape_cast %305 : vector<1x1x1x32xf32> to vector<1x32xf32>
    %cst_210 = arith.constant dense<0.000000e+00> : vector<24xf32>
    %307 = vector.multi_reduction <add>, %302, %cst_210 [1] : vector<24x32xf32> to vector<24xf32>
    %308 = vector.shape_cast %307 : vector<24xf32> to vector<24x1xf32>
    %cst_211 = arith.constant 3.200000e+01 : f32
    %309 = vector.broadcast %cst_211 : f32 to vector<24x1xf32>
    %310 = arith.divf %308, %309 : vector<24x1xf32>
    %311 = vector.broadcast %310 : vector<24x1xf32> to vector<24x32xf32>
    %312 = arith.subf %302, %311 : vector<24x32xf32>
    %313 = arith.mulf %312, %312 : vector<24x32xf32>
    %cst_212 = arith.constant dense<0.000000e+00> : vector<24xf32>
    %314 = vector.multi_reduction <add>, %313, %cst_212 [1] : vector<24x32xf32> to vector<24xf32>
    %315 = vector.shape_cast %314 : vector<24xf32> to vector<24x1xf32>
    %cst_213 = arith.constant 3.200000e+01 : f32
    %316 = vector.broadcast %cst_213 : f32 to vector<24x1xf32>
    %317 = arith.divf %315, %316 : vector<24x1xf32>
    %318 = vector.broadcast %310 : vector<24x1xf32> to vector<24x32xf32>
    %319 = arith.subf %302, %318 : vector<24x32xf32>
    %cst_214 = arith.constant 9.99999974E-6 : f32
    %320 = vector.broadcast %cst_214 : f32 to vector<24x1xf32>
    %321 = arith.addf %317, %320 : vector<24x1xf32>
    %322 = math.rsqrt %321 : vector<24x1xf32>
    %323 = vector.broadcast %322 : vector<24x1xf32> to vector<24x32xf32>
    %324 = arith.mulf %319, %323 : vector<24x32xf32>
    %325 = vector.broadcast %304 : vector<1x32xf32> to vector<24x32xf32>
    %326 = arith.mulf %324, %325 : vector<24x32xf32>
    %327 = vector.broadcast %306 : vector<1x32xf32> to vector<24x32xf32>
    %328 = arith.addf %326, %327 : vector<24x32xf32>
    %c0_215 = arith.constant 0 : index
    %c0_216 = arith.constant 0 : index
    %c0_217 = arith.constant 0 : index
    %c0_218 = arith.constant 0 : index
    %c0_219 = arith.constant 0 : index
    %329 = vector.load %arg15[%c0_215, %c0_216, %c0_217, %c0_218, %c0_219] : memref<2x3x2x32x16xbf16, #tpu.memory_space<vmem>>, vector<1x1x1x32x16xbf16>
    %330 = vector.shape_cast %329 : vector<1x1x1x32x16xbf16> to vector<32x16xbf16>
    %331 = arith.truncf %328 : vector<24x32xf32> to vector<24x32xbf16>
    %cst_220 = arith.constant dense<0.000000e+00> : vector<24x16xf32>
    %332 = tpu.matmul %331, %330, %cst_220 {dimension_numbers = #tpu.dot_dimension_numbers<[1], [0], [0], [1], [0, 0, 1, 1], [], []>} : vector<24x32xbf16>, vector<32x16xbf16>, vector<24x16xf32> -> vector<24x16xf32>
    %c0_221 = arith.constant 0 : index
    %c1_222 = arith.constant 1 : index
    %c0_223 = arith.constant 0 : index
    %c0_224 = arith.constant 0 : index
    %c0_225 = arith.constant 0 : index
    %333 = vector.load %arg15[%c0_221, %c1_222, %c0_223, %c0_224, %c0_225] : memref<2x3x2x32x16xbf16, #tpu.memory_space<vmem>>, vector<1x1x1x32x16xbf16>
    %334 = vector.shape_cast %333 : vector<1x1x1x32x16xbf16> to vector<32x16xbf16>
    %335 = arith.truncf %328 : vector<24x32xf32> to vector<24x32xbf16>
    %cst_226 = arith.constant dense<0.000000e+00> : vector<24x16xf32>
    %336 = tpu.matmul %335, %334, %cst_226 {dimension_numbers = #tpu.dot_dimension_numbers<[1], [0], [0], [1], [0, 0, 1, 1], [], []>} : vector<24x32xbf16>, vector<32x16xbf16>, vector<24x16xf32> -> vector<24x16xf32>
    %c0_227 = arith.constant 0 : index
    %c2_228 = arith.constant 2 : index
    %c0_229 = arith.constant 0 : index
    %c0_230 = arith.constant 0 : index
    %c0_231 = arith.constant 0 : index
    %337 = vector.load %arg15[%c0_227, %c2_228, %c0_229, %c0_230, %c0_231] : memref<2x3x2x32x16xbf16, #tpu.memory_space<vmem>>, vector<1x1x1x32x16xbf16>
    %338 = vector.shape_cast %337 : vector<1x1x1x32x16xbf16> to vector<32x16xbf16>
    %339 = arith.truncf %328 : vector<24x32xf32> to vector<24x32xbf16>
    %cst_232 = arith.constant dense<0.000000e+00> : vector<24x16xf32>
    %340 = tpu.matmul %339, %338, %cst_232 {dimension_numbers = #tpu.dot_dimension_numbers<[1], [0], [0], [1], [0, 0, 1, 1], [], []>} : vector<24x32xbf16>, vector<32x16xbf16>, vector<24x16xf32> -> vector<24x16xf32>
    %341 = arith.truncf %332 : vector<24x16xf32> to vector<24x16xbf16>
    %342 = arith.truncf %336 : vector<24x16xf32> to vector<24x16xbf16>
    %cst_233 = arith.constant dense<0.000000e+00> : vector<24x24xf32>
    %343 = tpu.matmul %341, %342, %cst_233 {dimension_numbers = #tpu.dot_dimension_numbers<[1], [1], [0], [0], [0, 0, 1, 0], [], []>} : vector<24x16xbf16>, vector<24x16xbf16>, vector<24x24xf32> -> vector<24x24xf32>
    %cst_234 = arith.constant dense<0xFF800000> : vector<24xf32>
    %344 = vector.multi_reduction <maximumf>, %343, %cst_234 [1] : vector<24x24xf32> to vector<24xf32>
    %345 = vector.shape_cast %344 : vector<24xf32> to vector<24x1xf32>
    %346 = vector.broadcast %345 : vector<24x1xf32> to vector<24x24xf32>
    %347 = arith.subf %343, %346 : vector<24x24xf32>
    %348 = math.exp %347 : vector<24x24xf32>
    %cst_235 = arith.constant dense<0.000000e+00> : vector<24xf32>
    %349 = vector.multi_reduction <add>, %348, %cst_235 [1] : vector<24x24xf32> to vector<24xf32>
    %350 = vector.shape_cast %349 : vector<24xf32> to vector<24x1xf32>
    %351 = tpu.reciprocal %350 {approx = true} : vector<24x1xf32> -> vector<24x1xf32>
    %352 = vector.broadcast %351 : vector<24x1xf32> to vector<24x24xf32>
    %353 = arith.mulf %348, %352 : vector<24x24xf32>
    %354 = arith.truncf %353 : vector<24x24xf32> to vector<24x24xbf16>
    %355 = arith.truncf %340 : vector<24x16xf32> to vector<24x16xbf16>
    %cst_236 = arith.constant dense<0.000000e+00> : vector<24x16xf32>
    %356 = tpu.matmul %354, %355, %cst_236 {dimension_numbers = #tpu.dot_dimension_numbers<[1], [0], [0], [1], [0, 0, 1, 1], [], []>} : vector<24x24xbf16>, vector<24x16xbf16>, vector<24x16xf32> -> vector<24x16xf32>
    %c0_237 = arith.constant 0 : index
    %c0_238 = arith.constant 0 : index
    %c0_239 = arith.constant 0 : index
    %c0_240 = arith.constant 0 : index
    %357 = vector.load %arg16[%c0_237, %c0_238, %c0_239, %c0_240] : memref<2x2x16x32xbf16, #tpu.memory_space<vmem>>, vector<1x1x16x32xbf16>
    %358 = vector.shape_cast %357 : vector<1x1x16x32xbf16> to vector<16x32xbf16>
    %359 = arith.truncf %356 : vector<24x16xf32> to vector<24x16xbf16>
    %cst_241 = arith.constant dense<0.000000e+00> : vector<24x32xf32>
    %360 = tpu.matmul %359, %358, %cst_241 {dimension_numbers = #tpu.dot_dimension_numbers<[1], [0], [0], [1], [0, 0, 1, 1], [], []>} : vector<24x16xbf16>, vector<16x32xbf16>, vector<24x32xf32> -> vector<24x32xf32>
    %c0_242 = arith.constant 0 : index
    %c0_243 = arith.constant 0 : index
    %c1_244 = arith.constant 1 : index
    %c0_245 = arith.constant 0 : index
    %c0_246 = arith.constant 0 : index
    %361 = vector.load %arg15[%c0_242, %c0_243, %c1_244, %c0_245, %c0_246] : memref<2x3x2x32x16xbf16, #tpu.memory_space<vmem>>, vector<1x1x1x32x16xbf16>
    %362 = vector.shape_cast %361 : vector<1x1x1x32x16xbf16> to vector<32x16xbf16>
    %363 = arith.truncf %328 : vector<24x32xf32> to vector<24x32xbf16>
    %cst_247 = arith.constant dense<0.000000e+00> : vector<24x16xf32>
    %364 = tpu.matmul %363, %362, %cst_247 {dimension_numbers = #tpu.dot_dimension_numbers<[1], [0], [0], [1], [0, 0, 1, 1], [], []>} : vector<24x32xbf16>, vector<32x16xbf16>, vector<24x16xf32> -> vector<24x16xf32>
    %c0_248 = arith.constant 0 : index
    %c1_249 = arith.constant 1 : index
    %c1_250 = arith.constant 1 : index
    %c0_251 = arith.constant 0 : index
    %c0_252 = arith.constant 0 : index
    %365 = vector.load %arg15[%c0_248, %c1_249, %c1_250, %c0_251, %c0_252] : memref<2x3x2x32x16xbf16, #tpu.memory_space<vmem>>, vector<1x1x1x32x16xbf16>
    %366 = vector.shape_cast %365 : vector<1x1x1x32x16xbf16> to vector<32x16xbf16>
    %367 = arith.truncf %328 : vector<24x32xf32> to vector<24x32xbf16>
    %cst_253 = arith.constant dense<0.000000e+00> : vector<24x16xf32>
    %368 = tpu.matmul %367, %366, %cst_253 {dimension_numbers = #tpu.dot_dimension_numbers<[1], [0], [0], [1], [0, 0, 1, 1], [], []>} : vector<24x32xbf16>, vector<32x16xbf16>, vector<24x16xf32> -> vector<24x16xf32>
    %c0_254 = arith.constant 0 : index
    %c2_255 = arith.constant 2 : index
    %c1_256 = arith.constant 1 : index
    %c0_257 = arith.constant 0 : index
    %c0_258 = arith.constant 0 : index
    %369 = vector.load %arg15[%c0_254, %c2_255, %c1_256, %c0_257, %c0_258] : memref<2x3x2x32x16xbf16, #tpu.memory_space<vmem>>, vector<1x1x1x32x16xbf16>
    %370 = vector.shape_cast %369 : vector<1x1x1x32x16xbf16> to vector<32x16xbf16>
    %371 = arith.truncf %328 : vector<24x32xf32> to vector<24x32xbf16>
    %cst_259 = arith.constant dense<0.000000e+00> : vector<24x16xf32>
    %372 = tpu.matmul %371, %370, %cst_259 {dimension_numbers = #tpu.dot_dimension_numbers<[1], [0], [0], [1], [0, 0, 1, 1], [], []>} : vector<24x32xbf16>, vector<32x16xbf16>, vector<24x16xf32> -> vector<24x16xf32>
    %373 = arith.truncf %364 : vector<24x16xf32> to vector<24x16xbf16>
    %374 = arith.truncf %368 : vector<24x16xf32> to vector<24x16xbf16>
    %cst_260 = arith.constant dense<0.000000e+00> : vector<24x24xf32>
    %375 = tpu.matmul %373, %374, %cst_260 {dimension_numbers = #tpu.dot_dimension_numbers<[1], [1], [0], [0], [0, 0, 1, 0], [], []>} : vector<24x16xbf16>, vector<24x16xbf16>, vector<24x24xf32> -> vector<24x24xf32>
    %cst_261 = arith.constant dense<0xFF800000> : vector<24xf32>
    %376 = vector.multi_reduction <maximumf>, %375, %cst_261 [1] : vector<24x24xf32> to vector<24xf32>
    %377 = vector.shape_cast %376 : vector<24xf32> to vector<24x1xf32>
    %378 = vector.broadcast %377 : vector<24x1xf32> to vector<24x24xf32>
    %379 = arith.subf %375, %378 : vector<24x24xf32>
    %380 = math.exp %379 : vector<24x24xf32>
    %cst_262 = arith.constant dense<0.000000e+00> : vector<24xf32>
    %381 = vector.multi_reduction <add>, %380, %cst_262 [1] : vector<24x24xf32> to vector<24xf32>
    %382 = vector.shape_cast %381 : vector<24xf32> to vector<24x1xf32>
    %383 = tpu.reciprocal %382 {approx = true} : vector<24x1xf32> -> vector<24x1xf32>
    %384 = vector.broadcast %383 : vector<24x1xf32> to vector<24x24xf32>
    %385 = arith.mulf %380, %384 : vector<24x24xf32>
    %386 = arith.truncf %385 : vector<24x24xf32> to vector<24x24xbf16>
    %387 = arith.truncf %372 : vector<24x16xf32> to vector<24x16xbf16>
    %cst_263 = arith.constant dense<0.000000e+00> : vector<24x16xf32>
    %388 = tpu.matmul %386, %387, %cst_263 {dimension_numbers = #tpu.dot_dimension_numbers<[1], [0], [0], [1], [0, 0, 1, 1], [], []>} : vector<24x24xbf16>, vector<24x16xbf16>, vector<24x16xf32> -> vector<24x16xf32>
    %c0_264 = arith.constant 0 : index
    %c1_265 = arith.constant 1 : index
    %c0_266 = arith.constant 0 : index
    %c0_267 = arith.constant 0 : index
    %389 = vector.load %arg16[%c0_264, %c1_265, %c0_266, %c0_267] : memref<2x2x16x32xbf16, #tpu.memory_space<vmem>>, vector<1x1x16x32xbf16>
    %390 = vector.shape_cast %389 : vector<1x1x16x32xbf16> to vector<16x32xbf16>
    %391 = arith.truncf %388 : vector<24x16xf32> to vector<24x16xbf16>
    %cst_268 = arith.constant dense<0.000000e+00> : vector<24x32xf32>
    %392 = tpu.matmul %391, %390, %cst_268 {dimension_numbers = #tpu.dot_dimension_numbers<[1], [0], [0], [1], [0, 0, 1, 1], [], []>} : vector<24x16xbf16>, vector<16x32xbf16>, vector<24x32xf32> -> vector<24x32xf32>
    %393 = arith.addf %360, %392 : vector<24x32xf32>
    %394 = arith.addf %302, %393 : vector<24x32xf32>
    %c0_269 = arith.constant 0 : index
    %c2_270 = arith.constant 2 : index
    %c0_271 = arith.constant 0 : index
    %c0_272 = arith.constant 0 : index
    %395 = vector.load %arg14[%c0_269, %c2_270, %c0_271, %c0_272] : memref<2x4x1x32xf32, #tpu.memory_space<vmem>>, vector<1x1x1x32xf32>
    %396 = vector.shape_cast %395 : vector<1x1x1x32xf32> to vector<1x32xf32>
    %c0_273 = arith.constant 0 : index
    %c3_274 = arith.constant 3 : index
    %c0_275 = arith.constant 0 : index
    %c0_276 = arith.constant 0 : index
    %397 = vector.load %arg14[%c0_273, %c3_274, %c0_275, %c0_276] : memref<2x4x1x32xf32, #tpu.memory_space<vmem>>, vector<1x1x1x32xf32>
    %398 = vector.shape_cast %397 : vector<1x1x1x32xf32> to vector<1x32xf32>
    %cst_277 = arith.constant dense<0.000000e+00> : vector<24xf32>
    %399 = vector.multi_reduction <add>, %394, %cst_277 [1] : vector<24x32xf32> to vector<24xf32>
    %400 = vector.shape_cast %399 : vector<24xf32> to vector<24x1xf32>
    %cst_278 = arith.constant 3.200000e+01 : f32
    %401 = vector.broadcast %cst_278 : f32 to vector<24x1xf32>
    %402 = arith.divf %400, %401 : vector<24x1xf32>
    %403 = vector.broadcast %402 : vector<24x1xf32> to vector<24x32xf32>
    %404 = arith.subf %394, %403 : vector<24x32xf32>
    %405 = arith.mulf %404, %404 : vector<24x32xf32>
    %cst_279 = arith.constant dense<0.000000e+00> : vector<24xf32>
    %406 = vector.multi_reduction <add>, %405, %cst_279 [1] : vector<24x32xf32> to vector<24xf32>
    %407 = vector.shape_cast %406 : vector<24xf32> to vector<24x1xf32>
    %cst_280 = arith.constant 3.200000e+01 : f32
    %408 = vector.broadcast %cst_280 : f32 to vector<24x1xf32>
    %409 = arith.divf %407, %408 : vector<24x1xf32>
    %410 = vector.broadcast %402 : vector<24x1xf32> to vector<24x32xf32>
    %411 = arith.subf %394, %410 : vector<24x32xf32>
    %cst_281 = arith.constant 9.99999974E-6 : f32
    %412 = vector.broadcast %cst_281 : f32 to vector<24x1xf32>
    %413 = arith.addf %409, %412 : vector<24x1xf32>
    %414 = math.rsqrt %413 : vector<24x1xf32>
    %415 = vector.broadcast %414 : vector<24x1xf32> to vector<24x32xf32>
    %416 = arith.mulf %411, %415 : vector<24x32xf32>
    %417 = vector.broadcast %396 : vector<1x32xf32> to vector<24x32xf32>
    %418 = arith.mulf %416, %417 : vector<24x32xf32>
    %419 = vector.broadcast %398 : vector<1x32xf32> to vector<24x32xf32>
    %420 = arith.addf %418, %419 : vector<24x32xf32>
    %c0_282 = arith.constant 0 : index
    %c0_283 = arith.constant 0 : index
    %c0_284 = arith.constant 0 : index
    %421 = vector.load %arg17[%c0_282, %c0_283, %c0_284] : memref<2x32x128xbf16, #tpu.memory_space<vmem>>, vector<1x32x128xbf16>
    %422 = vector.shape_cast %421 : vector<1x32x128xbf16> to vector<32x128xbf16>
    %423 = arith.truncf %420 : vector<24x32xf32> to vector<24x32xbf16>
    %cst_285 = arith.constant dense<0.000000e+00> : vector<24x128xf32>
    %424 = tpu.matmul %423, %422, %cst_285 {dimension_numbers = #tpu.dot_dimension_numbers<[1], [0], [0], [1], [0, 0, 1, 1], [], []>} : vector<24x32xbf16>, vector<32x128xbf16>, vector<24x128xf32> -> vector<24x128xf32>
    %425 = arith.mulf %424, %424 : vector<24x128xf32>
    %426 = arith.mulf %424, %425 : vector<24x128xf32>
    %cst_286 = arith.constant 4.471500e-02 : f32
    %427 = vector.broadcast %cst_286 : f32 to vector<24x128xf32>
    %428 = arith.mulf %427, %426 : vector<24x128xf32>
    %429 = arith.addf %424, %428 : vector<24x128xf32>
    %cst_287 = arith.constant 0.797884583 : f32
    %430 = vector.broadcast %cst_287 : f32 to vector<24x128xf32>
    %431 = arith.mulf %430, %429 : vector<24x128xf32>
    %432 = math.tanh %431 : vector<24x128xf32>
    %cst_288 = arith.constant 1.000000e+00 : f32
    %433 = vector.broadcast %cst_288 : f32 to vector<24x128xf32>
    %434 = arith.addf %433, %432 : vector<24x128xf32>
    %cst_289 = arith.constant 5.000000e-01 : f32
    %435 = vector.broadcast %cst_289 : f32 to vector<24x128xf32>
    %436 = arith.mulf %435, %434 : vector<24x128xf32>
    %437 = arith.mulf %424, %436 : vector<24x128xf32>
    %c0_290 = arith.constant 0 : index
    %c0_291 = arith.constant 0 : index
    %c0_292 = arith.constant 0 : index
    %438 = vector.load %arg18[%c0_290, %c0_291, %c0_292] : memref<2x128x32xbf16, #tpu.memory_space<vmem>>, vector<1x128x32xbf16>
    %439 = vector.shape_cast %438 : vector<1x128x32xbf16> to vector<128x32xbf16>
    %440 = arith.truncf %437 : vector<24x128xf32> to vector<24x128xbf16>
    %cst_293 = arith.constant dense<0.000000e+00> : vector<24x32xf32>
    %441 = tpu.matmul %440, %439, %cst_293 {dimension_numbers = #tpu.dot_dimension_numbers<[1], [0], [0], [1], [0, 0, 1, 1], [], []>} : vector<24x128xbf16>, vector<128x32xbf16>, vector<24x32xf32> -> vector<24x32xf32>
    %442 = arith.addf %394, %441 : vector<24x32xf32>
    %c1_294 = arith.constant 1 : index
    %c0_295 = arith.constant 0 : index
    %c0_296 = arith.constant 0 : index
    %c0_297 = arith.constant 0 : index
    %443 = vector.load %arg14[%c1_294, %c0_295, %c0_296, %c0_297] : memref<2x4x1x32xf32, #tpu.memory_space<vmem>>, vector<1x1x1x32xf32>
    %444 = vector.shape_cast %443 : vector<1x1x1x32xf32> to vector<1x32xf32>
    %c1_298 = arith.constant 1 : index
    %c1_299 = arith.constant 1 : index
    %c0_300 = arith.constant 0 : index
    %c0_301 = arith.constant 0 : index
    %445 = vector.load %arg14[%c1_298, %c1_299, %c0_300, %c0_301] : memref<2x4x1x32xf32, #tpu.memory_space<vmem>>, vector<1x1x1x32xf32>
    %446 = vector.shape_cast %445 : vector<1x1x1x32xf32> to vector<1x32xf32>
    %cst_302 = arith.constant dense<0.000000e+00> : vector<24xf32>
    %447 = vector.multi_reduction <add>, %442, %cst_302 [1] : vector<24x32xf32> to vector<24xf32>
    %448 = vector.shape_cast %447 : vector<24xf32> to vector<24x1xf32>
    %cst_303 = arith.constant 3.200000e+01 : f32
    %449 = vector.broadcast %cst_303 : f32 to vector<24x1xf32>
    %450 = arith.divf %448, %449 : vector<24x1xf32>
    %451 = vector.broadcast %450 : vector<24x1xf32> to vector<24x32xf32>
    %452 = arith.subf %442, %451 : vector<24x32xf32>
    %453 = arith.mulf %452, %452 : vector<24x32xf32>
    %cst_304 = arith.constant dense<0.000000e+00> : vector<24xf32>
    %454 = vector.multi_reduction <add>, %453, %cst_304 [1] : vector<24x32xf32> to vector<24xf32>
    %455 = vector.shape_cast %454 : vector<24xf32> to vector<24x1xf32>
    %cst_305 = arith.constant 3.200000e+01 : f32
    %456 = vector.broadcast %cst_305 : f32 to vector<24x1xf32>
    %457 = arith.divf %455, %456 : vector<24x1xf32>
    %458 = vector.broadcast %450 : vector<24x1xf32> to vector<24x32xf32>
    %459 = arith.subf %442, %458 : vector<24x32xf32>
    %cst_306 = arith.constant 9.99999974E-6 : f32
    %460 = vector.broadcast %cst_306 : f32 to vector<24x1xf32>
    %461 = arith.addf %457, %460 : vector<24x1xf32>
    %462 = math.rsqrt %461 : vector<24x1xf32>
    %463 = vector.broadcast %462 : vector<24x1xf32> to vector<24x32xf32>
    %464 = arith.mulf %459, %463 : vector<24x32xf32>
    %465 = vector.broadcast %444 : vector<1x32xf32> to vector<24x32xf32>
    %466 = arith.mulf %464, %465 : vector<24x32xf32>
    %467 = vector.broadcast %446 : vector<1x32xf32> to vector<24x32xf32>
    %468 = arith.addf %466, %467 : vector<24x32xf32>
    %c1_307 = arith.constant 1 : index
    %c0_308 = arith.constant 0 : index
    %c0_309 = arith.constant 0 : index
    %c0_310 = arith.constant 0 : index
    %c0_311 = arith.constant 0 : index
    %469 = vector.load %arg15[%c1_307, %c0_308, %c0_309, %c0_310, %c0_311] : memref<2x3x2x32x16xbf16, #tpu.memory_space<vmem>>, vector<1x1x1x32x16xbf16>
    %470 = vector.shape_cast %469 : vector<1x1x1x32x16xbf16> to vector<32x16xbf16>
    %471 = arith.truncf %468 : vector<24x32xf32> to vector<24x32xbf16>
    %cst_312 = arith.constant dense<0.000000e+00> : vector<24x16xf32>
    %472 = tpu.matmul %471, %470, %cst_312 {dimension_numbers = #tpu.dot_dimension_numbers<[1], [0], [0], [1], [0, 0, 1, 1], [], []>} : vector<24x32xbf16>, vector<32x16xbf16>, vector<24x16xf32> -> vector<24x16xf32>
    %c1_313 = arith.constant 1 : index
    %c1_314 = arith.constant 1 : index
    %c0_315 = arith.constant 0 : index
    %c0_316 = arith.constant 0 : index
    %c0_317 = arith.constant 0 : index
    %473 = vector.load %arg15[%c1_313, %c1_314, %c0_315, %c0_316, %c0_317] : memref<2x3x2x32x16xbf16, #tpu.memory_space<vmem>>, vector<1x1x1x32x16xbf16>
    %474 = vector.shape_cast %473 : vector<1x1x1x32x16xbf16> to vector<32x16xbf16>
    %475 = arith.truncf %468 : vector<24x32xf32> to vector<24x32xbf16>
    %cst_318 = arith.constant dense<0.000000e+00> : vector<24x16xf32>
    %476 = tpu.matmul %475, %474, %cst_318 {dimension_numbers = #tpu.dot_dimension_numbers<[1], [0], [0], [1], [0, 0, 1, 1], [], []>} : vector<24x32xbf16>, vector<32x16xbf16>, vector<24x16xf32> -> vector<24x16xf32>
    %c1_319 = arith.constant 1 : index
    %c2_320 = arith.constant 2 : index
    %c0_321 = arith.constant 0 : index
    %c0_322 = arith.constant 0 : index
    %c0_323 = arith.constant 0 : index
    %477 = vector.load %arg15[%c1_319, %c2_320, %c0_321, %c0_322, %c0_323] : memref<2x3x2x32x16xbf16, #tpu.memory_space<vmem>>, vector<1x1x1x32x16xbf16>
    %478 = vector.shape_cast %477 : vector<1x1x1x32x16xbf16> to vector<32x16xbf16>
    %479 = arith.truncf %468 : vector<24x32xf32> to vector<24x32xbf16>
    %cst_324 = arith.constant dense<0.000000e+00> : vector<24x16xf32>
    %480 = tpu.matmul %479, %478, %cst_324 {dimension_numbers = #tpu.dot_dimension_numbers<[1], [0], [0], [1], [0, 0, 1, 1], [], []>} : vector<24x32xbf16>, vector<32x16xbf16>, vector<24x16xf32> -> vector<24x16xf32>
    %481 = arith.truncf %472 : vector<24x16xf32> to vector<24x16xbf16>
    %482 = arith.truncf %476 : vector<24x16xf32> to vector<24x16xbf16>
    %cst_325 = arith.constant dense<0.000000e+00> : vector<24x24xf32>
    %483 = tpu.matmul %481, %482, %cst_325 {dimension_numbers = #tpu.dot_dimension_numbers<[1], [1], [0], [0], [0, 0, 1, 0], [], []>} : vector<24x16xbf16>, vector<24x16xbf16>, vector<24x24xf32> -> vector<24x24xf32>
    %cst_326 = arith.constant dense<0xFF800000> : vector<24xf32>
    %484 = vector.multi_reduction <maximumf>, %483, %cst_326 [1] : vector<24x24xf32> to vector<24xf32>
    %485 = vector.shape_cast %484 : vector<24xf32> to vector<24x1xf32>
    %486 = vector.broadcast %485 : vector<24x1xf32> to vector<24x24xf32>
    %487 = arith.subf %483, %486 : vector<24x24xf32>
    %488 = math.exp %487 : vector<24x24xf32>
    %cst_327 = arith.constant dense<0.000000e+00> : vector<24xf32>
    %489 = vector.multi_reduction <add>, %488, %cst_327 [1] : vector<24x24xf32> to vector<24xf32>
    %490 = vector.shape_cast %489 : vector<24xf32> to vector<24x1xf32>
    %491 = tpu.reciprocal %490 {approx = true} : vector<24x1xf32> -> vector<24x1xf32>
    %492 = vector.broadcast %491 : vector<24x1xf32> to vector<24x24xf32>
    %493 = arith.mulf %488, %492 : vector<24x24xf32>
    %494 = arith.truncf %493 : vector<24x24xf32> to vector<24x24xbf16>
    %495 = arith.truncf %480 : vector<24x16xf32> to vector<24x16xbf16>
    %cst_328 = arith.constant dense<0.000000e+00> : vector<24x16xf32>
    %496 = tpu.matmul %494, %495, %cst_328 {dimension_numbers = #tpu.dot_dimension_numbers<[1], [0], [0], [1], [0, 0, 1, 1], [], []>} : vector<24x24xbf16>, vector<24x16xbf16>, vector<24x16xf32> -> vector<24x16xf32>
    %c1_329 = arith.constant 1 : index
    %c0_330 = arith.constant 0 : index
    %c0_331 = arith.constant 0 : index
    %c0_332 = arith.constant 0 : index
    %497 = vector.load %arg16[%c1_329, %c0_330, %c0_331, %c0_332] : memref<2x2x16x32xbf16, #tpu.memory_space<vmem>>, vector<1x1x16x32xbf16>
    %498 = vector.shape_cast %497 : vector<1x1x16x32xbf16> to vector<16x32xbf16>
    %499 = arith.truncf %496 : vector<24x16xf32> to vector<24x16xbf16>
    %cst_333 = arith.constant dense<0.000000e+00> : vector<24x32xf32>
    %500 = tpu.matmul %499, %498, %cst_333 {dimension_numbers = #tpu.dot_dimension_numbers<[1], [0], [0], [1], [0, 0, 1, 1], [], []>} : vector<24x16xbf16>, vector<16x32xbf16>, vector<24x32xf32> -> vector<24x32xf32>
    %c1_334 = arith.constant 1 : index
    %c0_335 = arith.constant 0 : index
    %c1_336 = arith.constant 1 : index
    %c0_337 = arith.constant 0 : index
    %c0_338 = arith.constant 0 : index
    %501 = vector.load %arg15[%c1_334, %c0_335, %c1_336, %c0_337, %c0_338] : memref<2x3x2x32x16xbf16, #tpu.memory_space<vmem>>, vector<1x1x1x32x16xbf16>
    %502 = vector.shape_cast %501 : vector<1x1x1x32x16xbf16> to vector<32x16xbf16>
    %503 = arith.truncf %468 : vector<24x32xf32> to vector<24x32xbf16>
    %cst_339 = arith.constant dense<0.000000e+00> : vector<24x16xf32>
    %504 = tpu.matmul %503, %502, %cst_339 {dimension_numbers = #tpu.dot_dimension_numbers<[1], [0], [0], [1], [0, 0, 1, 1], [], []>} : vector<24x32xbf16>, vector<32x16xbf16>, vector<24x16xf32> -> vector<24x16xf32>
    %c1_340 = arith.constant 1 : index
    %c1_341 = arith.constant 1 : index
    %c1_342 = arith.constant 1 : index
    %c0_343 = arith.constant 0 : index
    %c0_344 = arith.constant 0 : index
    %505 = vector.load %arg15[%c1_340, %c1_341, %c1_342, %c0_343, %c0_344] : memref<2x3x2x32x16xbf16, #tpu.memory_space<vmem>>, vector<1x1x1x32x16xbf16>
    %506 = vector.shape_cast %505 : vector<1x1x1x32x16xbf16> to vector<32x16xbf16>
    %507 = arith.truncf %468 : vector<24x32xf32> to vector<24x32xbf16>
    %cst_345 = arith.constant dense<0.000000e+00> : vector<24x16xf32>
    %508 = tpu.matmul %507, %506, %cst_345 {dimension_numbers = #tpu.dot_dimension_numbers<[1], [0], [0], [1], [0, 0, 1, 1], [], []>} : vector<24x32xbf16>, vector<32x16xbf16>, vector<24x16xf32> -> vector<24x16xf32>
    %c1_346 = arith.constant 1 : index
    %c2_347 = arith.constant 2 : index
    %c1_348 = arith.constant 1 : index
    %c0_349 = arith.constant 0 : index
    %c0_350 = arith.constant 0 : index
    %509 = vector.load %arg15[%c1_346, %c2_347, %c1_348, %c0_349, %c0_350] : memref<2x3x2x32x16xbf16, #tpu.memory_space<vmem>>, vector<1x1x1x32x16xbf16>
    %510 = vector.shape_cast %509 : vector<1x1x1x32x16xbf16> to vector<32x16xbf16>
    %511 = arith.truncf %468 : vector<24x32xf32> to vector<24x32xbf16>
    %cst_351 = arith.constant dense<0.000000e+00> : vector<24x16xf32>
    %512 = tpu.matmul %511, %510, %cst_351 {dimension_numbers = #tpu.dot_dimension_numbers<[1], [0], [0], [1], [0, 0, 1, 1], [], []>} : vector<24x32xbf16>, vector<32x16xbf16>, vector<24x16xf32> -> vector<24x16xf32>
    %513 = arith.truncf %504 : vector<24x16xf32> to vector<24x16xbf16>
    %514 = arith.truncf %508 : vector<24x16xf32> to vector<24x16xbf16>
    %cst_352 = arith.constant dense<0.000000e+00> : vector<24x24xf32>
    %515 = tpu.matmul %513, %514, %cst_352 {dimension_numbers = #tpu.dot_dimension_numbers<[1], [1], [0], [0], [0, 0, 1, 0], [], []>} : vector<24x16xbf16>, vector<24x16xbf16>, vector<24x24xf32> -> vector<24x24xf32>
    %cst_353 = arith.constant dense<0xFF800000> : vector<24xf32>
    %516 = vector.multi_reduction <maximumf>, %515, %cst_353 [1] : vector<24x24xf32> to vector<24xf32>
    %517 = vector.shape_cast %516 : vector<24xf32> to vector<24x1xf32>
    %518 = vector.broadcast %517 : vector<24x1xf32> to vector<24x24xf32>
    %519 = arith.subf %515, %518 : vector<24x24xf32>
    %520 = math.exp %519 : vector<24x24xf32>
    %cst_354 = arith.constant dense<0.000000e+00> : vector<24xf32>
    %521 = vector.multi_reduction <add>, %520, %cst_354 [1] : vector<24x24xf32> to vector<24xf32>
    %522 = vector.shape_cast %521 : vector<24xf32> to vector<24x1xf32>
    %523 = tpu.reciprocal %522 {approx = true} : vector<24x1xf32> -> vector<24x1xf32>
    %524 = vector.broadcast %523 : vector<24x1xf32> to vector<24x24xf32>
    %525 = arith.mulf %520, %524 : vector<24x24xf32>
    %526 = arith.truncf %525 : vector<24x24xf32> to vector<24x24xbf16>
    %527 = arith.truncf %512 : vector<24x16xf32> to vector<24x16xbf16>
    %cst_355 = arith.constant dense<0.000000e+00> : vector<24x16xf32>
    %528 = tpu.matmul %526, %527, %cst_355 {dimension_numbers = #tpu.dot_dimension_numbers<[1], [0], [0], [1], [0, 0, 1, 1], [], []>} : vector<24x24xbf16>, vector<24x16xbf16>, vector<24x16xf32> -> vector<24x16xf32>
    %c1_356 = arith.constant 1 : index
    %c1_357 = arith.constant 1 : index
    %c0_358 = arith.constant 0 : index
    %c0_359 = arith.constant 0 : index
    %529 = vector.load %arg16[%c1_356, %c1_357, %c0_358, %c0_359] : memref<2x2x16x32xbf16, #tpu.memory_space<vmem>>, vector<1x1x16x32xbf16>
    %530 = vector.shape_cast %529 : vector<1x1x16x32xbf16> to vector<16x32xbf16>
    %531 = arith.truncf %528 : vector<24x16xf32> to vector<24x16xbf16>
    %cst_360 = arith.constant dense<0.000000e+00> : vector<24x32xf32>
    %532 = tpu.matmul %531, %530, %cst_360 {dimension_numbers = #tpu.dot_dimension_numbers<[1], [0], [0], [1], [0, 0, 1, 1], [], []>} : vector<24x16xbf16>, vector<16x32xbf16>, vector<24x32xf32> -> vector<24x32xf32>
    %533 = arith.addf %500, %532 : vector<24x32xf32>
    %534 = arith.addf %442, %533 : vector<24x32xf32>
    %c1_361 = arith.constant 1 : index
    %c2_362 = arith.constant 2 : index
    %c0_363 = arith.constant 0 : index
    %c0_364 = arith.constant 0 : index
    %535 = vector.load %arg14[%c1_361, %c2_362, %c0_363, %c0_364] : memref<2x4x1x32xf32, #tpu.memory_space<vmem>>, vector<1x1x1x32xf32>
    %536 = vector.shape_cast %535 : vector<1x1x1x32xf32> to vector<1x32xf32>
    %c1_365 = arith.constant 1 : index
    %c3_366 = arith.constant 3 : index
    %c0_367 = arith.constant 0 : index
    %c0_368 = arith.constant 0 : index
    %537 = vector.load %arg14[%c1_365, %c3_366, %c0_367, %c0_368] : memref<2x4x1x32xf32, #tpu.memory_space<vmem>>, vector<1x1x1x32xf32>
    %538 = vector.shape_cast %537 : vector<1x1x1x32xf32> to vector<1x32xf32>
    %cst_369 = arith.constant dense<0.000000e+00> : vector<24xf32>
    %539 = vector.multi_reduction <add>, %534, %cst_369 [1] : vector<24x32xf32> to vector<24xf32>
    %540 = vector.shape_cast %539 : vector<24xf32> to vector<24x1xf32>
    %cst_370 = arith.constant 3.200000e+01 : f32
    %541 = vector.broadcast %cst_370 : f32 to vector<24x1xf32>
    %542 = arith.divf %540, %541 : vector<24x1xf32>
    %543 = vector.broadcast %542 : vector<24x1xf32> to vector<24x32xf32>
    %544 = arith.subf %534, %543 : vector<24x32xf32>
    %545 = arith.mulf %544, %544 : vector<24x32xf32>
    %cst_371 = arith.constant dense<0.000000e+00> : vector<24xf32>
    %546 = vector.multi_reduction <add>, %545, %cst_371 [1] : vector<24x32xf32> to vector<24xf32>
    %547 = vector.shape_cast %546 : vector<24xf32> to vector<24x1xf32>
    %cst_372 = arith.constant 3.200000e+01 : f32
    %548 = vector.broadcast %cst_372 : f32 to vector<24x1xf32>
    %549 = arith.divf %547, %548 : vector<24x1xf32>
    %550 = vector.broadcast %542 : vector<24x1xf32> to vector<24x32xf32>
    %551 = arith.subf %534, %550 : vector<24x32xf32>
    %cst_373 = arith.constant 9.99999974E-6 : f32
    %552 = vector.broadcast %cst_373 : f32 to vector<24x1xf32>
    %553 = arith.addf %549, %552 : vector<24x1xf32>
    %554 = math.rsqrt %553 : vector<24x1xf32>
    %555 = vector.broadcast %554 : vector<24x1xf32> to vector<24x32xf32>
    %556 = arith.mulf %551, %555 : vector<24x32xf32>
    %557 = vector.broadcast %536 : vector<1x32xf32> to vector<24x32xf32>
    %558 = arith.mulf %556, %557 : vector<24x32xf32>
    %559 = vector.broadcast %538 : vector<1x32xf32> to vector<24x32xf32>
    %560 = arith.addf %558, %559 : vector<24x32xf32>
    %c1_374 = arith.constant 1 : index
    %c0_375 = arith.constant 0 : index
    %c0_376 = arith.constant 0 : index
    %561 = vector.load %arg17[%c1_374, %c0_375, %c0_376] : memref<2x32x128xbf16, #tpu.memory_space<vmem>>, vector<1x32x128xbf16>
    %562 = vector.shape_cast %561 : vector<1x32x128xbf16> to vector<32x128xbf16>
    %563 = arith.truncf %560 : vector<24x32xf32> to vector<24x32xbf16>
    %cst_377 = arith.constant dense<0.000000e+00> : vector<24x128xf32>
    %564 = tpu.matmul %563, %562, %cst_377 {dimension_numbers = #tpu.dot_dimension_numbers<[1], [0], [0], [1], [0, 0, 1, 1], [], []>} : vector<24x32xbf16>, vector<32x128xbf16>, vector<24x128xf32> -> vector<24x128xf32>
    %565 = arith.mulf %564, %564 : vector<24x128xf32>
    %566 = arith.mulf %564, %565 : vector<24x128xf32>
    %cst_378 = arith.constant 4.471500e-02 : f32
    %567 = vector.broadcast %cst_378 : f32 to vector<24x128xf32>
    %568 = arith.mulf %567, %566 : vector<24x128xf32>
    %569 = arith.addf %564, %568 : vector<24x128xf32>
    %cst_379 = arith.constant 0.797884583 : f32
    %570 = vector.broadcast %cst_379 : f32 to vector<24x128xf32>
    %571 = arith.mulf %570, %569 : vector<24x128xf32>
    %572 = math.tanh %571 : vector<24x128xf32>
    %cst_380 = arith.constant 1.000000e+00 : f32
    %573 = vector.broadcast %cst_380 : f32 to vector<24x128xf32>
    %574 = arith.addf %573, %572 : vector<24x128xf32>
    %cst_381 = arith.constant 5.000000e-01 : f32
    %575 = vector.broadcast %cst_381 : f32 to vector<24x128xf32>
    %576 = arith.mulf %575, %574 : vector<24x128xf32>
    %577 = arith.mulf %564, %576 : vector<24x128xf32>
    %c1_382 = arith.constant 1 : index
    %c0_383 = arith.constant 0 : index
    %c0_384 = arith.constant 0 : index
    %578 = vector.load %arg18[%c1_382, %c0_383, %c0_384] : memref<2x128x32xbf16, #tpu.memory_space<vmem>>, vector<1x128x32xbf16>
    %579 = vector.shape_cast %578 : vector<1x128x32xbf16> to vector<128x32xbf16>
    %580 = arith.truncf %577 : vector<24x128xf32> to vector<24x128xbf16>
    %cst_385 = arith.constant dense<0.000000e+00> : vector<24x32xf32>
    %581 = tpu.matmul %580, %579, %cst_385 {dimension_numbers = #tpu.dot_dimension_numbers<[1], [0], [0], [1], [0, 0, 1, 1], [], []>} : vector<24x128xbf16>, vector<128x32xbf16>, vector<24x32xf32> -> vector<24x32xf32>
    %582 = arith.addf %534, %581 : vector<24x32xf32>
    %583 = vector.extract_strided_slice %582 {offsets = [8, 0], sizes = [16, 32], strides = [1, 1]} : vector<24x32xf32> to vector<16x32xf32>
    %c0_386 = arith.constant 0 : index
    %c0_387 = arith.constant 0 : index
    %c0_388 = arith.constant 0 : index
    %584 = vector.load %arg19[%c0_386, %c0_387, %c0_388] : memref<2x1x32xf32, #tpu.memory_space<vmem>>, vector<1x1x32xf32>
    %585 = vector.shape_cast %584 : vector<1x1x32xf32> to vector<1x32xf32>
    %c1_389 = arith.constant 1 : index
    %c0_390 = arith.constant 0 : index
    %c0_391 = arith.constant 0 : index
    %586 = vector.load %arg19[%c1_389, %c0_390, %c0_391] : memref<2x1x32xf32, #tpu.memory_space<vmem>>, vector<1x1x32xf32>
    %587 = vector.shape_cast %586 : vector<1x1x32xf32> to vector<1x32xf32>
    %cst_392 = arith.constant dense<0.000000e+00> : vector<16xf32>
    %588 = vector.multi_reduction <add>, %583, %cst_392 [1] : vector<16x32xf32> to vector<16xf32>
    %589 = vector.shape_cast %588 : vector<16xf32> to vector<16x1xf32>
    %cst_393 = arith.constant 3.200000e+01 : f32
    %590 = vector.broadcast %cst_393 : f32 to vector<16x1xf32>
    %591 = arith.divf %589, %590 : vector<16x1xf32>
    %592 = vector.broadcast %591 : vector<16x1xf32> to vector<16x32xf32>
    %593 = arith.subf %583, %592 : vector<16x32xf32>
    %594 = arith.mulf %593, %593 : vector<16x32xf32>
    %cst_394 = arith.constant dense<0.000000e+00> : vector<16xf32>
    %595 = vector.multi_reduction <add>, %594, %cst_394 [1] : vector<16x32xf32> to vector<16xf32>
    %596 = vector.shape_cast %595 : vector<16xf32> to vector<16x1xf32>
    %cst_395 = arith.constant 3.200000e+01 : f32
    %597 = vector.broadcast %cst_395 : f32 to vector<16x1xf32>
    %598 = arith.divf %596, %597 : vector<16x1xf32>
    %599 = vector.broadcast %591 : vector<16x1xf32> to vector<16x32xf32>
    %600 = arith.subf %583, %599 : vector<16x32xf32>
    %cst_396 = arith.constant 9.99999974E-6 : f32
    %601 = vector.broadcast %cst_396 : f32 to vector<16x1xf32>
    %602 = arith.addf %598, %601 : vector<16x1xf32>
    %603 = math.rsqrt %602 : vector<16x1xf32>
    %604 = vector.broadcast %603 : vector<16x1xf32> to vector<16x32xf32>
    %605 = arith.mulf %600, %604 : vector<16x32xf32>
    %606 = vector.broadcast %585 : vector<1x32xf32> to vector<16x32xf32>
    %607 = arith.mulf %605, %606 : vector<16x32xf32>
    %608 = vector.broadcast %587 : vector<1x32xf32> to vector<16x32xf32>
    %609 = arith.addf %607, %608 : vector<16x32xf32>
    %c0_397 = arith.constant 0 : index
    %c0_398 = arith.constant 0 : index
    %610 = vector.load %arg20[%c0_397, %c0_398] : memref<32x64xbf16, #tpu.memory_space<vmem>>, vector<32x64xbf16>
    %611 = arith.truncf %609 : vector<16x32xf32> to vector<16x32xbf16>
    %cst_399 = arith.constant dense<0.000000e+00> : vector<16x64xf32>
    %612 = tpu.matmul %611, %610, %cst_399 {dimension_numbers = #tpu.dot_dimension_numbers<[1], [0], [0], [1], [0, 0, 1, 1], [], []>} : vector<16x32xbf16>, vector<32x64xbf16>, vector<16x64xf32> -> vector<16x64xf32>
    %c0_400 = arith.constant 0 : index
    %c0_401 = arith.constant 0 : index
    %613 = vector.load %arg21[%c0_400, %c0_401] : memref<1x64xf32, #tpu.memory_space<vmem>>, vector<1x64xf32>
    %614 = vector.broadcast %613 : vector<1x64xf32> to vector<16x64xf32>
    %615 = arith.addf %612, %614 : vector<16x64xf32>
    %c0_402 = arith.constant 0 : index
    %c0_403 = arith.constant 0 : index
    %c0_404 = arith.constant 0 : index
    %616 = vector.load %arg22[%c0_402, %c0_403, %c0_404] : memref<1x16x64xf32, #tpu.memory_space<vmem>>, vector<1x16x64xf32>
    %617 = vector.shape_cast %616 : vector<1x16x64xf32> to vector<16x64xf32>
    %618 = vector.shape_cast %615 : vector<16x64xf32> to vector<1x16x64xf32>
    tpu.vector_store %arg22[%c0_402, %c0_403, %c0_404], %618 {strides = array<i32>} : memref<1x16x64xf32, #tpu.memory_space<vmem>>, vector<1x16x64xf32>,
    return
  }
  func.func @transform_0(%arg0: i32) -> (i32, i32, i32) {
    %c0_i32 = arith.constant 0 : i32
    %c0_i32_0 = arith.constant 0 : i32
    %c0_i32_1 = arith.constant 0 : i32
    return %arg0, %c0_i32, %c0_i32_0 : i32, i32, i32
  }
  func.func @transform_1(%arg0: i32) -> (i32, i32) {
    %c0_i32 = arith.constant 0 : i32
    %c0_i32_0 = arith.constant 0 : i32
    %c0_i32_1 = arith.constant 0 : i32
    return %c0_i32, %c0_i32_0 : i32, i32
  }
  func.func @transform_2(%arg0: i32) -> (i32, i32) {
    %c0_i32 = arith.constant 0 : i32
    %c0_i32_0 = arith.constant 0 : i32
    %c0_i32_1 = arith.constant 0 : i32
    return %c0_i32, %c0_i32_0 : i32, i32
  }
  func.func @transform_3(%arg0: i32) -> (i32, i32) {
    %c0_i32 = arith.constant 0 : i32
    %c0_i32_0 = arith.constant 0 : i32
    %c0_i32_1 = arith.constant 0 : i32
    return %c0_i32, %c0_i32_0 : i32, i32
  }
  func.func @transform_4(%arg0: i32) -> (i32, i32, i32, i32) {
    %c0_i32 = arith.constant 0 : i32
    %c0_i32_0 = arith.constant 0 : i32
    %c0_i32_1 = arith.constant 0 : i32
    %c0_i32_2 = arith.constant 0 : i32
    %c0_i32_3 = arith.constant 0 : i32
    return %c0_i32, %c0_i32_0, %c0_i32_1, %c0_i32_2 : i32, i32, i32, i32
  }
  func.func @transform_5(%arg0: i32) -> (i32, i32, i32, i32, i32) {
    %c0_i32 = arith.constant 0 : i32
    %c0_i32_0 = arith.constant 0 : i32
    %c0_i32_1 = arith.constant 0 : i32
    %c0_i32_2 = arith.constant 0 : i32
    %c0_i32_3 = arith.constant 0 : i32
    %c0_i32_4 = arith.constant 0 : i32
    return %c0_i32, %c0_i32_0, %c0_i32_1, %c0_i32_2, %c0_i32_3 : i32, i32, i32, i32, i32
  }
  func.func @transform_6(%arg0: i32) -> (i32, i32, i32, i32) {
    %c0_i32 = arith.constant 0 : i32
    %c0_i32_0 = arith.constant 0 : i32
    %c0_i32_1 = arith.constant 0 : i32
    %c0_i32_2 = arith.constant 0 : i32
    %c0_i32_3 = arith.constant 0 : i32
    return %c0_i32, %c0_i32_0, %c0_i32_1, %c0_i32_2 : i32, i32, i32, i32
  }
  func.func @transform_7(%arg0: i32) -> (i32, i32, i32) {
    %c0_i32 = arith.constant 0 : i32
    %c0_i32_0 = arith.constant 0 : i32
    %c0_i32_1 = arith.constant 0 : i32
    %c0_i32_2 = arith.constant 0 : i32
    return %c0_i32, %c0_i32_0, %c0_i32_1 : i32, i32, i32
  }
  func.func @transform_8(%arg0: i32) -> (i32, i32, i32) {
    %c0_i32 = arith.constant 0 : i32
    %c0_i32_0 = arith.constant 0 : i32
    %c0_i32_1 = arith.constant 0 : i32
    %c0_i32_2 = arith.constant 0 : i32
    return %c0_i32, %c0_i32_0, %c0_i32_1 : i32, i32, i32
  }
  func.func @transform_9(%arg0: i32) -> (i32, i32) {
    %c0_i32 = arith.constant 0 : i32
    %c0_i32_0 = arith.constant 0 : i32
    %c0_i32_1 = arith.constant 0 : i32
    return %c0_i32, %c0_i32_0 : i32, i32
  }
  func.func @transform_10(%arg0: i32) -> (i32, i32) {
    %c0_i32 = arith.constant 0 : i32
    %c0_i32_0 = arith.constant 0 : i32
    %c0_i32_1 = arith.constant 0 : i32
    return %c0_i32, %c0_i32_0 : i32, i32
  }
  func.func @transform_11(%arg0: i32) -> (i32, i32) {
    %c0_i32 = arith.constant 0 : i32
    %c0_i32_0 = arith.constant 0 : i32
    %c0_i32_1 = arith.constant 0 : i32
    return %c0_i32, %c0_i32_0 : i32, i32
  }
  func.func @transform_12(%arg0: i32) -> (i32, i32) {
    %c0_i32 = arith.constant 0 : i32
    %c0_i32_0 = arith.constant 0 : i32
    %c0_i32_1 = arith.constant 0 : i32
    return %c0_i32, %c0_i32_0 : i32, i32
  }
  func.func @transform_13(%arg0: i32) -> (i32, i32, i32, i32) {
    %c0_i32 = arith.constant 0 : i32
    %c0_i32_0 = arith.constant 0 : i32
    %c0_i32_1 = arith.constant 0 : i32
    %c0_i32_2 = arith.constant 0 : i32
    %c0_i32_3 = arith.constant 0 : i32
    return %c0_i32, %c0_i32_0, %c0_i32_1, %c0_i32_2 : i32, i32, i32, i32
  }
  func.func @transform_14(%arg0: i32) -> (i32, i32, i32, i32, i32) {
    %c0_i32 = arith.constant 0 : i32
    %c0_i32_0 = arith.constant 0 : i32
    %c0_i32_1 = arith.constant 0 : i32
    %c0_i32_2 = arith.constant 0 : i32
    %c0_i32_3 = arith.constant 0 : i32
    %c0_i32_4 = arith.constant 0 : i32
    return %c0_i32, %c0_i32_0, %c0_i32_1, %c0_i32_2, %c0_i32_3 : i32, i32, i32, i32, i32
  }
  func.func @transform_15(%arg0: i32) -> (i32, i32, i32, i32) {
    %c0_i32 = arith.constant 0 : i32
    %c0_i32_0 = arith.constant 0 : i32
    %c0_i32_1 = arith.constant 0 : i32
    %c0_i32_2 = arith.constant 0 : i32
    %c0_i32_3 = arith.constant 0 : i32
    return %c0_i32, %c0_i32_0, %c0_i32_1, %c0_i32_2 : i32, i32, i32, i32
  }
  func.func @transform_16(%arg0: i32) -> (i32, i32, i32) {
    %c0_i32 = arith.constant 0 : i32
    %c0_i32_0 = arith.constant 0 : i32
    %c0_i32_1 = arith.constant 0 : i32
    %c0_i32_2 = arith.constant 0 : i32
    return %c0_i32, %c0_i32_0, %c0_i32_1 : i32, i32, i32
  }
  func.func @transform_17(%arg0: i32) -> (i32, i32, i32) {
    %c0_i32 = arith.constant 0 : i32
    %c0_i32_0 = arith.constant 0 : i32
    %c0_i32_1 = arith.constant 0 : i32
    %c0_i32_2 = arith.constant 0 : i32
    return %c0_i32, %c0_i32_0, %c0_i32_1 : i32, i32, i32
  }
  func.func @transform_18(%arg0: i32) -> (i32, i32, i32) {
    %c0_i32 = arith.constant 0 : i32
    %c0_i32_0 = arith.constant 0 : i32
    %c0_i32_1 = arith.constant 0 : i32
    %c0_i32_2 = arith.constant 0 : i32
    return %c0_i32, %c0_i32_0, %c0_i32_1 : i32, i32, i32
  }
  func.func @transform_19(%arg0: i32) -> (i32, i32) {
    %c0_i32 = arith.constant 0 : i32
    %c0_i32_0 = arith.constant 0 : i32
    %c0_i32_1 = arith.constant 0 : i32
    return %c0_i32, %c0_i32_0 : i32, i32
  }
  func.func @transform_20(%arg0: i32) -> (i32, i32) {
    %c0_i32 = arith.constant 0 : i32
    %c0_i32_0 = arith.constant 0 : i32
    %c0_i32_1 = arith.constant 0 : i32
    return %c0_i32, %c0_i32_0 : i32, i32
  }
  func.func @transform_21(%arg0: i32) -> (i32, i32, i32) {
    %c0_i32 = arith.constant 0 : i32
    %c0_i32_0 = arith.constant 0 : i32
    %c0_i32_1 = arith.constant 0 : i32
    return %arg0, %c0_i32, %c0_i32_0 : i32, i32, i32
  }
  func.func @transform_22(%arg0: i32) -> (i32, i32, i32) {
    %c0_i32 = arith.constant 0 : i32
    %c0_i32_0 = arith.constant 0 : i32
    %c0_i32_1 = arith.constant 0 : i32
    return %arg0, %c0_i32, %c0_i32_0 : i32, i32, i32
  }
}

</mosaic_0001>

<bundles_post_ra>
// kernel: _lambda_.1
= control target key start
LH: loop header
LB: loop body
LE: loop exit
PB: predicated region body
PF: predicated region fallthrough
CT: control target
= control target key end

     0   :  { %s8293_s0 = inlined_call_operand.vmem [shape: f32[2,16,64], index: 0, kind: input, shape index: {}]   ;;  %s8294_s1 = inlined_call_operand.vmem [shape: bf16[64,32], index: 1, kind: input, shape index: {}]   ;;  %s8295_s2 = inlined_call_operand.vmem [shape: f32[8,32], index: 2, kind: input, shape index: {}]   ;;  %s8296_s3 = inlined_call_operand.vmem [shape: f32[16,32], index: 3, kind: input, shape index: {}]   ;;  %s8297_s4 = inlined_call_operand.vmem [shape: f32[2,4,1,32], index: 4, kind: input, shape index: {}]   ;;  %s8298_s5 = inlined_call_operand.vmem [shape: bf16[2,3,2,32,16], index: 5, kind: input, shape index: {}]   ;;  %s8299_s6 = inlined_call_operand.vmem [shape: bf16[2,2,16,32], index: 6, kind: input, shape index: {}]   ;;  %s8300_s7 = inlined_call_operand.vmem [shape: bf16[2,32,128], index: 7, kind: input, shape index: {}]   ;;  %s8301_s8 = inlined_call_operand.vmem [shape: bf16[2,128,32], index: 8, kind: input, shape index: {}]   ;;  %s8302_s9 = inlined_call_operand.vmem [shape: bf16[32,4], index: 9, kind: input, shape index: {}]   ;;  %s8303_s10 = inlined_call_operand.vmem [shape: bf16[4,32], index: 10, kind: input, shape index: {}]   ;;  %s8304_s11 = inlined_call_operand.vmem [shape: f32[8,32], index: 11, kind: input, shape index: {}]   ;;  %s8305_s12 = inlined_call_operand.vmem [shape: f32[16,32], index: 12, kind: input, shape index: {}]   ;;  %s8306_s13 = inlined_call_operand.vmem [shape: f32[2,4,1,32], index: 13, kind: input, shape index: {}]   ;;  %s8307_s14 = inlined_call_operand.vmem [shape: bf16[2,3,2,32,16], index: 14, kind: input, shape index: {}]   ;;  %s8308_s15 = inlined_call_operand.vmem [shape: bf16[2,2,16,32], index: 15, kind: input, shape index: {}]   ;;  %s8309_s16 = inlined_call_operand.vmem [shape: bf16[2,32,128], index: 16, kind: input, shape index: {}]   ;;  %s8310_s17 = inlined_call_operand.vmem [shape: bf16[2,128,32], index: 17, kind: input, shape index: {}]   ;;  %s8311_s18 = inlined_call_operand.vmem [shape: f32[2,1,32], index: 18, kind: input, shape index: {}]   ;;  %s8312_s19 = inlined_call_operand.vmem [shape: bf16[32,64], index: 19, kind: input, shape index: {}]   ;;  %s8313_s20 = inlined_call_operand.vmem [shape: f32[1,64], index: 20, kind: input, shape index: {}]   ;;  %s8314_s21 = inlined_call_operand.vmem [shape: f32[2,16,64], index: 21, kind: output, shape index: {0}]   ;;  %s8315_s22 = inlined_call_operand.vmem [shape: f32[2,8,4], index: 22, kind: output, shape index: {1}]  }
   0x1   :  { %8324 = sst [smem:[#allocation2_spill]] %s8293_s0 }
   0x2   :  { %8325 = sst [smem:[#allocation3_spill]] %s8294_s1 }
   0x3   :  { %8326 = sst [smem:[#allocation4_spill]] %s8295_s2 }
   0x4   :  { %8327 = sst [smem:[#allocation5_spill]] %s8296_s3  ;;  %s7434_s3 = smov 0  }
   0x5   :  { %8328 = sst [smem:[#allocation6_spill]] %s8297_s4 }
   0x6   :  { %8329 = sst [smem:[#allocation7_spill]] %s8298_s5 }
   0x7   :  { %8330 = sst [smem:[#allocation8_spill]] %s8299_s6 }
   0x8 LB: > { %s5831_s28 = sadd.s32 4294967295, %s7315_s3   ;;  %p5835_p0 = scmp.ge.s32.totalorder %s7315_s3, 1  ;;  %s7315_s3 = sphi %s7434_s3, %s33_s3  }
   0x9   : > { %p615_p1 = scmp.lt.s32.totalorder %s7315_s3, 3 }
   0xb   : > { %p616_p2 = pnand %p5835_p0, %p615_p1 }
   0xc   : > { %s8331_s4 = sld [smem:[#allocation3_spill]] (!%p616_p2)  ;;  %v7317_v1 = vmov (!%p616_p2), 0.0   ;;  %vm7318_vm0 = vmmov (!%p616_p2), 0   ;;  %p681_p3 = scmp.lt.s32.totalorder (!%p616_p2), %s5831_s28, 1  ;;  %vm782_vm1 = vcmask (!%p616_p2), 261120   ;;  %vm733_vm2 = vcmask (!%p616_p2), 523264  }
   0xd   : > { %619 = sbr.rel (%p616_p2) target bundleno = 13474 (0x34a2), region = 104  ;;  %6484 = vmatprep.subr.bf16.mxu1 (!%p616_p2), %v7317_v1  ;;  %6492 = vmatprep.mubr.msk.bf16.mxu1 (!%p616_p2), %vm7318_vm0, %v7317_v1  ;;  %s8332_s24 = sld [smem:[#allocation4_spill]] (!%p616_p2)  ;;  %vm1047_vm3 = vcmask (!%p616_p2), 130048   ;;  %vm1152_vm4 = vcmask (!%p616_p2), 1043456   ;;  %vm1108_vm5 = vcmask (!%p616_p2), 195584   ;;  %vm3217_vm6 = vcmask (!%p616_p2), 1041408  }
   0xe   : > { %s8333_s29 = sld [smem:[#allocation2_spill]] (!%p616_p2)  ;;  %s8334_s6 = sld [smem:[#allocation5_spill]] (!%p616_p2)  ;;  %vm3209_vm7 = vcmask (!%p616_p2), 31744  }
   0xf   : > { %s8336_s1 = sld [smem:[#allocation6_spill]] (!%p616_p2) }
  0x12   : > { %v7032_v0 = vld [vmem:[%s8331_s4] sm:$0xff] (!%p616_p2)   ;;  %v7033_v2 = vld [vmem:[%s8331_s4 + $0x8] sm:$0xff] (!%p616_p2)   ;;  %v7034_v5 = vld [vmem:[%s8331_s4 + $0x10] sm:$0xff] (!%p616_p2)  }
  0x13   : > { %6485 = vmatpush3.bf16.msra.mxu1 (!%p616_p2), %v7032_v0  ;;  %v778_v3 = vld [vmem:[%s8332_s24] sm:$0xff] (!%p616_p2)  ;;  %v7035_v6 = vld [vmem:[%s8331_s4 + $0x18] sm:$0xff] (!%p616_p2)  }
  0x14   : > { %6486 = vmatprep.subr.bf16.mxu1 %v7317_v1  ;;  %s8340_s28 = smov (!%p681_p3, %s5831_s28), 1  ;;  %v783_v4 = vsel %vm782_vm1, %v778_v3, 0.0  ;;  %v707_v12 = vld [vmem:[%s8334_s6] sm:$0xff]  ;;  %v708_v15 = vld [vmem:[%s8334_s6 + $0x8] sm:$0xff] }
  0x15   : > { %s8322_s26 = sshll.u32 %s8340_s28, 4  ;;  %784 = vadd.xlane.f32.xlu0 %v783_v4  ;;  %v5847_v51 = vld [vmem:[%s8336_s1] ss:$0 sm:$0xff]  ;;  %v5848_v56 = vld [vmem:[%s8336_s1 + $0x1] ss:$0 sm:$0xff]  ;;  %s5840_s0 = sshll.u32 %s8340_s28, 3 }
  0x16   : > { %s685_s30 = scalar_lea.vmem %s8333_s29, %s8322_s26  ;;  %s8337_s29 = sld [smem:[#allocation8_spill]] }
  0x17   : > { %6487 = vmatpush3.bf16.msra.mxu1 %v7033_v2  ;;  %v696_v7 = vld [vmem:[%s685_s30] sm:$0xff]  ;;  %v697_v8 = vld [vmem:[%s685_s30 + $0x8] sm:$0xff]  ;;  %s8335_s30 = sld [smem:[#allocation7_spill]]  ;;  %s694_s25 = scalar_lea.vmem %s8315_s22, %s5840_s0 }
  0x18   : > { %6488 = vmatprep.subr.bf16.mxu1 %v7317_v1  ;;  %v706_v9 = vpack.c.bf16 %v697_v8, %v696_v7  ;;  %s8338_s5 = sshll.u32 %s8340_s28, 4 }
  0x19   : > { %s690_s27 = scalar_lea.vmem %s8314_s21, %s8338_s5 }
  0x1b   : > { %6489 = vmatpush3.bf16.msra.mxu1 %v7034_v5 }
  0x1c   : > { %6490 = vmatprep.subr.bf16.mxu1 %v7317_v1 }
  0x1d   : > { %v7036_v35 = vld [vmem:[%s8335_s30] sm:$0xff]   ;;  %v7038_v37 = vld [vmem:[%s8335_s30 + $0x8] sm:$0xff]  }
  0x1e   : > { %v7037_v36 = vld [vmem:[%s8335_s30 + $0x40] sm:$0xff]   ;;  %v7039_v38 = vld [vmem:[%s8335_s30 + $0x48] sm:$0xff]  }
  0x1f   : > { %6491 = vmatpush3.bf16.msra.mxu1 %v7035_v6  ;;  %6512 = vmatprep.subr.bf16.mxu0 %v7037_v36  ;;  %v7040_v39 = vld [vmem:[%s8335_s30 + $0x20] sm:$0xff]   ;;  %v7041_v2 = vld [vmem:[%s8335_s30 + $0x28] sm:$0xff]  }
  0x20   : > { %6496 = vmatprep.subr.bf16.mxu1 %v7036_v35  ;;  %6513 = vmatpush3.bf16.msra.mxu0 %v7037_v36 }
  0x21   : > { %6514 = vmatprep.subr.bf16.mxu0 %v7039_v38 }
  0x22   : > { %6493 = vmatmul.mubr.msk.bf16.vlgmr.msra.gmra.mrb[0].mxu1 %vm733_vm2, %v706_v9 }
  0x23   : > { %6497 = vmatpush3.bf16.msra.mxu1 %v7036_v35 }
  0x24   : > { %6498 = vmatprep.subr.bf16.mxu1 %v7038_v37  ;;  %6515 = vmatpush3.bf16.msra.mxu0 %v7039_v38 }
  0x27   : > { %6499 = vmatpush3.bf16.msra.mxu1 %v7038_v37 }
  0x28   : > { %6504 = vmatprep.subr.bf16.mxu1 %v7040_v39 }
  0xa2   : > { %v785_v10 = vpop.xlane.xlu0 %784 }
  0xa3   : > { %v793_v11 = vmul.f32 0.03125, %v785_v10 }
  0xa5   : > { %v796_v13 = vsub.f32 %v778_v3, %v793_v11 }
  0xa7   : > { %v799_v22 = vmul.f32 %v796_v13, %v796_v13 }
  0xa9   : > { %v802_v24 = vsel %vm782_vm1, %v799_v22, 0.0 }
  0xf5   : > { %v771_v14 = vpop.f32.mrb[0].mxu1 }
  0xf6   : > { %v7479_v16 = vadd.f32 %v771_v14, %v707_v12  ;;  %v6494_v17 = vpop.f32.mrb[1].mxu1 }
  0xf7   : > { %v774_v18 = vpop.f32.mrb[2].mxu1 }
  0xf8   : > { %v7481_v19 = vadd.f32 %v774_v18, %v708_v15  ;;  %v6495_v20 = vpop.f32.mrb[3].mxu1  ;;  %v786_v21 = vsel %vm782_vm1, %v7479_v16, 0.0 }
  0xf9   : > { %787 = vadd.xlane.f32.xlu0 %v786_v21 }
  0xfa   : > { %v789_v23 = vsel %vm782_vm1, %v7481_v19, 0.0 }
  0xfb   : > { %790 = vadd.xlane.f32.xlu1 %v789_v23 }
  0xff   : > { %803 = vadd.xlane.f32.xlu1 %v802_v24  ;;  %v7042_v24 = vld [vmem:[%s8335_s30 + $0x30] sm:$0xff]  }
 0x186   : > { %v788_v25 = vpop.xlane.xlu0 %787 }
 0x187   : > { %v794_v26 = vmul.f32 0.03125, %v788_v25 }
 0x188   : > { %v791_v27 = vpop.xlane.xlu1 %790 }
 0x189   : > { %v797_v28 = vsub.f32 %v7479_v16, %v794_v26  ;;  %v795_v29 = vmul.f32 0.03125, %v791_v27  ;;  %v7043_v27 = vld [vmem:[%s8335_s30 + $0x38] sm:$0xff]  }
 0x18b   : > { %v798_v30 = vsub.f32 %v7481_v19, %v795_v29  ;;  %v800_v31 = vmul.f32 %v797_v28, %v797_v28 }
 0x18c   : > { %v804_v40 = vpop.xlane.xlu1 %803 }
 0x18d   : > { %v805_v32 = vsel %vm782_vm1, %v800_v31, 0.0  ;;  %v801_v33 = vmul.f32 %v798_v30, %v798_v30  ;;  %v811_v41 = vmul.f32 0.03125, %v804_v40 }
 0x18e   : > { %806 = vadd.xlane.f32.xlu0 %v805_v32 }
 0x18f   : > { %v808_v34 = vsel %vm782_vm1, %v801_v33, 0.0  ;;  %v814_v42 = vadd.f32 1e-05, %v811_v41 }
 0x190   : > { %809 = vadd.xlane.f32.xlu1 %v808_v34 }
 0x191   : > { %7136 = vrsqrt.f32 %v814_v42 }
 0x19b   : > { %v7137_v49 = vpop.eup %7136 }
 0x19c   : > { %v820_v50 = vmul.f32 %v7137_v49, %v796_v13 }
 0x19e   : > { %v829_v53 = vmul.f32 %v5847_v51, %v820_v50 }
 0x1a0   : > { %v838_v59 = vadd.f32 %v5848_v56, %v829_v53 }
 0x21b   : > { %v807_v43 = vpop.xlane.xlu0 %806 }
 0x21c   : > { %v812_v44 = vmul.f32 0.03125, %v807_v43 }
 0x21d   : > { %v810_v45 = vpop.xlane.xlu1 %809 }
 0x21e   : > { %v815_v46 = vadd.f32 1e-05, %v812_v44  ;;  %v813_v47 = vmul.f32 0.03125, %v810_v45 }
 0x220   : > { %7138 = vrsqrt.f32 %v815_v46  ;;  %v816_v48 = vadd.f32 1e-05, %v813_v47 }
 0x222   : > { %7140 = vrsqrt.f32 %v816_v48 }
 0x22a   : > { %v7139_v52 = vpop.eup %7138 }
 0x22b   : > { %v821_v54 = vmul.f32 %v7139_v52, %v797_v28 }
 0x22c   : > { %v7141_v55 = vpop.eup %7140 }
 0x22d   : > { %v830_v57 = vmul.f32 %v5847_v51, %v821_v54  ;;  %v822_v58 = vmul.f32 %v7141_v55, %v798_v30 }
 0x22f   : > { %v839_v60 = vadd.f32 %v5848_v56, %v830_v57  ;;  %v831_v61 = vmul.f32 %v5847_v51, %v822_v58  ;;  %v7044_v58 = vld [vmem:[%s8335_s30 + $0x10] sm:$0xff]  }
 0x231   : > { %v840_v62 = vadd.f32 %v5848_v56, %v831_v61  ;;  %v7513_v63 = vpack.c.bf16 %v839_v60, %v838_v59 }
 0x233   : > { %v7515_v0 = vpack.c.bf16 %v840_v62, %v840_v62  ;;  %6500 = vmatprep.mubr.msk.bf16.mxu1 %vm782_vm1, %v7513_v63  ;;  %6516 = vmatprep.mubr.msk.bf16.mxu0 %vm782_vm1, %v7513_v63 }
 0x235   : > { %6501 = vmatmul.mubr.msk.bf16.vlgmr.msra.gmra.mrb[4].mxu1 %vm782_vm1, %v7515_v0  ;;  %6517 = vmatmul.mubr.msk.bf16.vlgmr.msra.gmra.mrb[0].mxu0 %vm782_vm1, %v7515_v0 }
 0x236   : > { %6505 = vmatpush3.bf16.msra.mxu1 %v7040_v39  ;;  %6508 = vmatprep.mubr.msk.bf16.mxu1 %vm782_vm1, %v7513_v63 }
 0x237   : > { %6506 = vmatprep.subr.bf16.mxu1 %v7041_v2 }
 0x23a   : > { %6507 = vmatpush3.bf16.msra.mxu1 %v7041_v2 }
 0x23d   : > { %6509 = vmatmul.mubr.msk.bf16.vlgmr.msra.gmra.mrb[8].mxu1 %vm782_vm1, %v7515_v0 }
 0x308   : > { %v6502_v3 = vpop.f32.mrb[4].mxu1  ;;  %v6518_v4 = vpop.f32.mrb[0].mxu0 }
 0x309   : > { %v899_v5 = vpop.f32.mrb[5].mxu1  ;;  %v1029_v6 = vpop.f32.mrb[1].mxu0  ;;  %v1145_v13 = vpack.c.bf16 %v6518_v4, %v6518_v4  ;;  %v1044_v26 = vpack.c.bf16 %v6502_v3, %v6502_v3 }
 0x30a   : > { %v6503_v7 = vpop.f32.mrb[6].mxu1  ;;  %v6519_v8 = vpop.f32.mrb[2].mxu0 }
 0x30b   : > { %v902_v9 = vpop.f32.mrb[7].mxu1  ;;  %v1032_v10 = vpop.f32.mrb[3].mxu0  ;;  %v1154_v17 = vsel %vm1152_vm4, %v1145_v13, 0 }
 0x30c   : > { %v1043_v11 = vpack.c.bf16 %v902_v9, %v899_v5  ;;  %v1144_v12 = vpack.c.bf16 %v1032_v10, %v1029_v6  ;;  %v7045_v9 = vld [vmem:[%s8335_s30 + $0x18] sm:$0xff]   ;;  %v7046_v10 = vld [vmem:[%s8335_s30 + $0x50] sm:$0xff]  }
 0x30e   : > { %6524 = vmatprep.mubr.msk.bf16.mxu1 %vm1047_vm3, %v1043_v11  ;;  %6528 = vmatprep.subr.bf16.mxu0 %v1144_v12  ;;  %v7047_v11 = vld [vmem:[%s8335_s30 + $0x58] sm:$0xff]  }
 0x30f   : > { %6529 = vmatpush3.bf16.msra.mxu0 %v1144_v12  ;;  %v7048_v12 = vld [vmem:[%s8337_s29] sm:$0xff]  }
 0x310   : > { %v6510_v14 = vpop.f32.mrb[8].mxu1  ;;  %7000 = vmatprep.subr.msk.bf16.mxu0 %vm1152_vm4, %v1145_v13 }
 0x311   : > { %v964_v15 = vpop.f32.mrb[9].mxu1  ;;  %v1046_v22 = vpack.c.bf16 %v6510_v14, %v6510_v14 }
 0x312   : > { %v6511_v18 = vpop.f32.mrb[10].mxu1 }
 0x313   : > { %v967_v20 = vpop.f32.mrb[11].mxu1  ;;  %6531 = vmatpush3.bf16.msra.mxu0 %v1154_v17  ;;  %v1058_v25 = vsel %vm1047_vm3, %v1046_v22, 0 }
 0x314   : > { %v1045_v21 = vpack.c.bf16 %v967_v20, %v964_v15  ;;  %6536 = vmatprep.subr.bf16.mxu0 %v7044_v58 }
 0x316   : > { %v1055_v23 = vsel %vm1047_vm3, %v1045_v21, 0  ;;  %6998 = vmatprep.subr.msk.bf16.mxu1 %vm1047_vm3, %v1045_v21 }
 0x317   : > { %6521 = vmatpush3.bf16.xpose.msra.mxu1 %v1055_v23 }
 0x318   : > { %6999 = vmatprep.subr.msk.bf16.mxu1 %vm1047_vm3, %v1046_v22 }
 0x31f   : > { %6523 = vmatpush3.bf16.xpose.msra.mxu1 %v1058_v25 }
 0x320   : > { %6544 = vmatprep.subr.bf16.mxu1 %v7042_v24 }
 0x326   : > { %6525 = vmatmul.mubr.msk.bf16.vlgmr.msra.gmra.mrb[12].mxu1 %vm1047_vm3, %v1044_v26 }
 0x327   : > { %6545 = vmatpush3.bf16.msra.mxu1 %v7042_v24  ;;  %6548 = vmatprep.mubr.msk.bf16.mxu1 %vm782_vm1, %v7513_v63 }
 0x328   : > { %6546 = vmatprep.subr.bf16.mxu1 %v7043_v27 }
 0x32b   : > { %6547 = vmatpush3.bf16.msra.mxu1 %v7043_v27 }
 0x32e   : > { %6549 = vmatmul.mubr.msk.bf16.vlgmr.msra.gmra.mrb[16].mxu1 %vm782_vm1, %v7515_v0 }
 0x3f9   : > { %v6526_v28 = vpop.f32.mrb[12].mxu1 }
 0x3fa   : > { %v1094_v29 = vpop.f32.mrb[13].mxu1  ;;  %v1115_v34 = vsel %vm1108_vm5, %v6526_v28, -inf }
 0x3fb   : > { %v6527_v30 = vpop.f32.mrb[14].mxu1  ;;  %v1109_v31 = vsel %vm1108_vm5, %v1094_v29, -inf }
 0x3fc   : > { %1110 = vmax.xlane.f32.xlu0 %v1109_v31  ;;  %v1097_v32 = vpop.f32.mrb[15].mxu1 }
 0x3fd   : > { %v1112_v33 = vsel %vm1108_vm5, %v1097_v32, -inf }
 0x3fe   : > { %1113 = vmax.xlane.f32.xlu1 %v1112_v33 }
 0x400   : > { %1116 = vmax.xlane.f32.xlu0 %v1115_v34 }
 0x401   : > { %v6550_v35 = vpop.f32.mrb[16].mxu1 }
 0x402   : > { %v1324_v36 = vpop.f32.mrb[17].mxu1  ;;  %v1406_v40 = vpack.c.bf16 %v6550_v35, %v6550_v35 }
 0x403   : > { %v6551_v37 = vpop.f32.mrb[18].mxu1 }
 0x404   : > { %v1327_v38 = vpop.f32.mrb[19].mxu1  ;;  %v1417_v42 = vsel %vm1047_vm3, %v1406_v40, 0 }
 0x405   : > { %v1405_v39 = vpack.c.bf16 %v1327_v38, %v1324_v36 }
 0x407   : > { %v1414_v41 = vsel %vm1047_vm3, %v1405_v39, 0  ;;  %7001 = vmatprep.subr.msk.bf16.mxu1 %vm1047_vm3, %v1405_v39 }
 0x408   : > { %6561 = vmatpush3.bf16.xpose.msra.mxu1 %v1414_v41 }
 0x409   : > { %7002 = vmatprep.subr.msk.bf16.mxu1 %vm1047_vm3, %v1406_v40 }
 0x410   : > { %6563 = vmatpush3.bf16.xpose.msra.mxu1 %v1417_v42 }
 0x411   : > { %6582 = vmatprep.subr.bf16.mxu1 %v7048_v12 }
 0x489   : > { %v1111_v43 = vpop.xlane.xlu0 %1110 }
 0x48a   : > { %v1118_v44 = vsub.f32 %v1094_v29, %v1111_v43 }
 0x48b   : > { %v1114_v45 = vpop.xlane.xlu1 %1113 }
 0x48c   : > { %v1121_v46 = vmul.f32 1.442695, %v1118_v44  ;;  %v1119_v47 = vsub.f32 %v1097_v32, %v1114_v45 }
 0x48d   : > { %v1117_v48 = vpop.xlane.xlu0 %1116 }
 0x48e   : > { %7142 = vpow2.f32 %v1121_v46  ;;  %v1123_v49 = vmul.f32 1.442695, %v1119_v47  ;;  %v1120_v50 = vsub.f32 %v6526_v28, %v1117_v48 }
 0x490   : > { %7144 = vpow2.f32 %v1123_v49  ;;  %v1125_v51 = vmul.f32 1.442695, %v1120_v50 }
 0x492   : > { %7146 = vpow2.f32 %v1125_v51 }
 0x498   : > { %v7143_v52 = vpop.eup %7142 }
 0x499   : > { %v1127_v53 = vsel %vm1108_vm5, %v7143_v52, 0.0 }
 0x49a   : > { %v7145_v54 = vpop.eup %7144  ;;  %1128 = vadd.xlane.f32.xlu1 %v1127_v53 }
 0x49b   : > { %v1130_v55 = vsel %vm1108_vm5, %v7145_v54, 0.0 }
 0x49c   : > { %v7147_v56 = vpop.eup %7146  ;;  %1131 = vadd.xlane.f32.xlu0 %v1130_v55 }
 0x49d   : > { %v1133_v57 = vsel %vm1108_vm5, %v7147_v56, 0.0 }
 0x49e   : > { %1134 = vadd.xlane.f32.xlu1 %v1133_v57 }
 0x527   : > { %v1129_v59 = vpop.xlane.xlu1 %1128 }
 0x528   : > { %7148 = vrcp.f32 %v1129_v59 }
 0x529   : > { %v1132_v60 = vpop.xlane.xlu0 %1131 }
 0x52a   : > { %7150 = vrcp.f32 %v1132_v60 }
 0x52b   : > { %v1135_v61 = vpop.xlane.xlu1 %1134 }
 0x52c   : > { %7152 = vrcp.f32 %v1135_v61 }
 0x532   : > { %v7149_v62 = vpop.eup %7148 }
 0x533   : > { %v1139_v3 = vmul.f32 %v7149_v62, %v7143_v52 }
 0x534   : > { %v7151_v2 = vpop.eup %7150 }
 0x535   : > { %v1140_v4 = vmul.f32 %v7151_v2, %v7145_v54 }
 0x536   : > { %v7153_v5 = vpop.eup %7152 }
 0x537   : > { %v1141_v6 = vmul.f32 %v7153_v5, %v7147_v56  ;;  %v1142_v7 = vpack.c.bf16 %v1140_v4, %v1139_v3 }
 0x539   : > { %6532 = vmatprep.mubr.msk.bf16.mxu0 %vm1108_vm5, %v1142_v7  ;;  %v1143_v8 = vpack.c.bf16 %v1141_v6, %v1141_v6 }
 0x53b   : > { %6533 = vmatmul.mubr.msk.bf16.vlgmr.msra.gmra.mrb[4].mxu0 %vm1108_vm5, %v1143_v8 }
 0x53c   : > { %6537 = vmatpush3.bf16.msra.mxu0 %v7044_v58  ;;  %6540 = vmatprep.mubr.msk.bf16.mxu0 %vm782_vm1, %v7513_v63  ;;  %v7049_v58 = vld [vmem:[%s8337_s29 + $0x8] sm:$0xff]  }
 0x53d   : > { %6538 = vmatprep.subr.bf16.mxu0 %v7045_v9 }
 0x540   : > { %6539 = vmatpush3.bf16.msra.mxu0 %v7045_v9 }
 0x541   : > { %6552 = vmatprep.subr.bf16.mxu0 %v7046_v10 }
 0x543   : > { %6541 = vmatmul.mubr.msk.bf16.vlgmr.msra.gmra.mrb[8].mxu0 %vm782_vm1, %v7515_v0 }
 0x544   : > { %6553 = vmatpush3.bf16.msra.mxu0 %v7046_v10  ;;  %6556 = vmatprep.mubr.msk.bf16.mxu0 %vm782_vm1, %v7513_v63 }
 0x545   : > { %6554 = vmatprep.subr.bf16.mxu0 %v7047_v11 }
 0x548   : > { %6555 = vmatpush3.bf16.msra.mxu0 %v7047_v11 }
 0x54b   : > { %6557 = vmatmul.mubr.msk.bf16.vlgmr.msra.gmra.mrb[12].mxu0 %vm782_vm1, %v7515_v0 }
 0x60e   : > { %v6534_v13 = vpop.f32.mrb[4].mxu0 }
 0x60f   : > { %v1190_v14 = vpop.f32.mrb[5].mxu0  ;;  %v1207_v29 = vpack.c.bf16 %v6534_v13, %v6534_v13 }
 0x610   : > { %v6535_v15 = vpop.f32.mrb[6].mxu0 }
 0x611   : > { %v1193_v17 = vpop.f32.mrb[7].mxu0 }
 0x612   : > { %v1206_v18 = vpack.c.bf16 %v1193_v17, %v1190_v14 }
 0x616   : > { %v6542_v20 = vpop.f32.mrb[8].mxu0 }
 0x617   : > { %v1259_v21 = vpop.f32.mrb[9].mxu0  ;;  %v1404_v24 = vpack.c.bf16 %v6542_v20, %v6542_v20 }
 0x618   : > { %v6543_v22 = vpop.f32.mrb[10].mxu0 }
 0x619   : > { %v1262_v23 = vpop.f32.mrb[11].mxu0 }
 0x61a   : > { %v1403_v63 = vpack.c.bf16 %v1262_v23, %v1259_v21  ;;  %v7308_v23 = vld [vmem:[%s8332_s24] sm:$0xff] }
 0x61c   : > { %6564 = vmatprep.mubr.msk.bf16.mxu1 %vm1047_vm3, %v1403_v63 }
 0x61d   : > { %6565 = vmatmul.mubr.msk.bf16.vlgmr.msra.gmra.mrb[20].mxu1 %vm1047_vm3, %v1404_v24 }
 0x61e   : > { %v6558_v0 = vpop.f32.mrb[12].mxu0  ;;  %6584 = vmatprep.mubr.msk.bf16.mxu1 %vm1047_vm3, %v1206_v18  ;;  %6583 = vmatpush3.bf16.msra.mxu1 %v7048_v12 }
 0x61f   : > { %v1389_v25 = vpop.f32.mrb[13].mxu0  ;;  %v1503_v30 = vpack.c.bf16 %v6558_v0, %v6558_v0 }
 0x620   : > { %v6559_v26 = vpop.f32.mrb[14].mxu0 }
 0x621   : > { %v1392_v27 = vpop.f32.mrb[15].mxu0  ;;  %v1511_v31 = vsel %vm1152_vm4, %v1503_v30, 0 }
 0x622   : > { %v1502_v28 = vpack.c.bf16 %v1392_v27, %v1389_v25 }
 0x624   : > { %6568 = vmatprep.subr.bf16.mxu0 %v1502_v28 }
 0x625   : > { %6569 = vmatpush3.bf16.msra.mxu0 %v1502_v28  ;;  %6585 = vmatmul.mubr.msk.bf16.vlgmr.msra.gmra.mrb[24].mxu1 %vm1047_vm3, %v1207_v29 }
 0x626   : > { %7003 = vmatprep.subr.msk.bf16.mxu0 %vm1152_vm4, %v1503_v30 }
 0x629   : > { %6571 = vmatpush3.bf16.msra.mxu0 %v1511_v31 }
 0x62a   : > { %6576 = vmatprep.subr.bf16.mxu0 %v7049_v58 }
 0x6f0   : > { %v6566_v32 = vpop.f32.mrb[20].mxu1 }
 0x6f1   : > { %v1453_v33 = vpop.f32.mrb[21].mxu1  ;;  %v1473_v38 = vsel %vm1108_vm5, %v6566_v32, -inf }
 0x6f2   : > { %v6567_v34 = vpop.f32.mrb[22].mxu1  ;;  %v1467_v35 = vsel %vm1108_vm5, %v1453_v33, -inf }
 0x6f3   : > { %1468 = vmax.xlane.f32.xlu0 %v1467_v35  ;;  %v1456_v36 = vpop.f32.mrb[23].mxu1 }
 0x6f4   : > { %v1470_v37 = vsel %vm1108_vm5, %v1456_v36, -inf }
 0x6f5   : > { %1471 = vmax.xlane.f32.xlu1 %v1470_v37 }
 0x6f7   : > { %1474 = vmax.xlane.f32.xlu0 %v1473_v38 }
 0x6f8   : > { %v6586_v39 = vpop.f32.mrb[24].mxu1 }
 0x6f9   : > { %v1672_v40 = vpop.f32.mrb[25].mxu1 }
 0x6fa   : > { %v6587_v41 = vpop.f32.mrb[26].mxu1 }
 0x6fb   : > { %v1675_v42 = vpop.f32.mrb[27].mxu1 }
 0x780   : > { %v1469_v43 = vpop.xlane.xlu0 %1468 }
 0x781   : > { %v1476_v44 = vsub.f32 %v1453_v33, %v1469_v43  ;;  %v7051_v43 = vld [vmem:[%s8300_s7 + $0x8] sm:$0xff]  }
 0x782   : > { %v1472_v45 = vpop.xlane.xlu1 %1471 }
 0x783   : > { %v1479_v46 = vmul.f32 1.442695, %v1476_v44  ;;  %v1477_v47 = vsub.f32 %v1456_v36, %v1472_v45 }
 0x784   : > { %v1475_v48 = vpop.xlane.xlu0 %1474 }
 0x785   : > { %7154 = vpow2.f32 %v1479_v46  ;;  %v1481_v49 = vmul.f32 1.442695, %v1477_v47  ;;  %v1478_v50 = vsub.f32 %v6566_v32, %v1475_v48 }
 0x787   : > { %7156 = vpow2.f32 %v1481_v49  ;;  %v1483_v51 = vmul.f32 1.442695, %v1478_v50 }
 0x789   : > { %7158 = vpow2.f32 %v1483_v51 }
 0x78f   : > { %v7155_v52 = vpop.eup %7154 }
 0x790   : > { %v1485_v53 = vsel %vm1108_vm5, %v7155_v52, 0.0 }
 0x791   : > { %v7157_v54 = vpop.eup %7156  ;;  %1486 = vadd.xlane.f32.xlu1 %v1485_v53 }
 0x792   : > { %v1488_v55 = vsel %vm1108_vm5, %v7157_v54, 0.0 }
 0x793   : > { %v7159_v56 = vpop.eup %7158  ;;  %1489 = vadd.xlane.f32.xlu0 %v1488_v55 }
 0x794   : > { %v1491_v57 = vsel %vm1108_vm5, %v7159_v56, 0.0 }
 0x795   : > { %1492 = vadd.xlane.f32.xlu1 %v1491_v57 }
 0x81e   : > { %v1487_v59 = vpop.xlane.xlu1 %1486 }
 0x81f   : > { %7160 = vrcp.f32 %v1487_v59 }
 0x820   : > { %v1490_v60 = vpop.xlane.xlu0 %1489 }
 0x821   : > { %7162 = vrcp.f32 %v1490_v60  ;;  %v5912_v60 = vld [vmem:[%s8336_s1 + $0x3] ss:$0 sm:$0xff] }
 0x822   : > { %v1493_v61 = vpop.xlane.xlu1 %1492 }
 0x823   : > { %7164 = vrcp.f32 %v1493_v61 }
 0x829   : > { %v7161_v62 = vpop.eup %7160 }
 0x82a   : > { %v1497_v3 = vmul.f32 %v7161_v62, %v7155_v52 }
 0x82b   : > { %v7163_v2 = vpop.eup %7162 }
 0x82c   : > { %v1498_v4 = vmul.f32 %v7163_v2, %v7157_v54  ;;  %v5911_v54 = vld [vmem:[%s8336_s1 + $0x2] ss:$0 sm:$0xff] }
 0x82d   : > { %v7165_v5 = vpop.eup %7164 }
 0x82e   : > { %v1499_v6 = vmul.f32 %v7165_v5, %v7159_v56  ;;  %v1500_v7 = vpack.c.bf16 %v1498_v4, %v1497_v3 }
 0x830   : > { %6572 = vmatprep.mubr.msk.bf16.mxu0 %vm1108_vm5, %v1500_v7  ;;  %v1501_v8 = vpack.c.bf16 %v1499_v6, %v1499_v6 }
 0x832   : > { %6573 = vmatmul.mubr.msk.bf16.vlgmr.msra.gmra.mrb[16].mxu0 %vm1108_vm5, %v1501_v8  ;;  %v7052_v8 = vld [vmem:[%s8301_s8] sm:$0xff]  }
 0x833   : > { %6577 = vmatpush3.bf16.msra.mxu0 %v7049_v58  ;;  %6596 = vmatprep.subr.bf16.mxu1 %v7052_v8 }
 0x834   : > { %6597 = vmatpush3.bf16.msra.mxu1 %v7052_v8 }
 0x905   : > { %v6574_v9 = vpop.f32.mrb[16].mxu0 }
 0x906   : > { %v1547_v10 = vpop.f32.mrb[17].mxu0  ;;  %v1565_v14 = vpack.c.bf16 %v6574_v9, %v6574_v9  ;;  %v7053_v9 = vld [vmem:[%s8301_s8 + $0x8] sm:$0xff]  }
 0x907   : > { %v6575_v11 = vpop.f32.mrb[18].mxu0  ;;  %6598 = vmatprep.subr.bf16.mxu1 %v7053_v9 }
 0x908   : > { %v1550_v12 = vpop.f32.mrb[19].mxu0  ;;  %6599 = vmatpush3.bf16.msra.mxu1 %v7053_v9  ;;  %v7055_v11 = vld [vmem:[%s8301_s8 + $0x18] sm:$0xff]  }
 0x909   : > { %v1564_v13 = vpack.c.bf16 %v1550_v12, %v1547_v10  ;;  %v7054_v10 = vld [vmem:[%s8301_s8 + $0x10] sm:$0xff]   ;;  %v7056_v12 = vld [vmem:[%s8301_s8 + $0x20] sm:$0xff]  }
 0x90a   : > { %6600 = vmatprep.subr.bf16.mxu1 %v7054_v10 }
 0x90b   : > { %6578 = vmatprep.mubr.msk.bf16.mxu0 %vm1047_vm3, %v1564_v13  ;;  %v7057_v13 = vld [vmem:[%s8301_s8 + $0x28] sm:$0xff]  }
 0x90c   : > { %6579 = vmatmul.mubr.msk.bf16.vlgmr.msra.gmra.mrb[20].mxu0 %vm1047_vm3, %v1565_v14  ;;  %6601 = vmatpush3.bf16.msra.mxu1 %v7054_v10  ;;  %v7058_v14 = vld [vmem:[%s8301_s8 + $0x30] sm:$0xff]  }
 0x90d   : > { %6602 = vmatprep.subr.bf16.mxu1 %v7055_v11 }
 0x910   : > { %6603 = vmatpush3.bf16.msra.mxu1 %v7055_v11  ;;  %v7060_v11 = vld [vmem:[%s8335_s30 + $0x60] sm:$0xff]  }
 0x911   : > { %6604 = vmatprep.subr.bf16.mxu1 %v7056_v12 }
 0x914   : > { %6605 = vmatpush3.bf16.msra.mxu1 %v7056_v12  ;;  %v7061_v12 = vld [vmem:[%s8335_s30 + $0x68] sm:$0xff]  }
 0x915   : > { %6606 = vmatprep.subr.bf16.mxu1 %v7057_v13 }
 0x918   : > { %6607 = vmatpush3.bf16.msra.mxu1 %v7057_v13  ;;  %v7062_v13 = vld [vmem:[%s8335_s30 + $0x80] sm:$0xff]  }
 0x919   : > { %6608 = vmatprep.subr.bf16.mxu1 %v7058_v14 }
 0x91c   : > { %6609 = vmatpush3.bf16.msra.mxu1 %v7058_v14 }
 0x9df   : > { %v6580_v15 = vpop.f32.mrb[20].mxu0 }
 0x9e0   : > { %v1681_v17 = vadd.f32 %v6586_v39, %v6580_v15  ;;  %v1612_v18 = vpop.f32.mrb[21].mxu0  ;;  %v7059_v15 = vld [vmem:[%s8301_s8 + $0x38] sm:$0xff]  }
 0x9e1   : > { %v1673_v20 = vadd.f32 %v1672_v40, %v1612_v18  ;;  %v6581_v21 = vpop.f32.mrb[22].mxu0  ;;  %6610 = vmatprep.subr.bf16.mxu1 %v7059_v15 }
 0x9e2   : > { %v1615_v22 = vpop.f32.mrb[23].mxu0  ;;  %v7610_v0 = vadd.f32 %v1681_v17, %v7481_v19  ;;  %6611 = vmatpush3.bf16.msra.mxu1 %v7059_v15 }
 0x9e3   : > { %v7607_v63 = vadd.f32 %v7308_v23, %v1673_v20  ;;  %v1676_v24 = vadd.f32 %v1675_v42, %v1615_v22  ;;  %v7050_v42 = vld [vmem:[%s8300_s7] sm:$0xff]  }
 0x9e4   : > { %v1699_v28 = vsel %vm782_vm1, %v7610_v0, 0.0  ;;  %6588 = vmatprep.subr.bf16.mxu0 %v7050_v42 }
 0x9e5   : > { %v7613_v25 = vadd.f32 %v1676_v24, %v7479_v16  ;;  %v1693_v26 = vsel %vm782_vm1, %v7607_v63, 0.0  ;;  %6589 = vmatpush3.bf16.msra.mxu0 %v7050_v42 }
 0x9e6   : > { %1694 = vadd.xlane.f32.xlu0 %v1693_v26  ;;  %6590 = vmatprep.subr.bf16.mxu0 %v7051_v43 }
 0x9e7   : > { %v1696_v27 = vsel %vm782_vm1, %v7613_v25, 0.0 }
 0x9e8   : > { %1697 = vadd.xlane.f32.xlu1 %v1696_v27 }
 0x9e9   : > { %6591 = vmatpush3.bf16.msra.mxu0 %v7051_v43 }
 0x9ea   : > { %1700 = vadd.xlane.f32.xlu0 %v1699_v28  ;;  %6616 = vmatprep.subr.bf16.mxu0 %v7060_v11 }
 0xa73   : > { %v1695_v29 = vpop.xlane.xlu0 %1694 }
 0xa74   : > { %v1702_v30 = vmul.f32 0.03125, %v1695_v29 }
 0xa75   : > { %v1698_v31 = vpop.xlane.xlu1 %1697 }
 0xa76   : > { %v1705_v19 = vsub.f32 %v7607_v63, %v1702_v30  ;;  %v1703_v32 = vmul.f32 0.03125, %v1698_v31 }
 0xa77   : > { %v1701_v16 = vpop.xlane.xlu0 %1700 }
 0xa78   : > { %v1706_v33 = vsub.f32 %v7613_v25, %v1703_v32  ;;  %v1704_v34 = vmul.f32 0.03125, %v1701_v16  ;;  %v1708_v35 = vmul.f32 %v1705_v19, %v1705_v19 }
 0xa7a   : > { %v1707_v36 = vsub.f32 %v7610_v0, %v1704_v34  ;;  %v1711_v37 = vsel %vm782_vm1, %v1708_v35, 0.0  ;;  %v1709_v38 = vmul.f32 %v1706_v33, %v1706_v33 }
 0xa7b   : > { %1712 = vadd.xlane.f32.xlu1 %v1711_v37 }
 0xa7c   : > { %v1714_v39 = vsel %vm782_vm1, %v1709_v38, 0.0  ;;  %v1710_v40 = vmul.f32 %v1707_v36, %v1707_v36 }
 0xa7d   : > { %1715 = vadd.xlane.f32.xlu0 %v1714_v39 }
 0xa7e   : > { %v1717_v41 = vsel %vm782_vm1, %v1710_v40, 0.0 }
 0xa7f   : > { %1718 = vadd.xlane.f32.xlu1 %v1717_v41 }
 0xb08   : > { %v1713_v44 = vpop.xlane.xlu1 %1712 }
 0xb09   : > { %v1720_v45 = vmul.f32 0.03125, %v1713_v44 }
 0xb0a   : > { %v1716_v46 = vpop.xlane.xlu0 %1715 }
 0xb0b   : > { %v1723_v47 = vadd.f32 1e-05, %v1720_v45  ;;  %v1721_v48 = vmul.f32 0.03125, %v1716_v46 }
 0xb0c   : > { %v1719_v49 = vpop.xlane.xlu1 %1718 }
 0xb0d   : > { %7166 = vrsqrt.f32 %v1723_v47  ;;  %v1724_v50 = vadd.f32 1e-05, %v1721_v48  ;;  %v1722_v51 = vmul.f32 0.03125, %v1719_v49 }
 0xb0f   : > { %7168 = vrsqrt.f32 %v1724_v50  ;;  %v1725_v52 = vadd.f32 1e-05, %v1722_v51 }
 0xb11   : > { %7170 = vrsqrt.f32 %v1725_v52 }
 0xb17   : > { %v7167_v53 = vpop.eup %7166 }
 0xb18   : > { %v1729_v55 = vmul.f32 %v7167_v53, %v1705_v19 }
 0xb19   : > { %v7169_v56 = vpop.eup %7168 }
 0xb1a   : > { %v1730_v57 = vmul.f32 %v7169_v56, %v1706_v33  ;;  %v1738_v58 = vmul.f32 %v5911_v54, %v1729_v55 }
 0xb1b   : > { %v7171_v59 = vpop.eup %7170 }
 0xb1c   : > { %v1731_v61 = vmul.f32 %v7171_v59, %v1707_v36  ;;  %v1739_v62 = vmul.f32 %v5911_v54, %v1730_v57  ;;  %v1747_v2 = vadd.f32 %v5912_v60, %v1738_v58 }
 0xb1e   : > { %v1748_v3 = vadd.f32 %v5912_v60, %v1739_v62  ;;  %v1740_v4 = vmul.f32 %v5911_v54, %v1731_v61 }
 0xb20   : > { %v1754_v5 = vpack.c.bf16 %v1748_v3, %v1747_v2  ;;  %v1749_v6 = vadd.f32 %v5912_v60, %v1740_v4 }
 0xb22   : > { %6592 = vmatprep.mubr.msk.bf16.mxu0 %vm782_vm1, %v1754_v5  ;;  %v1755_v7 = vpack.c.bf16 %v1749_v6, %v1749_v6 }
 0xb24   : > { %6593 = vmatmul.mubr.msk.bf16.vlgmr.msra.gmra.mrb[24].mxu0 %vm782_vm1, %v1755_v7 }
 0xb25   : > { %6617 = vmatpush3.bf16.msra.mxu0 %v7060_v11 }
 0xb26   : > { %6618 = vmatprep.subr.bf16.mxu0 %v7061_v12 }
 0xb29   : > { %6619 = vmatpush3.bf16.msra.mxu0 %v7061_v12 }
 0xb2a   : > { %6624 = vmatprep.subr.bf16.mxu0 %v7062_v13 }
 0xbf7   : > { %v6594_v17 = vpop.f32.mrb[24].mxu0 }
 0xbf8   : > { %v1824_v18 = vmul.f32 %v6594_v17, %v6594_v17  ;;  %v1808_v20 = vpop.f32.mrb[25].mxu0 }
 0xbf9   : > { %v1822_v21 = vmul.f32 %v1808_v20, %v1808_v20  ;;  %v6595_v22 = vpop.f32.mrb[26].mxu0 }
 0xbfa   : > { %v1827_v23 = vmul.f32 %v6594_v17, %v1824_v18  ;;  %v1811_v24 = vpop.f32.mrb[27].mxu0 }
 0xbfb   : > { %v1825_v26 = vmul.f32 %v1822_v21, %v1808_v20  ;;  %v1823_v27 = vmul.f32 %v1811_v24, %v1811_v24 }
 0xbfc   : > { %v1830_v28 = vmul.f32 0.044715, %v1827_v23 }
 0xbfd   : > { %v1828_v29 = vmul.f32 0.044715, %v1825_v26  ;;  %v1826_v30 = vmul.f32 %v1823_v27, %v1811_v24  ;;  %v5927_v27 = vld [vmem:[%s8336_s1 + $0x4] ss:$0 sm:$0xff] }
 0xbfe   : > { %v1833_v31 = vadd.f32 %v6594_v17, %v1830_v28 }
 0xbff   : > { %v1831_v19 = vadd.f32 %v1828_v29, %v1808_v20  ;;  %v1829_v32 = vmul.f32 0.044715, %v1826_v30 }
 0xc00   : > { %v1836_v16 = vmul.f32 0.7978846, %v1833_v31 }
 0xc01   : > { %v1834_v33 = vmul.f32 0.7978846, %v1831_v19  ;;  %v1832_v34 = vadd.f32 %v1829_v32, %v1811_v24  ;;  %v5928_v32 = vld [vmem:[%s8336_s1 + $0x5] ss:$0 sm:$0xff] }
 0xc02   : > { %7172 = vtanh.f32 %v1836_v16 }
 0xc03   : > { %7174 = vtanh.f32 %v1834_v33  ;;  %v1835_v35 = vmul.f32 0.7978846, %v1832_v34 }
 0xc05   : > { %7176 = vtanh.f32 %v1835_v35 }
 0xc0c   : > { %v7173_v36 = vpop.eup %7172 }
 0xc0d   : > { %v7175_v37 = vpop.eup %7174  ;;  %v1842_v38 = vadd.f32 1.0, %v7173_v36 }
 0xc0e   : > { %v1840_v39 = vadd.f32 1.0, %v7175_v37 }
 0xc0f   : > { %v7177_v40 = vpop.eup %7176  ;;  %v1845_v41 = vmul.f32 0.5, %v1842_v38 }
 0xc10   : > { %v1843_v42 = vmul.f32 0.5, %v1840_v39  ;;  %v1841_v43 = vadd.f32 1.0, %v7177_v40  ;;  %v7063_v40 = vld [vmem:[%s8335_s30 + $0x88] sm:$0xff]  }
 0xc11   : > { %v1848_v45 = vmul.f32 %v6594_v17, %v1845_v41  ;;  %v7064_v41 = vld [vmem:[%s8335_s30 + $0xa0] sm:$0xff]  }
 0xc12   : > { %v1844_v44 = vmul.f32 0.5, %v1841_v43  ;;  %v1846_v46 = vmul.f32 %v1843_v42, %v1808_v20  ;;  %v7065_v42 = vld [vmem:[%s8335_s30 + $0xa8] sm:$0xff]  }
 0xc13   : > { %v1866_v49 = vpack.c.bf16 %v1848_v45, %v1848_v45 }
 0xc14   : > { %v1847_v47 = vmul.f32 %v1844_v44, %v1811_v24 }
 0xc16   : > { %v1865_v48 = vpack.c.bf16 %v1847_v47, %v1846_v46 }
 0xc18   : > { %6612 = vmatprep.mubr.bf16.mxu1 %v1865_v48 }
 0xc19   : > { %6613 = vmatmul.mubr.bf16.vlgmr.msra.gmra.mrb[28].mxu1 %v1866_v49 }
 0xcec   : > { %v6614_v50 = vpop.f32.mrb[28].mxu1 }
 0xced   : > { %v1949_v51 = vpop.f32.mrb[29].mxu1  ;;  %v7669_v55 = vadd.f32 %v6614_v50, %v7610_v0 }
 0xcee   : > { %v7666_v52 = vadd.f32 %v1949_v51, %v7607_v63  ;;  %v6615_v53 = vpop.f32.mrb[30].mxu1 }
 0xcef   : > { %v1952_v54 = vpop.f32.mrb[31].mxu1  ;;  %v1976_v63 = vsel %vm782_vm1, %v7669_v55, 0.0 }
 0xcf0   : > { %v7672_v56 = vadd.f32 %v1952_v54, %v7613_v25  ;;  %v1970_v57 = vsel %vm782_vm1, %v7666_v52, 0.0 }
 0xcf1   : > { %1971 = vadd.xlane.f32.xlu0 %v1970_v57 }
 0xcf2   : > { %v1973_v58 = vsel %vm782_vm1, %v7672_v56, 0.0 }
 0xcf3   : > { %1974 = vadd.xlane.f32.xlu1 %v1973_v58 }
 0xcf5   : > { %1977 = vadd.xlane.f32.xlu0 %v1976_v63 }
 0xd7e   : > { %v1972_v59 = vpop.xlane.xlu0 %1971 }
 0xd7f   : > { %v1979_v60 = vmul.f32 0.03125, %v1972_v59 }
 0xd80   : > { %v1975_v61 = vpop.xlane.xlu1 %1974 }
 0xd81   : > { %v1982_v0 = vsub.f32 %v7666_v52, %v1979_v60  ;;  %v1980_v62 = vmul.f32 0.03125, %v1975_v61 }
 0xd82   : > { %v1978_v25 = vpop.xlane.xlu0 %1977 }
 0xd83   : > { %v1983_v2 = vsub.f32 %v7672_v56, %v1980_v62  ;;  %v1981_v3 = vmul.f32 0.03125, %v1978_v25  ;;  %v1985_v4 = vmul.f32 %v1982_v0, %v1982_v0 }
 0xd85   : > { %v1984_v5 = vsub.f32 %v7669_v55, %v1981_v3  ;;  %v1988_v6 = vsel %vm782_vm1, %v1985_v4, 0.0  ;;  %v1986_v7 = vmul.f32 %v1983_v2, %v1983_v2  ;;  %v7067_v4 = vld [vmem:[%s8335_s30 + $0x98] sm:$0xff]  }
 0xd86   : > { %1989 = vadd.xlane.f32.xlu1 %v1988_v6 }
 0xd87   : > { %v1991_v8 = vsel %vm782_vm1, %v1986_v7, 0.0  ;;  %v1987_v9 = vmul.f32 %v1984_v5, %v1984_v5 }
 0xd88   : > { %1992 = vadd.xlane.f32.xlu0 %v1991_v8 }
 0xd89   : > { %v1994_v10 = vsel %vm782_vm1, %v1987_v9, 0.0 }
 0xd8a   : > { %1995 = vadd.xlane.f32.xlu1 %v1994_v10 }
 0xe13   : > { %v1990_v14 = vpop.xlane.xlu1 %1989 }
 0xe14   : > { %v1997_v15 = vmul.f32 0.03125, %v1990_v14 }
 0xe15   : > { %v1993_v17 = vpop.xlane.xlu0 %1992 }
 0xe16   : > { %v2000_v18 = vadd.f32 1e-05, %v1997_v15  ;;  %v1998_v20 = vmul.f32 0.03125, %v1993_v17 }
 0xe17   : > { %v1996_v21 = vpop.xlane.xlu1 %1995 }
 0xe18   : > { %7178 = vrsqrt.f32 %v2000_v18  ;;  %v2001_v22 = vadd.f32 1e-05, %v1998_v20  ;;  %v1999_v23 = vmul.f32 0.03125, %v1996_v21 }
 0xe1a   : > { %7180 = vrsqrt.f32 %v2001_v22  ;;  %v2002_v24 = vadd.f32 1e-05, %v1999_v23 }
 0xe1c   : > { %7182 = vrsqrt.f32 %v2002_v24 }
 0xe22   : > { %v7179_v26 = vpop.eup %7178 }
 0xe23   : > { %v2006_v28 = vmul.f32 %v7179_v26, %v1982_v0  ;;  %v7066_v0 = vld [vmem:[%s8335_s30 + $0x90] sm:$0xff]  }
 0xe24   : > { %v7181_v29 = vpop.eup %7180 }
 0xe25   : > { %v2015_v30 = vmul.f32 %v5927_v27, %v2006_v28  ;;  %v2007_v31 = vmul.f32 %v7181_v29, %v1983_v2 }
 0xe26   : > { %v7183_v19 = vpop.eup %7182 }
 0xe27   : > { %v2016_v16 = vmul.f32 %v5927_v27, %v2007_v31  ;;  %v2008_v33 = vmul.f32 %v7183_v19, %v1984_v5  ;;  %v2024_v34 = vadd.f32 %v5928_v32, %v2015_v30 }
 0xe29   : > { %v2025_v35 = vadd.f32 %v5928_v32, %v2016_v16  ;;  %v2017_v36 = vmul.f32 %v5927_v27, %v2008_v33 }
 0xe2b   : > { %v2026_v37 = vadd.f32 %v5928_v32, %v2017_v36  ;;  %v7701_v38 = vpack.c.bf16 %v2025_v35, %v2024_v34  ;;  %v7068_v36 = vld [vmem:[%s8335_s30 + $0x70] sm:$0xff]  }
 0xe2d   : > { %v7703_v39 = vpack.c.bf16 %v2026_v37, %v2026_v37  ;;  %6620 = vmatprep.mubr.msk.bf16.mxu0 %vm782_vm1, %v7701_v38 }
 0xe2f   : > { %6621 = vmatmul.mubr.msk.bf16.vlgmr.msra.gmra.mrb[28].mxu0 %vm782_vm1, %v7703_v39 }
 0xe30   : > { %6625 = vmatpush3.bf16.msra.mxu0 %v7062_v13  ;;  %6628 = vmatprep.mubr.msk.bf16.mxu0 %vm782_vm1, %v7701_v38 }
 0xe31   : > { %6626 = vmatprep.subr.bf16.mxu0 %v7063_v40 }
 0xe34   : > { %6627 = vmatpush3.bf16.msra.mxu0 %v7063_v40 }
 0xe35   : > { %6632 = vmatprep.subr.bf16.mxu0 %v7064_v41 }
 0xe37   : > { %6629 = vmatmul.mubr.msk.bf16.vlgmr.msra.gmra.mrb[32].mxu0 %vm782_vm1, %v7703_v39 }
 0xe38   : > { %6633 = vmatpush3.bf16.msra.mxu0 %v7064_v41  ;;  %6636 = vmatprep.mubr.msk.bf16.mxu0 %vm782_vm1, %v7701_v38 }
 0xe39   : > { %6634 = vmatprep.subr.bf16.mxu0 %v7065_v42 }
 0xe3c   : > { %6635 = vmatpush3.bf16.msra.mxu0 %v7065_v42 }
 0xe3f   : > { %6637 = vmatmul.mubr.msk.bf16.vlgmr.msra.gmra.mrb[36].mxu0 %vm782_vm1, %v7703_v39 }
 0xf02   : > { %v6622_v43 = vpop.f32.mrb[28].mxu0 }
 0xf03   : > { %v2086_v44 = vpop.f32.mrb[29].mxu0  ;;  %v2231_v3 = vpack.c.bf16 %v6622_v43, %v6622_v43 }
 0xf04   : > { %v6623_v45 = vpop.f32.mrb[30].mxu0 }
 0xf05   : > { %v2089_v46 = vpop.f32.mrb[31].mxu0 }
 0xf06   : > { %v2230_v47 = vpack.c.bf16 %v2089_v46, %v2086_v44 }
 0xf08   : > { %6644 = vmatprep.mubr.msk.bf16.mxu0 %vm1047_vm3, %v2230_v47 }
 0xf0a   : > { %v6630_v48 = vpop.f32.mrb[32].mxu0 }
 0xf0b   : > { %v2151_v49 = vpop.f32.mrb[33].mxu0  ;;  %v2233_v54 = vpack.c.bf16 %v6630_v48, %v6630_v48 }
 0xf0c   : > { %v6631_v50 = vpop.f32.mrb[34].mxu0 }
 0xf0d   : > { %v2154_v51 = vpop.f32.mrb[35].mxu0  ;;  %v2244_v62 = vsel %vm1047_vm3, %v2233_v54, 0  ;;  %v7069_v50 = vld [vmem:[%s8335_s30 + $0x78] sm:$0xff]  }
 0xf0e   : > { %v2232_v53 = vpack.c.bf16 %v2154_v51, %v2151_v49  ;;  %v7070_v51 = vld [vmem:[%s8335_s30 + $0xb0] sm:$0xff]  }
 0xf10   : > { %v2241_v57 = vsel %vm1047_vm3, %v2232_v53, 0  ;;  %7004 = vmatprep.subr.msk.bf16.mxu0 %vm1047_vm3, %v2232_v53  ;;  %v7071_v53 = vld [vmem:[%s8335_s30 + $0xb8] sm:$0xff]  }
 0xf11   : > { %6641 = vmatpush3.bf16.xpose.msra.mxu0 %v2241_v57 }
 0xf12   : > { %v6638_v58 = vpop.f32.mrb[36].mxu0  ;;  %7005 = vmatprep.subr.msk.bf16.mxu0 %vm1047_vm3, %v2233_v54  ;;  %v7072_v54 = vld [vmem:[%s8337_s29 + $0x10] sm:$0xff]  }
 0xf13   : > { %v2216_v63 = vpop.f32.mrb[37].mxu0  ;;  %v2330_v25 = vpack.c.bf16 %v6638_v58, %v6638_v58 }
 0xf14   : > { %v6639_v59 = vpop.f32.mrb[38].mxu0 }
 0xf15   : > { %v2219_v60 = vpop.f32.mrb[39].mxu0  ;;  %v2338_v2 = vsel %vm1152_vm4, %v2330_v25, 0 }
 0xf16   : > { %v2329_v61 = vpack.c.bf16 %v2219_v60, %v2216_v63 }
 0xf18   : > { %6648 = vmatprep.subr.bf16.mxu1 %v2329_v61 }
 0xf19   : > { %6643 = vmatpush3.bf16.xpose.msra.mxu0 %v2244_v62  ;;  %6649 = vmatpush3.bf16.msra.mxu1 %v2329_v61 }
 0xf1a   : > { %7006 = vmatprep.subr.msk.bf16.mxu1 %vm1152_vm4, %v2330_v25  ;;  %6664 = vmatprep.subr.bf16.mxu0 %v7066_v0 }
 0xf1d   : > { %6651 = vmatpush3.bf16.msra.mxu1 %v2338_v2 }
 0xf1e   : > { %6656 = vmatprep.subr.bf16.mxu1 %v7068_v36 }
 0xf20   : > { %6645 = vmatmul.mubr.msk.bf16.vlgmr.msra.gmra.mrb[40].mxu0 %vm1047_vm3, %v2231_v3 }
 0xf21   : > { %6665 = vmatpush3.bf16.msra.mxu0 %v7066_v0  ;;  %6668 = vmatprep.mubr.msk.bf16.mxu0 %vm782_vm1, %v7701_v38 }
 0xf22   : > { %6666 = vmatprep.subr.bf16.mxu0 %v7067_v4 }
 0xf25   : > { %6667 = vmatpush3.bf16.msra.mxu0 %v7067_v4 }
 0xf28   : > { %6669 = vmatmul.mubr.msk.bf16.vlgmr.msra.gmra.mrb[44].mxu0 %vm782_vm1, %v7703_v39 }
 0xff3   : > { %v6646_v5 = vpop.f32.mrb[40].mxu0 }
 0xff4   : > { %v2280_v6 = vpop.f32.mrb[41].mxu0  ;;  %v2300_v11 = vsel %vm1108_vm5, %v6646_v5, -inf }
 0xff5   : > { %v6647_v7 = vpop.f32.mrb[42].mxu0  ;;  %v2294_v8 = vsel %vm1108_vm5, %v2280_v6, -inf }
 0xff6   : > { %2295 = vmax.xlane.f32.xlu0 %v2294_v8  ;;  %v2283_v9 = vpop.f32.mrb[43].mxu0 }
 0xff7   : > { %v2297_v10 = vsel %vm1108_vm5, %v2283_v9, -inf }
 0xff8   : > { %2298 = vmax.xlane.f32.xlu1 %v2297_v10 }
 0xffa   : > { %2301 = vmax.xlane.f32.xlu0 %v2300_v11 }
 0xffb   : > { %v6670_v12 = vpop.f32.mrb[44].mxu0 }
 0xffc   : > { %v2509_v13 = vpop.f32.mrb[45].mxu0  ;;  %v2591_v18 = vpack.c.bf16 %v6670_v12, %v6670_v12 }
 0xffd   : > { %v6671_v14 = vpop.f32.mrb[46].mxu0 }
 0xffe   : > { %v2512_v15 = vpop.f32.mrb[47].mxu0  ;;  %v2602_v21 = vsel %vm1047_vm3, %v2591_v18, 0 }
 0xfff   : > { %v2590_v17 = vpack.c.bf16 %v2512_v15, %v2509_v13 }
0x1001   : > { %v2599_v20 = vsel %vm1047_vm3, %v2590_v17, 0  ;;  %7007 = vmatprep.subr.msk.bf16.mxu0 %vm1047_vm3, %v2590_v17 }
0x1002   : > { %6681 = vmatpush3.bf16.xpose.msra.mxu0 %v2599_v20 }
0x1003   : > { %7008 = vmatprep.subr.msk.bf16.mxu0 %vm1047_vm3, %v2591_v18 }
0x100a   : > { %6683 = vmatpush3.bf16.xpose.msra.mxu0 %v2602_v21 }
0x100b   : > { %6702 = vmatprep.subr.bf16.mxu0 %v7072_v54 }
0x1083   : > { %v2296_v22 = vpop.xlane.xlu0 %2295 }
0x1084   : > { %v2303_v23 = vsub.f32 %v2280_v6, %v2296_v22 }
0x1085   : > { %v2299_v24 = vpop.xlane.xlu1 %2298 }
0x1086   : > { %v2306_v26 = vmul.f32 1.442695, %v2303_v23  ;;  %v2304_v27 = vsub.f32 %v2283_v9, %v2299_v24 }
0x1087   : > { %v2302_v28 = vpop.xlane.xlu0 %2301 }
0x1088   : > { %7184 = vpow2.f32 %v2306_v26  ;;  %v2308_v29 = vmul.f32 1.442695, %v2304_v27  ;;  %v2305_v30 = vsub.f32 %v6646_v5, %v2302_v28 }
0x108a   : > { %7186 = vpow2.f32 %v2308_v29  ;;  %v2310_v31 = vmul.f32 1.442695, %v2305_v30 }
0x108c   : > { %7188 = vpow2.f32 %v2310_v31 }
0x1092   : > { %v7185_v19 = vpop.eup %7184 }
0x1093   : > { %v2312_v32 = vsel %vm1108_vm5, %v7185_v19, 0.0 }
0x1094   : > { %v7187_v16 = vpop.eup %7186  ;;  %2313 = vadd.xlane.f32.xlu1 %v2312_v32 }
0x1095   : > { %v2315_v33 = vsel %vm1108_vm5, %v7187_v16, 0.0 }
0x1096   : > { %v7189_v34 = vpop.eup %7188  ;;  %2316 = vadd.xlane.f32.xlu0 %v2315_v33 }
0x1097   : > { %v2318_v35 = vsel %vm1108_vm5, %v7189_v34, 0.0 }
0x1098   : > { %2319 = vadd.xlane.f32.xlu1 %v2318_v35 }
0x1121   : > { %v2314_v37 = vpop.xlane.xlu1 %2313 }
0x1122   : > { %7190 = vrcp.f32 %v2314_v37  ;;  %v7073_v37 = vld [vmem:[%s8337_s29 + $0x18] sm:$0xff]  }
0x1123   : > { %v2317_v40 = vpop.xlane.xlu0 %2316 }
0x1124   : > { %7192 = vrcp.f32 %v2317_v40 }
0x1125   : > { %v2320_v41 = vpop.xlane.xlu1 %2319 }
0x1126   : > { %7194 = vrcp.f32 %v2320_v41 }
0x112c   : > { %v7191_v42 = vpop.eup %7190 }
0x112d   : > { %v2324_v44 = vmul.f32 %v7191_v42, %v7185_v19 }
0x112e   : > { %v7193_v43 = vpop.eup %7192 }
0x112f   : > { %v2325_v45 = vmul.f32 %v7193_v43, %v7187_v16 }
0x1130   : > { %v7195_v46 = vpop.eup %7194 }
0x1131   : > { %v2326_v47 = vmul.f32 %v7195_v46, %v7189_v34  ;;  %v2327_v48 = vpack.c.bf16 %v2325_v45, %v2324_v44 }
0x1133   : > { %6652 = vmatprep.mubr.msk.bf16.mxu1 %vm1108_vm5, %v2327_v48  ;;  %v2328_v49 = vpack.c.bf16 %v2326_v47, %v2326_v47 }
0x1135   : > { %6653 = vmatmul.mubr.msk.bf16.vlgmr.msra.gmra.mrb[32].mxu1 %vm1108_vm5, %v2328_v49 }
0x1136   : > { %6657 = vmatpush3.bf16.msra.mxu1 %v7068_v36  ;;  %6660 = vmatprep.mubr.msk.bf16.mxu1 %vm782_vm1, %v7701_v38 }
0x1137   : > { %6658 = vmatprep.subr.bf16.mxu1 %v7069_v50 }
0x113a   : > { %6659 = vmatpush3.bf16.msra.mxu1 %v7069_v50 }
0x113b   : > { %6672 = vmatprep.subr.bf16.mxu1 %v7070_v51 }
0x113d   : > { %6661 = vmatmul.mubr.msk.bf16.vlgmr.msra.gmra.mrb[36].mxu1 %vm782_vm1, %v7703_v39 }
0x113e   : > { %6673 = vmatpush3.bf16.msra.mxu1 %v7070_v51  ;;  %6676 = vmatprep.mubr.msk.bf16.mxu1 %vm782_vm1, %v7701_v38 }
0x113f   : > { %6674 = vmatprep.subr.bf16.mxu1 %v7071_v53 }
0x1142   : > { %6675 = vmatpush3.bf16.msra.mxu1 %v7071_v53 }
0x1145   : > { %6677 = vmatmul.mubr.msk.bf16.vlgmr.msra.gmra.mrb[40].mxu1 %vm782_vm1, %v7703_v39 }
0x1208   : > { %v6654_v57 = vpop.f32.mrb[32].mxu1 }
0x1209   : > { %v2374_v58 = vpop.f32.mrb[33].mxu1  ;;  %v2392_v7 = vpack.c.bf16 %v6654_v57, %v6654_v57 }
0x120a   : > { %v6655_v63 = vpop.f32.mrb[34].mxu1 }
0x120b   : > { %v2377_v59 = vpop.f32.mrb[35].mxu1 }
0x120c   : > { %v2391_v60 = vpack.c.bf16 %v2377_v59, %v2374_v58 }
0x1210   : > { %v6662_v61 = vpop.f32.mrb[36].mxu1 }
0x1211   : > { %v2444_v0 = vpop.f32.mrb[37].mxu1  ;;  %v2589_v2 = vpack.c.bf16 %v6662_v61, %v6662_v61 }
0x1212   : > { %v6663_v62 = vpop.f32.mrb[38].mxu1 }
0x1213   : > { %v2447_v25 = vpop.f32.mrb[39].mxu1 }
0x1214   : > { %v2588_v38 = vpack.c.bf16 %v2447_v25, %v2444_v0 }
0x1216   : > { %6684 = vmatprep.mubr.msk.bf16.mxu0 %vm1047_vm3, %v2588_v38 }
0x1217   : > { %6685 = vmatmul.mubr.msk.bf16.vlgmr.msra.gmra.mrb[48].mxu0 %vm1047_vm3, %v2589_v2 }
0x1218   : > { %v6678_v39 = vpop.f32.mrb[40].mxu1  ;;  %6704 = vmatprep.mubr.msk.bf16.mxu0 %vm1047_vm3, %v2391_v60  ;;  %6703 = vmatpush3.bf16.msra.mxu0 %v7072_v54 }
0x1219   : > { %v2574_v3 = vpop.f32.mrb[41].mxu1  ;;  %v2688_v8 = vpack.c.bf16 %v6678_v39, %v6678_v39 }
0x121a   : > { %v6679_v4 = vpop.f32.mrb[42].mxu1 }
0x121b   : > { %v2577_v5 = vpop.f32.mrb[43].mxu1  ;;  %v2696_v9 = vsel %vm1152_vm4, %v2688_v8, 0 }
0x121c   : > { %v2687_v6 = vpack.c.bf16 %v2577_v5, %v2574_v3 }
0x121e   : > { %6688 = vmatprep.subr.bf16.mxu1 %v2687_v6 }
0x121f   : > { %6689 = vmatpush3.bf16.msra.mxu1 %v2687_v6  ;;  %6705 = vmatmul.mubr.msk.bf16.vlgmr.msra.gmra.mrb[52].mxu0 %vm1047_vm3, %v2392_v7 }
0x1220   : > { %7009 = vmatprep.subr.msk.bf16.mxu1 %vm1152_vm4, %v2688_v8 }
0x1223   : > { %6691 = vmatpush3.bf16.msra.mxu1 %v2696_v9 }
0x1224   : > { %6696 = vmatprep.subr.bf16.mxu1 %v7073_v37 }
0x12ea   : > { %v6686_v10 = vpop.f32.mrb[48].mxu0 }
0x12eb   : > { %v2638_v11 = vpop.f32.mrb[49].mxu0  ;;  %v2658_v17 = vsel %vm1108_vm5, %v6686_v10, -inf }
0x12ec   : > { %v6687_v12 = vpop.f32.mrb[50].mxu0  ;;  %v2652_v13 = vsel %vm1108_vm5, %v2638_v11, -inf }
0x12ed   : > { %2653 = vmax.xlane.f32.xlu0 %v2652_v13  ;;  %v2641_v14 = vpop.f32.mrb[51].mxu0 }
0x12ee   : > { %v2655_v15 = vsel %vm1108_vm5, %v2641_v14, -inf }
0x12ef   : > { %2656 = vmax.xlane.f32.xlu1 %v2655_v15 }
0x12f1   : > { %2659 = vmax.xlane.f32.xlu0 %v2658_v17 }
0x12f2   : > { %v6706_v18 = vpop.f32.mrb[52].mxu0 }
0x12f3   : > { %v2857_v20 = vpop.f32.mrb[53].mxu0 }
0x12f4   : > { %v6707_v21 = vpop.f32.mrb[54].mxu0 }
0x12f5   : > { %v2860_v22 = vpop.f32.mrb[55].mxu0  ;;  %v7074_v21 = vld [vmem:[%s8300_s7 + $0x10] sm:$0xff]  }
0x137a   : > { %v2654_v23 = vpop.xlane.xlu0 %2653 }
0x137b   : > { %v2661_v24 = vsub.f32 %v2638_v11, %v2654_v23 }
0x137c   : > { %v2657_v26 = vpop.xlane.xlu1 %2656 }
0x137d   : > { %v2664_v27 = vmul.f32 1.442695, %v2661_v24  ;;  %v2662_v28 = vsub.f32 %v2641_v14, %v2657_v26 }
0x137e   : > { %v2660_v29 = vpop.xlane.xlu0 %2659 }
0x137f   : > { %7196 = vpow2.f32 %v2664_v27  ;;  %v2666_v30 = vmul.f32 1.442695, %v2662_v28  ;;  %v2663_v31 = vsub.f32 %v6686_v10, %v2660_v29 }
0x1381   : > { %7198 = vpow2.f32 %v2666_v30  ;;  %v2668_v19 = vmul.f32 1.442695, %v2663_v31 }
0x1383   : > { %7200 = vpow2.f32 %v2668_v19 }
0x1389   : > { %v7197_v32 = vpop.eup %7196 }
0x138a   : > { %v2670_v16 = vsel %vm1108_vm5, %v7197_v32, 0.0 }
0x138b   : > { %v7199_v33 = vpop.eup %7198  ;;  %2671 = vadd.xlane.f32.xlu1 %v2670_v16  ;;  %v5997_v16 = vld [vmem:[%s8336_s1 + $0x6] ss:$0 sm:$0xff] }
0x138c   : > { %v2673_v34 = vsel %vm1108_vm5, %v7199_v33, 0.0 }
0x138d   : > { %v7201_v35 = vpop.eup %7200  ;;  %2674 = vadd.xlane.f32.xlu0 %v2673_v34 }
0x138e   : > { %v2676_v36 = vsel %vm1108_vm5, %v7201_v35, 0.0 }
0x138f   : > { %2677 = vadd.xlane.f32.xlu1 %v2676_v36 }
0x1418   : > { %v2672_v40 = vpop.xlane.xlu1 %2671 }
0x1419   : > { %7202 = vrcp.f32 %v2672_v40  ;;  %v5998_v40 = vld [vmem:[%s8336_s1 + $0x7] ss:$0 sm:$0xff] }
0x141a   : > { %v2675_v41 = vpop.xlane.xlu0 %2674 }
0x141b   : > { %7204 = vrcp.f32 %v2675_v41 }
0x141c   : > { %v2678_v42 = vpop.xlane.xlu1 %2677 }
0x141d   : > { %7206 = vrcp.f32 %v2678_v42 }
0x1423   : > { %v7203_v43 = vpop.eup %7202 }
0x1424   : > { %v2682_v45 = vmul.f32 %v7203_v43, %v7197_v32 }
0x1425   : > { %v7205_v44 = vpop.eup %7204 }
0x1426   : > { %v2683_v46 = vmul.f32 %v7205_v44, %v7199_v33 }
0x1427   : > { %v7207_v47 = vpop.eup %7206 }
0x1428   : > { %v2684_v48 = vmul.f32 %v7207_v47, %v7201_v35  ;;  %v2685_v49 = vpack.c.bf16 %v2683_v46, %v2682_v45 }
0x142a   : > { %6692 = vmatprep.mubr.msk.bf16.mxu1 %vm1108_vm5, %v2685_v49  ;;  %v2686_v50 = vpack.c.bf16 %v2684_v48, %v2684_v48  ;;  %v7076_v49 = vld [vmem:[%s8301_s8 + $0x40] sm:$0xff]  }
0x142b   : > { %6716 = vmatprep.subr.bf16.mxu0 %v7076_v49 }
0x142c   : > { %6693 = vmatmul.mubr.msk.bf16.vlgmr.msra.gmra.mrb[44].mxu1 %vm1108_vm5, %v2686_v50  ;;  %6717 = vmatpush3.bf16.msra.mxu0 %v7076_v49  ;;  %v7077_v50 = vld [vmem:[%s8301_s8 + $0x48] sm:$0xff]  }
0x142d   : > { %6697 = vmatpush3.bf16.msra.mxu1 %v7073_v37  ;;  %6718 = vmatprep.subr.bf16.mxu0 %v7077_v50 }
0x142e   : > { %6708 = vmatprep.subr.bf16.mxu1 %v7074_v21 }
0x1430   : > { %6719 = vmatpush3.bf16.msra.mxu0 %v7077_v50 }
0x14ff   : > { %v6694_v51 = vpop.f32.mrb[44].mxu1 }
0x1500   : > { %v2732_v53 = vpop.f32.mrb[45].mxu1  ;;  %v2750_v63 = vpack.c.bf16 %v6694_v51, %v6694_v51  ;;  %v7078_v51 = vld [vmem:[%s8301_s8 + $0x50] sm:$0xff]  }
0x1501   : > { %v6695_v54 = vpop.f32.mrb[46].mxu1  ;;  %6720 = vmatprep.subr.bf16.mxu0 %v7078_v51 }
0x1502   : > { %v2735_v57 = vpop.f32.mrb[47].mxu1  ;;  %6721 = vmatpush3.bf16.msra.mxu0 %v7078_v51  ;;  %v7080_v54 = vld [vmem:[%s8301_s8 + $0x60] sm:$0xff]  }
0x1503   : > { %v2749_v58 = vpack.c.bf16 %v2735_v57, %v2732_v53  ;;  %v7079_v53 = vld [vmem:[%s8301_s8 + $0x58] sm:$0xff]   ;;  %v7081_v57 = vld [vmem:[%s8301_s8 + $0x68] sm:$0xff]  }
0x1504   : > { %6722 = vmatprep.subr.bf16.mxu0 %v7079_v53 }
0x1505   : > { %6698 = vmatprep.mubr.msk.bf16.mxu1 %vm1047_vm3, %v2749_v58  ;;  %v7082_v58 = vld [vmem:[%s8301_s8 + $0x70] sm:$0xff]  }
0x1506   : > { %6699 = vmatmul.mubr.msk.bf16.vlgmr.msra.gmra.mrb[48].mxu1 %vm1047_vm3, %v2750_v63  ;;  %6723 = vmatpush3.bf16.msra.mxu0 %v7079_v53  ;;  %v7083_v63 = vld [vmem:[%s8301_s8 + $0x78] sm:$0xff]   ;;  %v7887_v53 = vld [vmem:[%s8305_s12 + $0x8] sm:$0xff] }
0x1507   : > { %6709 = vmatpush3.bf16.msra.mxu1 %v7074_v21  ;;  %6724 = vmatprep.subr.bf16.mxu0 %v7080_v54 }
0x150a   : > { %6725 = vmatpush3.bf16.msra.mxu0 %v7080_v54 }
0x150b   : > { %6726 = vmatprep.subr.bf16.mxu0 %v7081_v57 }
0x150e   : > { %6727 = vmatpush3.bf16.msra.mxu0 %v7081_v57 }
0x150f   : > { %6728 = vmatprep.subr.bf16.mxu0 %v7082_v58 }
0x1512   : > { %6729 = vmatpush3.bf16.msra.mxu0 %v7082_v58  ;;  %v3272_v58 = vsel %vm782_vm1, %v7887_v53, 0.0 }
0x1513   : > { %6730 = vmatprep.subr.bf16.mxu0 %v7083_v63 }
0x1516   : > { %6731 = vmatpush3.bf16.msra.mxu0 %v7083_v63 }
0x15d9   : > { %v6700_v59 = vpop.f32.mrb[48].mxu1 }
0x15da   : > { %v2866_v60 = vadd.f32 %v6706_v18, %v6700_v59  ;;  %v2797_v61 = vpop.f32.mrb[49].mxu1  ;;  %v7084_v59 = vld [vmem:[%s8302_s9] sm:$0xff]  }
0x15db   : > { %v2858_v0 = vadd.f32 %v2857_v20, %v2797_v61  ;;  %v6701_v62 = vpop.f32.mrb[50].mxu1 }
0x15dc   : > { %v2800_v25 = vpop.f32.mrb[51].mxu1  ;;  %v2873_v4 = vadd.f32 %v2866_v60, %v7669_v55 }
0x15dd   : > { %v7799_v38 = vadd.f32 %v2858_v0, %v7666_v52  ;;  %v2861_v2 = vadd.f32 %v2860_v22, %v2800_v25  ;;  %v7075_v22 = vld [vmem:[%s8300_s7 + $0x18] sm:$0xff]  }
0x15de   : > { %v2884_v6 = vsel %vm782_vm1, %v2873_v4, 0.0  ;;  %6710 = vmatprep.subr.bf16.mxu1 %v7075_v22 }
0x15df   : > { %v2878_v39 = vsel %vm782_vm1, %v7799_v38, 0.0  ;;  %v2872_v3 = vadd.f32 %v2861_v2, %v7672_v56  ;;  %6711 = vmatpush3.bf16.msra.mxu1 %v7075_v22 }
0x15e0   : > { %2879 = vadd.xlane.f32.xlu0 %v2878_v39  ;;  %6736 = vmatprep.subr.bf16.mxu1 %v7317_v1 }
0x15e1   : > { %v2881_v5 = vsel %vm782_vm1, %v2872_v3, 0.0 }
0x15e2   : > { %2882 = vadd.xlane.f32.xlu1 %v2881_v5 }
0x15e4   : > { %2885 = vadd.xlane.f32.xlu0 %v2884_v6 }
0x166d   : > { %v2880_v7 = vpop.xlane.xlu0 %2879 }
0x166e   : > { %v2887_v8 = vmul.f32 0.03125, %v2880_v7 }
0x166f   : > { %v2883_v9 = vpop.xlane.xlu1 %2882 }
0x1670   : > { %v2890_v52 = vsub.f32 %v7799_v38, %v2887_v8  ;;  %v2888_v10 = vmul.f32 0.03125, %v2883_v9 }
0x1671   : > { %v2886_v11 = vpop.xlane.xlu0 %2885 }
0x1672   : > { %v2891_v12 = vsub.f32 %v2872_v3, %v2888_v10  ;;  %v2889_v13 = vmul.f32 0.03125, %v2886_v11  ;;  %v2893_v14 = vmul.f32 %v2890_v52, %v2890_v52 }
0x1674   : > { %v2892_v56 = vsub.f32 %v2873_v4, %v2889_v13  ;;  %v2896_v55 = vsel %vm782_vm1, %v2893_v14, 0.0  ;;  %v2894_v15 = vmul.f32 %v2891_v12, %v2891_v12 }
0x1675   : > { %2897 = vadd.xlane.f32.xlu1 %v2896_v55 }
0x1676   : > { %v2899_v17 = vsel %vm782_vm1, %v2894_v15, 0.0  ;;  %v2895_v18 = vmul.f32 %v2892_v56, %v2892_v56 }
0x1677   : > { %2900 = vadd.xlane.f32.xlu0 %v2899_v17 }
0x1678   : > { %v2902_v20 = vsel %vm782_vm1, %v2895_v18, 0.0 }
0x1679   : > { %2903 = vadd.xlane.f32.xlu1 %v2902_v20 }
0x1702   : > { %v2898_v23 = vpop.xlane.xlu1 %2897 }
0x1703   : > { %v2905_v24 = vmul.f32 0.03125, %v2898_v23 }
0x1704   : > { %v2901_v26 = vpop.xlane.xlu0 %2900 }
0x1705   : > { %v2908_v27 = vadd.f32 1e-05, %v2905_v24  ;;  %v2906_v28 = vmul.f32 0.03125, %v2901_v26 }
0x1706   : > { %v2904_v29 = vpop.xlane.xlu1 %2903 }
0x1707   : > { %7208 = vrsqrt.f32 %v2908_v27  ;;  %v2909_v30 = vadd.f32 1e-05, %v2906_v28  ;;  %v2907_v31 = vmul.f32 0.03125, %v2904_v29  ;;  %v7085_v29 = vld [vmem:[%s8302_s9 + $0x8] sm:$0xff]  }
0x1709   : > { %7210 = vrsqrt.f32 %v2909_v30  ;;  %v2910_v19 = vadd.f32 1e-05, %v2907_v31 }
0x170b   : > { %7212 = vrsqrt.f32 %v2910_v19  ;;  %v3211_v19 = vld [vmem:[%s8303_s10] sm:$0x3] }
0x1711   : > { %v7209_v32 = vpop.eup %7208 }
0x1712   : > { %v2914_v33 = vmul.f32 %v7209_v32, %v2890_v52 }
0x1713   : > { %v7211_v34 = vpop.eup %7210 }
0x1714   : > { %v2915_v35 = vmul.f32 %v7211_v34, %v2891_v12  ;;  %v2923_v36 = vmul.f32 %v5997_v16, %v2914_v33 }
0x1715   : > { %v7213_v37 = vpop.eup %7212 }
0x1716   : > { %v2916_v41 = vmul.f32 %v7213_v37, %v2892_v56  ;;  %v2924_v42 = vmul.f32 %v5997_v16, %v2915_v35  ;;  %v2932_v43 = vadd.f32 %v5998_v40, %v2923_v36  ;;  %v3219_v35 = vsel %vm3217_vm6, %v3211_v19, 0  ;;  %v7870_v36 = vld [vmem:[%s8305_s12] sm:$0xff] }
0x1717   : > { %v3269_v37 = vsel %vm782_vm1, %v7870_v36, 0.0 }
0x1718   : > { %v2933_v44 = vadd.f32 %v5998_v40, %v2924_v42  ;;  %v2925_v45 = vmul.f32 %v5997_v16, %v2916_v41  ;;  %3270 = vadd.xlane.f32.xlu1 %v3269_v37 }
0x171a   : > { %v2940_v46 = vpack.c.bf16 %v2933_v44, %v2932_v43  ;;  %v2934_v47 = vadd.f32 %v5998_v40, %v2925_v45 }
0x171c   : > { %6712 = vmatprep.mubr.msk.bf16.mxu1 %vm782_vm1, %v2940_v46  ;;  %v2941_v48 = vpack.c.bf16 %v2934_v47, %v2934_v47  ;;  %v3213_v46 = vld [vmem:[%s8304_s11] sm:$0xff] }
0x171e   : > { %6713 = vmatmul.mubr.msk.bf16.vlgmr.msra.gmra.mrb[52].mxu1 %vm782_vm1, %v2941_v48 }
0x171f   : > { %6740 = vmatprep.mubr.msk.bf16.mxu1 %vm7318_vm0, %v7317_v1  ;;  %6737 = vmatpush3.bf16.msra.mxu1 %v7084_v59 }
0x1720   : > { %6738 = vmatprep.subr.bf16.mxu1 %v7317_v1 }
0x1723   : > { %6739 = vmatpush3.bf16.msra.mxu1 %v7085_v29 }
0x1724   : > { %6744 = vmatprep.subr.bf16.mxu1 %v7317_v1 }
0x17a5   : > { %v3271_v44 = vpop.xlane.xlu1 %3270 }
0x17a6   : > { %v3276_v45 = vmul.f32 0.03125, %v3271_v44 }
0x17a8   : > { %v3279_v50 = vsub.f32 %v7870_v36, %v3276_v45 }
0x17aa   : > { %v3282_v63 = vmul.f32 %v3279_v50, %v3279_v50 }
0x17ac   : > { %v3287_v59 = vsel %vm782_vm1, %v3282_v63, 0.0 }
0x17f1   : > { %v6714_v60 = vpop.f32.mrb[52].mxu1 }
0x17f2   : > { %v3010_v61 = vmul.f32 %v6714_v60, %v6714_v60  ;;  %v2994_v0 = vpop.f32.mrb[53].mxu1 }
0x17f3   : > { %v3008_v62 = vmul.f32 %v2994_v0, %v2994_v0  ;;  %v6715_v25 = vpop.f32.mrb[54].mxu1 }
0x17f4   : > { %v3013_v2 = vmul.f32 %v6714_v60, %v3010_v61  ;;  %v2997_v39 = vpop.f32.mrb[55].mxu1 }
0x17f5   : > { %v3011_v3 = vmul.f32 %v3008_v62, %v2994_v0  ;;  %v3009_v4 = vmul.f32 %v2997_v39, %v2997_v39 }
0x17f6   : > { %v3016_v5 = vmul.f32 0.044715, %v3013_v2 }
0x17f7   : > { %v3014_v6 = vmul.f32 0.044715, %v3011_v3  ;;  %v3012_v7 = vmul.f32 %v3009_v4, %v2997_v39 }
0x17f8   : > { %v3019_v8 = vadd.f32 %v6714_v60, %v3016_v5 }
0x17f9   : > { %v3017_v9 = vadd.f32 %v3014_v6, %v2994_v0  ;;  %v3015_v52 = vmul.f32 0.044715, %v3012_v7  ;;  %v7086_v6 = vld [vmem:[%s8307_s14] sm:$0xff]  }
0x17fa   : > { %v3022_v10 = vmul.f32 0.7978846, %v3019_v8  ;;  %v7087_v7 = vld [vmem:[%s8307_s14 + $0x40] sm:$0xff]   ;;  %v7088_v8 = vld [vmem:[%s8307_s14 + $0x8] sm:$0xff]  }
0x17fb   : > { %v3020_v11 = vmul.f32 0.7978846, %v3017_v9  ;;  %v3018_v12 = vadd.f32 %v3015_v52, %v2997_v39  ;;  %6766 = vmatprep.subr.bf16.mxu0 %v7087_v7  ;;  %v7089_v9 = vld [vmem:[%s8307_s14 + $0x48] sm:$0xff]   ;;  %v7090_v52 = vld [vmem:[%s8307_s14 + $0x20] sm:$0xff]  }
0x17fc   : > { %7214 = vtanh.f32 %v3022_v10 }
0x17fd   : > { %7216 = vtanh.f32 %v3020_v11  ;;  %v3021_v13 = vmul.f32 0.7978846, %v3018_v12 }
0x17ff   : > { %7218 = vtanh.f32 %v3021_v13 }
0x1806   : > { %v7215_v14 = vpop.eup %7214 }
0x1807   : > { %v7217_v56 = vpop.eup %7216  ;;  %v3028_v55 = vadd.f32 1.0, %v7215_v14 }
0x1808   : > { %v3026_v15 = vadd.f32 1.0, %v7217_v56 }
0x1809   : > { %v7219_v17 = vpop.eup %7218  ;;  %v3031_v18 = vmul.f32 0.5, %v3028_v55 }
0x180a   : > { %v3029_v20 = vmul.f32 0.5, %v3026_v15  ;;  %v3027_v21 = vadd.f32 1.0, %v7219_v17 }
0x180b   : > { %v3034_v23 = vmul.f32 %v6714_v60, %v3031_v18 }
0x180c   : > { %v3030_v22 = vmul.f32 0.5, %v3027_v21  ;;  %v3032_v24 = vmul.f32 %v3029_v20, %v2994_v0  ;;  %v6036_v21 = vld [vmem:[%s8306_s13] ss:$0 sm:$0xff] }
0x180d   : > { %v3053_v28 = vpack.c.bf16 %v3034_v23, %v3034_v23 }
0x180e   : > { %v3033_v26 = vmul.f32 %v3030_v22, %v2997_v39 }
0x1810   : > { %v3052_v27 = vpack.c.bf16 %v3033_v26, %v3032_v24  ;;  %v6037_v26 = vld [vmem:[%s8306_s13 + $0x1] ss:$0 sm:$0xff] }
0x1812   : > { %6732 = vmatprep.mubr.bf16.mxu0 %v3052_v27 }
0x1813   : > { %6733 = vmatmul.mubr.bf16.vlgmr.msra.gmra.mrb[56].mxu0 %v3053_v28 }
0x1814   : > { %6767 = vmatpush3.bf16.msra.mxu0 %v7087_v7 }
0x1815   : > { %6768 = vmatprep.subr.bf16.mxu0 %v7089_v9 }
0x1818   : > { %6769 = vmatpush3.bf16.msra.mxu0 %v7089_v9 }
0x18e6   : > { %v6734_v30 = vpop.f32.mrb[56].mxu0 }
0x18e7   : > { %v3136_v31 = vpop.f32.mrb[57].mxu0 }
0x18e8   : > { %v3148_v32 = vadd.f32 %v3136_v31, %v7799_v38  ;;  %v6735_v16 = vpop.f32.mrb[58].mxu0 }
0x18e9   : > { %v3139_v33 = vpop.f32.mrb[59].mxu0 }
0x18ea   : > { %v3153_v34 = vpack.c.bf16 %v3148_v32, %v3148_v32 }
0x18ec   : > { %6741 = vmatmul.mubr.msk.bf16.vlgmr.msra.gmra.mrb[56].mxu1 %vm782_vm1, %v3153_v34  ;;  %v7091_v34 = vld [vmem:[%s8307_s14 + $0x28] sm:$0xff]  }
0x18ed   : > { %6745 = vmatpush3.bf16.msra.mxu1 %v3219_v35  ;;  %6746 = vmatprep.mubr.msk.bf16.mxu1 %vm7318_vm0, %v7317_v1 }
0x18ee   : > { %6750 = vmatprep.subr.bf16.mxu1 %v7086_v6 }
0x19bf   : > { %v3203_v38 = vpop.f32.mrb[56].mxu1 }
0x19c0   : > { %3210 = vst.msk [vmem:[%s694_s25] sm:$0xff] %vm3209_vm7, %v3203_v38  ;;  %v3212_v40 = vpack.c.bf16 %v3203_v38, %v3203_v38  ;;  %v6742_v41 = vpop.f32.mrb[57].mxu1 }
0x19c1   : > { %v3206_v42 = vpop.f32.mrb[58].mxu1 }
0x19c2   : > { %v6743_v43 = vpop.f32.mrb[59].mxu1  ;;  %6747 = vmatmul.mubr.msk.bf16.vlgmr.msra.gmra.mrb[60].mxu1 %vm3209_vm7, %v3212_v40 }
0x19c3   : > { %6751 = vmatpush3.bf16.msra.mxu1 %v7086_v6 }
0x19c4   : > { %6752 = vmatprep.subr.bf16.mxu1 %v7088_v8 }
0x19c7   : > { %6753 = vmatpush3.bf16.msra.mxu1 %v7088_v8 }
0x19c8   : > { %6758 = vmatprep.subr.bf16.mxu1 %v7090_v52 }
0x1a95   : > { %v3255_v47 = vpop.f32.mrb[60].mxu1 }
0x1a96   : > { %v7881_v48 = vadd.f32 %v3255_v47, %v3213_v46  ;;  %v6748_v49 = vpop.f32.mrb[61].mxu1 }
0x1a97   : > { %v3258_v51 = vpop.f32.mrb[62].mxu1 }
0x1a98   : > { %v6749_v54 = vpop.f32.mrb[63].mxu1  ;;  %v3266_v57 = vsel %vm782_vm1, %v7881_v48, 0.0 }
0x1a99   : > { %3267 = vadd.xlane.f32.xlu0 %v3266_v57 }
0x1a9d   : > { %3273 = vadd.xlane.f32.xlu0 %v3272_v58 }
0x1aa1   : > { %3288 = vadd.xlane.f32.xlu0 %v3287_v59 }
0x1b26   : > { %v3268_v60 = vpop.xlane.xlu0 %3267 }
0x1b27   : > { %v3275_v61 = vmul.f32 0.03125, %v3268_v60  ;;  %v7092_v60 = vld [vmem:[%s8307_s14 + $0x30] sm:$0xff]  }
0x1b29   : > { %v3278_v0 = vsub.f32 %v7881_v48, %v3275_v61 }
0x1b2a   : > { %v3274_v62 = vpop.xlane.xlu0 %3273 }
0x1b2b   : > { %v3277_v25 = vmul.f32 0.03125, %v3274_v62  ;;  %v3281_v2 = vmul.f32 %v3278_v0, %v3278_v0  ;;  %v7093_v62 = vld [vmem:[%s8307_s14 + $0x38] sm:$0xff]  }
0x1b2d   : > { %v3280_v39 = vsub.f32 %v7887_v53, %v3277_v25  ;;  %v3284_v3 = vsel %vm782_vm1, %v3281_v2, 0.0 }
0x1b2e   : > { %3285 = vadd.xlane.f32.xlu1 %v3284_v3  ;;  %v3289_v10 = vpop.xlane.xlu0 %3288 }
0x1b2f   : > { %v3283_v4 = vmul.f32 %v3280_v39, %v3280_v39  ;;  %v3294_v11 = vmul.f32 0.03125, %v3289_v10 }
0x1b31   : > { %v3290_v5 = vsel %vm782_vm1, %v3283_v4, 0.0  ;;  %v3297_v12 = vadd.f32 1e-05, %v3294_v11 }
0x1b32   : > { %3291 = vadd.xlane.f32.xlu1 %v3290_v5 }
0x1b33   : > { %7220 = vrsqrt.f32 %v3297_v12 }
0x1b3d   : > { %v7221_v18 = vpop.eup %7220 }
0x1b3e   : > { %v3303_v20 = vmul.f32 %v7221_v18, %v3279_v50 }
0x1b40   : > { %v3312_v23 = vmul.f32 %v6036_v21, %v3303_v20 }
0x1b42   : > { %v3321_v29 = vadd.f32 %v6037_v26, %v3312_v23 }
0x1bbb   : > { %v3286_v13 = vpop.xlane.xlu1 %3285 }
0x1bbc   : > { %v3293_v14 = vmul.f32 0.03125, %v3286_v13 }
0x1bbe   : > { %v3296_v56 = vadd.f32 1e-05, %v3293_v14 }
0x1bbf   : > { %v3292_v55 = vpop.xlane.xlu1 %3291 }
0x1bc0   : > { %7222 = vrsqrt.f32 %v3296_v56  ;;  %v3295_v15 = vmul.f32 0.03125, %v3292_v55 }
0x1bc2   : > { %v3298_v17 = vadd.f32 1e-05, %v3295_v15 }
0x1bc4   : > { %7224 = vrsqrt.f32 %v3298_v17 }
0x1bca   : > { %v7223_v22 = vpop.eup %7222 }
0x1bcb   : > { %v3302_v24 = vmul.f32 %v7223_v22, %v3278_v0 }
0x1bcd   : > { %v3311_v27 = vmul.f32 %v6036_v21, %v3302_v24 }
0x1bce   : > { %v7225_v28 = vpop.eup %7224 }
0x1bcf   : > { %v3320_v30 = vadd.f32 %v6037_v26, %v3311_v27  ;;  %v3304_v31 = vmul.f32 %v7225_v28, %v3280_v39 }
0x1bd1   : > { %v3313_v19 = vmul.f32 %v6036_v21, %v3304_v31  ;;  %v7919_v32 = vpack.c.bf16 %v3321_v29, %v3320_v30  ;;  %v7094_v30 = vld [vmem:[%s8307_s14 + $0x10] sm:$0xff]  }
0x1bd3   : > { %v3322_v16 = vadd.f32 %v6037_v26, %v3313_v19  ;;  %6754 = vmatprep.mubr.msk.bf16.mxu1 %vm782_vm1, %v7919_v32  ;;  %6770 = vmatprep.mubr.msk.bf16.mxu0 %vm782_vm1, %v7919_v32 }
0x1bd5   : > { %v7925_v33 = vpack.c.bf16 %v3322_v16, %v3322_v16 }
0x1bd7   : > { %6755 = vmatmul.mubr.msk.bf16.vlgmr.msra.gmra.mrb[64].mxu1 %vm782_vm1, %v7925_v33  ;;  %6771 = vmatmul.mubr.msk.bf16.vlgmr.msra.gmra.mrb[60].mxu0 %vm782_vm1, %v7925_v33 }
0x1bd8   : > { %6759 = vmatpush3.bf16.msra.mxu1 %v7090_v52  ;;  %6762 = vmatprep.mubr.msk.bf16.mxu1 %vm782_vm1, %v7919_v32 }
0x1bd9   : > { %6760 = vmatprep.subr.bf16.mxu1 %v7091_v34 }
0x1bdc   : > { %6761 = vmatpush3.bf16.msra.mxu1 %v7091_v34 }
0x1bdf   : > { %6763 = vmatmul.mubr.msk.bf16.vlgmr.msra.gmra.mrb[68].mxu1 %vm782_vm1, %v7925_v33 }
0x1caa   : > { %v6756_v35 = vpop.f32.mrb[64].mxu1  ;;  %v6772_v37 = vpop.f32.mrb[60].mxu0 }
0x1cab   : > { %v3381_v38 = vpop.f32.mrb[65].mxu1  ;;  %v3511_v40 = vpop.f32.mrb[61].mxu0  ;;  %v3625_v47 = vpack.c.bf16 %v6772_v37, %v6772_v37  ;;  %v3526_v0 = vpack.c.bf16 %v6756_v35, %v6756_v35 }
0x1cac   : > { %v6757_v41 = vpop.f32.mrb[66].mxu1  ;;  %v6773_v42 = vpop.f32.mrb[62].mxu0 }
0x1cad   : > { %v3384_v43 = vpop.f32.mrb[67].mxu1  ;;  %v3514_v44 = vpop.f32.mrb[63].mxu0  ;;  %v3633_v51 = vsel %vm1152_vm4, %v3625_v47, 0 }
0x1cae   : > { %v3525_v45 = vpack.c.bf16 %v3384_v43, %v3381_v38  ;;  %v3624_v46 = vpack.c.bf16 %v3514_v44, %v3511_v40  ;;  %v7095_v44 = vld [vmem:[%s8307_s14 + $0x18] sm:$0xff]  }
0x1cb0   : > { %6778 = vmatprep.mubr.msk.bf16.mxu1 %vm1047_vm3, %v3525_v45  ;;  %6782 = vmatprep.subr.bf16.mxu0 %v3624_v46  ;;  %v7096_v45 = vld [vmem:[%s8307_s14 + $0x50] sm:$0xff]  }
0x1cb1   : > { %6783 = vmatpush3.bf16.msra.mxu0 %v3624_v46  ;;  %v7097_v46 = vld [vmem:[%s8307_s14 + $0x58] sm:$0xff]  }
0x1cb2   : > { %v6764_v49 = vpop.f32.mrb[68].mxu1  ;;  %7012 = vmatprep.subr.msk.bf16.mxu0 %vm1152_vm4, %v3625_v47  ;;  %v7098_v47 = vld [vmem:[%s8308_s15] sm:$0xff]  }
0x1cb3   : > { %v3446_v50 = vpop.f32.mrb[69].mxu1  ;;  %v3528_v63 = vpack.c.bf16 %v6764_v49, %v6764_v49 }
0x1cb4   : > { %v6765_v54 = vpop.f32.mrb[70].mxu1 }
0x1cb5   : > { %v3449_v57 = vpop.f32.mrb[71].mxu1  ;;  %6785 = vmatpush3.bf16.msra.mxu0 %v3633_v51  ;;  %v3539_v61 = vsel %vm1047_vm3, %v3528_v63, 0 }
0x1cb6   : > { %v3527_v58 = vpack.c.bf16 %v3449_v57, %v3446_v50  ;;  %6790 = vmatprep.subr.bf16.mxu0 %v7094_v30 }
0x1cb8   : > { %v3536_v59 = vsel %vm1047_vm3, %v3527_v58, 0  ;;  %7010 = vmatprep.subr.msk.bf16.mxu1 %vm1047_vm3, %v3527_v58 }
0x1cb9   : > { %6775 = vmatpush3.bf16.xpose.msra.mxu1 %v3536_v59 }
0x1cba   : > { %7011 = vmatprep.subr.msk.bf16.mxu1 %vm1047_vm3, %v3528_v63 }
0x1cc1   : > { %6777 = vmatpush3.bf16.xpose.msra.mxu1 %v3539_v61 }
0x1cc2   : > { %6798 = vmatprep.subr.bf16.mxu1 %v7092_v60 }
0x1cc8   : > { %6779 = vmatmul.mubr.msk.bf16.vlgmr.msra.gmra.mrb[72].mxu1 %vm1047_vm3, %v3526_v0 }
0x1cc9   : > { %6799 = vmatpush3.bf16.msra.mxu1 %v7092_v60  ;;  %6802 = vmatprep.mubr.msk.bf16.mxu1 %vm782_vm1, %v7919_v32 }
0x1cca   : > { %6800 = vmatprep.subr.bf16.mxu1 %v7093_v62 }
0x1ccd   : > { %6801 = vmatpush3.bf16.msra.mxu1 %v7093_v62 }
0x1cd0   : > { %6803 = vmatmul.mubr.msk.bf16.vlgmr.msra.gmra.mrb[76].mxu1 %vm782_vm1, %v7925_v33 }
0x1d9b   : > { %v6780_v25 = vpop.f32.mrb[72].mxu1 }
0x1d9c   : > { %v3575_v2 = vpop.f32.mrb[73].mxu1  ;;  %v3595_v6 = vsel %vm1108_vm5, %v6780_v25, -inf }
0x1d9d   : > { %v6781_v39 = vpop.f32.mrb[74].mxu1  ;;  %v3589_v3 = vsel %vm1108_vm5, %v3575_v2, -inf }
0x1d9e   : > { %3590 = vmax.xlane.f32.xlu0 %v3589_v3  ;;  %v3578_v4 = vpop.f32.mrb[75].mxu1 }
0x1d9f   : > { %v3592_v5 = vsel %vm1108_vm5, %v3578_v4, -inf }
0x1da0   : > { %3593 = vmax.xlane.f32.xlu1 %v3592_v5 }
0x1da2   : > { %3596 = vmax.xlane.f32.xlu0 %v3595_v6 }
0x1da3   : > { %v6804_v7 = vpop.f32.mrb[76].mxu1 }
0x1da4   : > { %v3803_v8 = vpop.f32.mrb[77].mxu1  ;;  %v3885_v11 = vpack.c.bf16 %v6804_v7, %v6804_v7 }
0x1da5   : > { %v6805_v9 = vpop.f32.mrb[78].mxu1 }
0x1da6   : > { %v3806_v52 = vpop.f32.mrb[79].mxu1  ;;  %v3896_v13 = vsel %vm1047_vm3, %v3885_v11, 0 }
0x1da7   : > { %v3884_v10 = vpack.c.bf16 %v3806_v52, %v3803_v8 }
0x1da9   : > { %v3893_v12 = vsel %vm1047_vm3, %v3884_v10, 0  ;;  %7013 = vmatprep.subr.msk.bf16.mxu1 %vm1047_vm3, %v3884_v10 }
0x1daa   : > { %6815 = vmatpush3.bf16.xpose.msra.mxu1 %v3893_v12 }
0x1dab   : > { %7014 = vmatprep.subr.msk.bf16.mxu1 %vm1047_vm3, %v3885_v11 }
0x1db2   : > { %6817 = vmatpush3.bf16.xpose.msra.mxu1 %v3896_v13 }
0x1db3   : > { %6836 = vmatprep.subr.bf16.mxu1 %v7098_v47 }
0x1e2b   : > { %v3591_v14 = vpop.xlane.xlu0 %3590 }
0x1e2c   : > { %v3598_v56 = vsub.f32 %v3575_v2, %v3591_v14 }
0x1e2d   : > { %v3594_v55 = vpop.xlane.xlu1 %3593 }
0x1e2e   : > { %v3601_v15 = vmul.f32 1.442695, %v3598_v56  ;;  %v3599_v17 = vsub.f32 %v3578_v4, %v3594_v55 }
0x1e2f   : > { %v3597_v18 = vpop.xlane.xlu0 %3596 }
0x1e30   : > { %7226 = vpow2.f32 %v3601_v15  ;;  %v3603_v20 = vmul.f32 1.442695, %v3599_v17  ;;  %v3600_v21 = vsub.f32 %v6780_v25, %v3597_v18 }
0x1e32   : > { %7228 = vpow2.f32 %v3603_v20  ;;  %v3605_v22 = vmul.f32 1.442695, %v3600_v21 }
0x1e34   : > { %7230 = vpow2.f32 %v3605_v22 }
0x1e3a   : > { %v7227_v23 = vpop.eup %7226 }
0x1e3b   : > { %v3607_v24 = vsel %vm1108_vm5, %v7227_v23, 0.0 }
0x1e3c   : > { %v7229_v26 = vpop.eup %7228  ;;  %3608 = vadd.xlane.f32.xlu1 %v3607_v24 }
0x1e3d   : > { %v3610_v27 = vsel %vm1108_vm5, %v7229_v26, 0.0 }
0x1e3e   : > { %v7231_v28 = vpop.eup %7230  ;;  %3611 = vadd.xlane.f32.xlu0 %v3610_v27 }
0x1e3f   : > { %v3613_v29 = vsel %vm1108_vm5, %v7231_v28, 0.0 }
0x1e40   : > { %3614 = vadd.xlane.f32.xlu1 %v3613_v29 }
0x1ec9   : > { %v3609_v31 = vpop.xlane.xlu1 %3608 }
0x1eca   : > { %7232 = vrcp.f32 %v3609_v31  ;;  %v7099_v31 = vld [vmem:[%s8308_s15 + $0x8] sm:$0xff]  }
0x1ecb   : > { %v3612_v19 = vpop.xlane.xlu0 %3611 }
0x1ecc   : > { %7234 = vrcp.f32 %v3612_v19 }
0x1ecd   : > { %v3615_v16 = vpop.xlane.xlu1 %3614 }
0x1ece   : > { %7236 = vrcp.f32 %v3615_v16 }
0x1ed4   : > { %v7233_v34 = vpop.eup %7232 }
0x1ed5   : > { %v3619_v37 = vmul.f32 %v7233_v34, %v7227_v23 }
0x1ed6   : > { %v7235_v35 = vpop.eup %7234 }
0x1ed7   : > { %v3620_v38 = vmul.f32 %v7235_v35, %v7229_v26 }
0x1ed8   : > { %v7237_v40 = vpop.eup %7236 }
0x1ed9   : > { %v3621_v41 = vmul.f32 %v7237_v40, %v7231_v28  ;;  %v3622_v42 = vpack.c.bf16 %v3620_v38, %v3619_v37 }
0x1edb   : > { %6786 = vmatprep.mubr.msk.bf16.mxu0 %vm1108_vm5, %v3622_v42  ;;  %v3623_v43 = vpack.c.bf16 %v3621_v41, %v3621_v41 }
0x1edd   : > { %6787 = vmatmul.mubr.msk.bf16.vlgmr.msra.gmra.mrb[64].mxu0 %vm1108_vm5, %v3623_v43 }
0x1ede   : > { %6791 = vmatpush3.bf16.msra.mxu0 %v7094_v30  ;;  %6794 = vmatprep.mubr.msk.bf16.mxu0 %vm782_vm1, %v7919_v32 }
0x1edf   : > { %6792 = vmatprep.subr.bf16.mxu0 %v7095_v44 }
0x1ee2   : > { %6793 = vmatpush3.bf16.msra.mxu0 %v7095_v44 }
0x1ee3   : > { %6806 = vmatprep.subr.bf16.mxu0 %v7096_v45 }
0x1ee5   : > { %6795 = vmatmul.mubr.msk.bf16.vlgmr.msra.gmra.mrb[68].mxu0 %vm782_vm1, %v7925_v33 }
0x1ee6   : > { %6807 = vmatpush3.bf16.msra.mxu0 %v7096_v45  ;;  %6810 = vmatprep.mubr.msk.bf16.mxu0 %vm782_vm1, %v7919_v32 }
0x1ee7   : > { %6808 = vmatprep.subr.bf16.mxu0 %v7097_v46 }
0x1eea   : > { %6809 = vmatpush3.bf16.msra.mxu0 %v7097_v46 }
0x1eed   : > { %6811 = vmatmul.mubr.msk.bf16.vlgmr.msra.gmra.mrb[72].mxu0 %vm782_vm1, %v7925_v33 }
0x1fb0   : > { %v6788_v49 = vpop.f32.mrb[64].mxu0 }
0x1fb1   : > { %v3669_v50 = vpop.f32.mrb[65].mxu0  ;;  %v3686_v39 = vpack.c.bf16 %v6788_v49, %v6788_v49 }
0x1fb2   : > { %v6789_v51 = vpop.f32.mrb[66].mxu0 }
0x1fb3   : > { %v3672_v54 = vpop.f32.mrb[67].mxu0 }
0x1fb4   : > { %v3685_v57 = vpack.c.bf16 %v3672_v54, %v3669_v50 }
0x1fb8   : > { %v6796_v58 = vpop.f32.mrb[68].mxu0 }
0x1fb9   : > { %v3738_v63 = vpop.f32.mrb[69].mxu0  ;;  %v3883_v61 = vpack.c.bf16 %v6796_v58, %v6796_v58 }
0x1fba   : > { %v6797_v59 = vpop.f32.mrb[70].mxu0 }
0x1fbb   : > { %v3741_v60 = vpop.f32.mrb[71].mxu0 }
0x1fbc   : > { %v3882_v32 = vpack.c.bf16 %v3741_v60, %v3738_v63 }
0x1fbe   : > { %6818 = vmatprep.mubr.msk.bf16.mxu1 %vm1047_vm3, %v3882_v32 }
0x1fbf   : > { %6819 = vmatmul.mubr.msk.bf16.vlgmr.msra.gmra.mrb[80].mxu1 %vm1047_vm3, %v3883_v61 }
0x1fc0   : > { %v6812_v33 = vpop.f32.mrb[72].mxu0  ;;  %6838 = vmatprep.mubr.msk.bf16.mxu1 %vm1047_vm3, %v3685_v57  ;;  %6837 = vmatpush3.bf16.msra.mxu1 %v7098_v47 }
0x1fc1   : > { %v3868_v0 = vpop.f32.mrb[73].mxu0  ;;  %v3982_v3 = vpack.c.bf16 %v6812_v33, %v6812_v33 }
0x1fc2   : > { %v6813_v62 = vpop.f32.mrb[74].mxu0 }
0x1fc3   : > { %v3871_v25 = vpop.f32.mrb[75].mxu0  ;;  %v3990_v4 = vsel %vm1152_vm4, %v3982_v3, 0 }
0x1fc4   : > { %v3981_v2 = vpack.c.bf16 %v3871_v25, %v3868_v0 }
0x1fc6   : > { %6822 = vmatprep.subr.bf16.mxu0 %v3981_v2 }
0x1fc7   : > { %6823 = vmatpush3.bf16.msra.mxu0 %v3981_v2  ;;  %6839 = vmatmul.mubr.msk.bf16.vlgmr.msra.gmra.mrb[84].mxu1 %vm1047_vm3, %v3686_v39 }
0x1fc8   : > { %7015 = vmatprep.subr.msk.bf16.mxu0 %vm1152_vm4, %v3982_v3 }
0x1fcb   : > { %6825 = vmatpush3.bf16.msra.mxu0 %v3990_v4 }
0x1fcc   : > { %6830 = vmatprep.subr.bf16.mxu0 %v7099_v31 }
0x2092   : > { %v6820_v5 = vpop.f32.mrb[80].mxu1 }
0x2093   : > { %v3932_v6 = vpop.f32.mrb[81].mxu1  ;;  %v3952_v10 = vsel %vm1108_vm5, %v6820_v5, -inf }
0x2094   : > { %v6821_v7 = vpop.f32.mrb[82].mxu1  ;;  %v3946_v8 = vsel %vm1108_vm5, %v3932_v6, -inf }
0x2095   : > { %3947 = vmax.xlane.f32.xlu0 %v3946_v8  ;;  %v3935_v9 = vpop.f32.mrb[83].mxu1 }
0x2096   : > { %v3949_v52 = vsel %vm1108_vm5, %v3935_v9, -inf }
0x2097   : > { %3950 = vmax.xlane.f32.xlu1 %v3949_v52 }
0x2099   : > { %3953 = vmax.xlane.f32.xlu0 %v3952_v10 }
0x209a   : > { %v6840_v11 = vpop.f32.mrb[84].mxu1 }
0x209b   : > { %v4151_v12 = vpop.f32.mrb[85].mxu1 }
0x209c   : > { %v6841_v13 = vpop.f32.mrb[86].mxu1 }
0x209d   : > { %v4154_v14 = vpop.f32.mrb[87].mxu1  ;;  %v7100_v13 = vld [vmem:[%s8309_s16] sm:$0xff]  }
0x2122   : > { %v3948_v56 = vpop.xlane.xlu0 %3947 }
0x2123   : > { %v3955_v55 = vsub.f32 %v3932_v6, %v3948_v56 }
0x2124   : > { %v3951_v15 = vpop.xlane.xlu1 %3950 }
0x2125   : > { %v3958_v17 = vmul.f32 1.442695, %v3955_v55  ;;  %v3956_v18 = vsub.f32 %v3935_v9, %v3951_v15 }
0x2126   : > { %v3954_v20 = vpop.xlane.xlu0 %3953 }
0x2127   : > { %7238 = vpow2.f32 %v3958_v17  ;;  %v3960_v21 = vmul.f32 1.442695, %v3956_v18  ;;  %v3957_v22 = vsub.f32 %v6820_v5, %v3954_v20 }
0x2129   : > { %7240 = vpow2.f32 %v3960_v21  ;;  %v3962_v23 = vmul.f32 1.442695, %v3957_v22 }
0x212b   : > { %7242 = vpow2.f32 %v3962_v23 }
0x2131   : > { %v7239_v24 = vpop.eup %7238 }
0x2132   : > { %v3964_v26 = vsel %vm1108_vm5, %v7239_v24, 0.0 }
0x2133   : > { %v7241_v27 = vpop.eup %7240  ;;  %3965 = vadd.xlane.f32.xlu1 %v3964_v26  ;;  %v6100_v26 = vld [vmem:[%s8306_s13 + $0x2] ss:$0 sm:$0xff] }
0x2134   : > { %v3967_v28 = vsel %vm1108_vm5, %v7241_v27, 0.0 }
0x2135   : > { %v7243_v29 = vpop.eup %7242  ;;  %3968 = vadd.xlane.f32.xlu0 %v3967_v28 }
0x2136   : > { %v3970_v30 = vsel %vm1108_vm5, %v7243_v29, 0.0 }
0x2137   : > { %3971 = vadd.xlane.f32.xlu1 %v3970_v30 }
0x21c0   : > { %v3966_v19 = vpop.xlane.xlu1 %3965 }
0x21c1   : > { %7244 = vrcp.f32 %v3966_v19  ;;  %v6101_v19 = vld [vmem:[%s8306_s13 + $0x3] ss:$0 sm:$0xff] }
0x21c2   : > { %v3969_v16 = vpop.xlane.xlu0 %3968 }
0x21c3   : > { %7246 = vrcp.f32 %v3969_v16 }
0x21c4   : > { %v3972_v34 = vpop.xlane.xlu1 %3971 }
0x21c5   : > { %7248 = vrcp.f32 %v3972_v34 }
0x21cb   : > { %v7245_v35 = vpop.eup %7244 }
0x21cc   : > { %v3976_v38 = vmul.f32 %v7245_v35, %v7239_v24 }
0x21cd   : > { %v7247_v37 = vpop.eup %7246 }
0x21ce   : > { %v3977_v40 = vmul.f32 %v7247_v37, %v7241_v27 }
0x21cf   : > { %v7249_v41 = vpop.eup %7248 }
0x21d0   : > { %v3978_v42 = vmul.f32 %v7249_v41, %v7243_v29  ;;  %v3979_v43 = vpack.c.bf16 %v3977_v40, %v3976_v38 }
0x21d2   : > { %6826 = vmatprep.mubr.msk.bf16.mxu0 %vm1108_vm5, %v3979_v43  ;;  %v3980_v44 = vpack.c.bf16 %v3978_v42, %v3978_v42  ;;  %v7102_v43 = vld [vmem:[%s8310_s17] sm:$0xff]  }
0x21d3   : > { %6850 = vmatprep.subr.bf16.mxu1 %v7102_v43 }
0x21d4   : > { %6827 = vmatmul.mubr.msk.bf16.vlgmr.msra.gmra.mrb[76].mxu0 %vm1108_vm5, %v3980_v44  ;;  %6851 = vmatpush3.bf16.msra.mxu1 %v7102_v43  ;;  %v7103_v44 = vld [vmem:[%s8310_s17 + $0x8] sm:$0xff]  }
0x21d5   : > { %6831 = vmatpush3.bf16.msra.mxu0 %v7099_v31  ;;  %6852 = vmatprep.subr.bf16.mxu1 %v7103_v44 }
0x21d6   : > { %6842 = vmatprep.subr.bf16.mxu0 %v7100_v13 }
0x21d8   : > { %6853 = vmatpush3.bf16.msra.mxu1 %v7103_v44 }
0x22a7   : > { %v6828_v45 = vpop.f32.mrb[76].mxu0 }
0x22a8   : > { %v4026_v46 = vpop.f32.mrb[77].mxu0  ;;  %v4044_v51 = vpack.c.bf16 %v6828_v45, %v6828_v45  ;;  %v7104_v45 = vld [vmem:[%s8310_s17 + $0x10] sm:$0xff]  }
0x22a9   : > { %v6829_v47 = vpop.f32.mrb[78].mxu0  ;;  %6854 = vmatprep.subr.bf16.mxu1 %v7104_v45 }
0x22aa   : > { %v4029_v49 = vpop.f32.mrb[79].mxu0  ;;  %6855 = vmatpush3.bf16.msra.mxu1 %v7104_v45  ;;  %v7106_v47 = vld [vmem:[%s8310_s17 + $0x20] sm:$0xff]  }
0x22ab   : > { %v4043_v50 = vpack.c.bf16 %v4029_v49, %v4026_v46  ;;  %v7105_v46 = vld [vmem:[%s8310_s17 + $0x18] sm:$0xff]   ;;  %v7107_v49 = vld [vmem:[%s8310_s17 + $0x28] sm:$0xff]  }
0x22ac   : > { %6856 = vmatprep.subr.bf16.mxu1 %v7105_v46 }
0x22ad   : > { %6832 = vmatprep.mubr.msk.bf16.mxu0 %vm1047_vm3, %v4043_v50  ;;  %v7108_v50 = vld [vmem:[%s8310_s17 + $0x30] sm:$0xff]  }
0x22ae   : > { %6833 = vmatmul.mubr.msk.bf16.vlgmr.msra.gmra.mrb[80].mxu0 %vm1047_vm3, %v4044_v51  ;;  %6857 = vmatpush3.bf16.msra.mxu1 %v7105_v46  ;;  %v7109_v51 = vld [vmem:[%s8310_s17 + $0x38] sm:$0xff]   ;;  %v7110_v46 = vld [vmem:[%s8307_s14 + $0x60] sm:$0xff]  }
0x22af   : > { %6843 = vmatpush3.bf16.msra.mxu0 %v7100_v13  ;;  %6858 = vmatprep.subr.bf16.mxu1 %v7106_v47 }
0x22b2   : > { %6859 = vmatpush3.bf16.msra.mxu1 %v7106_v47  ;;  %v7111_v47 = vld [vmem:[%s8307_s14 + $0x68] sm:$0xff]  }
0x22b3   : > { %6860 = vmatprep.subr.bf16.mxu1 %v7107_v49 }
0x22b6   : > { %6861 = vmatpush3.bf16.msra.mxu1 %v7107_v49  ;;  %v7112_v49 = vld [vmem:[%s8307_s14 + $0x80] sm:$0xff]  }
0x22b7   : > { %6862 = vmatprep.subr.bf16.mxu1 %v7108_v50 }
0x22ba   : > { %6863 = vmatpush3.bf16.msra.mxu1 %v7108_v50 }
0x22bb   : > { %6864 = vmatprep.subr.bf16.mxu1 %v7109_v51 }
0x22be   : > { %6865 = vmatpush3.bf16.msra.mxu1 %v7109_v51 }
0x2381   : > { %v6834_v54 = vpop.f32.mrb[80].mxu0 }
0x2382   : > { %v4160_v57 = vadd.f32 %v6840_v11, %v6834_v54  ;;  %v4091_v58 = vpop.f32.mrb[81].mxu0 }
0x2383   : > { %v4152_v63 = vadd.f32 %v4151_v12, %v4091_v58  ;;  %v6835_v59 = vpop.f32.mrb[82].mxu0 }
0x2384   : > { %v4094_v60 = vpop.f32.mrb[83].mxu0  ;;  %v8014_v33 = vadd.f32 %v4160_v57, %v7887_v53 }
0x2385   : > { %v8011_v32 = vadd.f32 %v4152_v63, %v7881_v48  ;;  %v4155_v61 = vadd.f32 %v4154_v14, %v4094_v60  ;;  %v7101_v14 = vld [vmem:[%s8309_s16 + $0x8] sm:$0xff]  }
0x2386   : > { %v4178_v2 = vsel %vm782_vm1, %v8014_v33, 0.0  ;;  %6844 = vmatprep.subr.bf16.mxu0 %v7101_v14 }
0x2387   : > { %v8017_v0 = vadd.f32 %v4155_v61, %v7870_v36  ;;  %v4172_v62 = vsel %vm782_vm1, %v8011_v32, 0.0  ;;  %6845 = vmatpush3.bf16.msra.mxu0 %v7101_v14 }
0x2388   : > { %4173 = vadd.xlane.f32.xlu0 %v4172_v62  ;;  %6870 = vmatprep.subr.bf16.mxu0 %v7110_v46 }
0x2389   : > { %v4175_v25 = vsel %vm782_vm1, %v8017_v0, 0.0 }
0x238a   : > { %4176 = vadd.xlane.f32.xlu1 %v4175_v25 }
0x238c   : > { %4179 = vadd.xlane.f32.xlu0 %v4178_v2 }
0x2415   : > { %v4174_v48 = vpop.xlane.xlu0 %4173 }
0x2416   : > { %v4181_v39 = vmul.f32 0.03125, %v4174_v48 }
0x2417   : > { %v4177_v3 = vpop.xlane.xlu1 %4176 }
0x2418   : > { %v4184_v53 = vsub.f32 %v8011_v32, %v4181_v39  ;;  %v4182_v4 = vmul.f32 0.03125, %v4177_v3 }
0x2419   : > { %v4180_v36 = vpop.xlane.xlu0 %4179 }
0x241a   : > { %v4185_v5 = vsub.f32 %v8017_v0, %v4182_v4  ;;  %v4183_v6 = vmul.f32 0.03125, %v4180_v36  ;;  %v4187_v7 = vmul.f32 %v4184_v53, %v4184_v53 }
0x241c   : > { %v4186_v8 = vsub.f32 %v8014_v33, %v4183_v6  ;;  %v4190_v9 = vsel %vm782_vm1, %v4187_v7, 0.0  ;;  %v4188_v52 = vmul.f32 %v4185_v5, %v4185_v5 }
0x241d   : > { %4191 = vadd.xlane.f32.xlu1 %v4190_v9 }
0x241e   : > { %v4193_v10 = vsel %vm782_vm1, %v4188_v52, 0.0  ;;  %v4189_v11 = vmul.f32 %v4186_v8, %v4186_v8 }
0x241f   : > { %4194 = vadd.xlane.f32.xlu0 %v4193_v10 }
0x2420   : > { %v4196_v12 = vsel %vm782_vm1, %v4189_v11, 0.0 }
0x2421   : > { %4197 = vadd.xlane.f32.xlu1 %v4196_v12 }
0x24aa   : > { %v4192_v56 = vpop.xlane.xlu1 %4191 }
0x24ab   : > { %v4199_v55 = vmul.f32 0.03125, %v4192_v56 }
0x24ac   : > { %v4195_v15 = vpop.xlane.xlu0 %4194 }
0x24ad   : > { %v4202_v17 = vadd.f32 1e-05, %v4199_v55  ;;  %v4200_v18 = vmul.f32 0.03125, %v4195_v15 }
0x24ae   : > { %v4198_v20 = vpop.xlane.xlu1 %4197 }
0x24af   : > { %7250 = vrsqrt.f32 %v4202_v17  ;;  %v4203_v21 = vadd.f32 1e-05, %v4200_v18  ;;  %v4201_v22 = vmul.f32 0.03125, %v4198_v20 }
0x24b1   : > { %7252 = vrsqrt.f32 %v4203_v21  ;;  %v4204_v23 = vadd.f32 1e-05, %v4201_v22 }
0x24b3   : > { %7254 = vrsqrt.f32 %v4204_v23 }
0x24b9   : > { %v7251_v24 = vpop.eup %7250 }
0x24ba   : > { %v4208_v27 = vmul.f32 %v7251_v24, %v4184_v53 }
0x24bb   : > { %v7253_v28 = vpop.eup %7252 }
0x24bc   : > { %v4209_v29 = vmul.f32 %v7253_v28, %v4185_v5  ;;  %v4217_v30 = vmul.f32 %v6100_v26, %v4208_v27 }
0x24bd   : > { %v7255_v31 = vpop.eup %7254 }
0x24be   : > { %v4210_v16 = vmul.f32 %v7255_v31, %v4186_v8  ;;  %v4218_v34 = vmul.f32 %v6100_v26, %v4209_v29  ;;  %v4226_v35 = vadd.f32 %v6101_v19, %v4217_v30 }
0x24c0   : > { %v4227_v37 = vadd.f32 %v6101_v19, %v4218_v34  ;;  %v4219_v38 = vmul.f32 %v6100_v26, %v4210_v16 }
0x24c2   : > { %v4233_v40 = vpack.c.bf16 %v4227_v37, %v4226_v35  ;;  %v4228_v41 = vadd.f32 %v6101_v19, %v4219_v38 }
0x24c4   : > { %6846 = vmatprep.mubr.msk.bf16.mxu0 %vm782_vm1, %v4233_v40  ;;  %v4234_v42 = vpack.c.bf16 %v4228_v41, %v4228_v41 }
0x24c6   : > { %6847 = vmatmul.mubr.msk.bf16.vlgmr.msra.gmra.mrb[84].mxu0 %vm782_vm1, %v4234_v42 }
0x24c7   : > { %6871 = vmatpush3.bf16.msra.mxu0 %v7110_v46 }
0x24c8   : > { %6872 = vmatprep.subr.bf16.mxu0 %v7111_v47 }
0x24cb   : > { %6873 = vmatpush3.bf16.msra.mxu0 %v7111_v47 }
0x24cc   : > { %6878 = vmatprep.subr.bf16.mxu0 %v7112_v49 }
0x2599   : > { %v6848_v54 = vpop.f32.mrb[84].mxu0 }
0x259a   : > { %v4303_v57 = vmul.f32 %v6848_v54, %v6848_v54  ;;  %v4287_v58 = vpop.f32.mrb[85].mxu0 }
0x259b   : > { %v4301_v63 = vmul.f32 %v4287_v58, %v4287_v58  ;;  %v6849_v59 = vpop.f32.mrb[86].mxu0 }
0x259c   : > { %v4306_v60 = vmul.f32 %v6848_v54, %v4303_v57  ;;  %v4290_v61 = vpop.f32.mrb[87].mxu0 }
0x259d   : > { %v4304_v62 = vmul.f32 %v4301_v63, %v4287_v58  ;;  %v4302_v25 = vmul.f32 %v4290_v61, %v4290_v61 }
0x259e   : > { %v4309_v2 = vmul.f32 0.044715, %v4306_v60 }
0x259f   : > { %v4307_v48 = vmul.f32 0.044715, %v4304_v62  ;;  %v4305_v39 = vmul.f32 %v4302_v25, %v4290_v61  ;;  %v6116_v25 = vld [vmem:[%s8306_s13 + $0x4] ss:$0 sm:$0xff] }
0x25a0   : > { %v4312_v3 = vadd.f32 %v6848_v54, %v4309_v2 }
0x25a1   : > { %v4310_v53 = vadd.f32 %v4307_v48, %v4287_v58  ;;  %v4308_v4 = vmul.f32 0.044715, %v4305_v39 }
0x25a2   : > { %v4315_v36 = vmul.f32 0.7978846, %v4312_v3 }
0x25a3   : > { %v4313_v5 = vmul.f32 0.7978846, %v4310_v53  ;;  %v4311_v6 = vadd.f32 %v4308_v4, %v4290_v61  ;;  %v6117_v4 = vld [vmem:[%s8306_s13 + $0x5] ss:$0 sm:$0xff] }
0x25a4   : > { %7256 = vtanh.f32 %v4315_v36 }
0x25a5   : > { %7258 = vtanh.f32 %v4313_v5  ;;  %v4314_v7 = vmul.f32 0.7978846, %v4311_v6 }
0x25a7   : > { %7260 = vtanh.f32 %v4314_v7 }
0x25ae   : > { %v7257_v8 = vpop.eup %7256 }
0x25af   : > { %v7259_v9 = vpop.eup %7258  ;;  %v4321_v52 = vadd.f32 1.0, %v7257_v8 }
0x25b0   : > { %v4319_v10 = vadd.f32 1.0, %v7259_v9 }
0x25b1   : > { %v7261_v11 = vpop.eup %7260  ;;  %v4324_v12 = vmul.f32 0.5, %v4321_v52 }
0x25b2   : > { %v4322_v13 = vmul.f32 0.5, %v4319_v10  ;;  %v4320_v14 = vadd.f32 1.0, %v7261_v11  ;;  %v7113_v11 = vld [vmem:[%s8307_s14 + $0x88] sm:$0xff]  }
0x25b3   : > { %v4327_v55 = vmul.f32 %v6848_v54, %v4324_v12  ;;  %v7114_v12 = vld [vmem:[%s8307_s14 + $0xa0] sm:$0xff]  }
0x25b4   : > { %v4323_v56 = vmul.f32 0.5, %v4320_v14  ;;  %v4325_v15 = vmul.f32 %v4322_v13, %v4287_v58  ;;  %v7115_v13 = vld [vmem:[%s8307_s14 + $0xa8] sm:$0xff]  }
0x25b5   : > { %v4345_v20 = vpack.c.bf16 %v4327_v55, %v4327_v55 }
0x25b6   : > { %v4326_v17 = vmul.f32 %v4323_v56, %v4290_v61 }
0x25b8   : > { %v4344_v18 = vpack.c.bf16 %v4326_v17, %v4325_v15 }
0x25ba   : > { %6866 = vmatprep.mubr.bf16.mxu1 %v4344_v18 }
0x25bb   : > { %6867 = vmatmul.mubr.bf16.vlgmr.msra.gmra.mrb[88].mxu1 %v4345_v20 }
0x268e   : > { %v6868_v21 = vpop.f32.mrb[88].mxu1 }
0x268f   : > { %v4428_v22 = vpop.f32.mrb[89].mxu1  ;;  %v8073_v27 = vadd.f32 %v6868_v21, %v8014_v33 }
0x2690   : > { %v8070_v23 = vadd.f32 %v4428_v22, %v8011_v32  ;;  %v6869_v24 = vpop.f32.mrb[90].mxu1 }
0x2691   : > { %v4431_v26 = vpop.f32.mrb[91].mxu1  ;;  %v4455_v32 = vsel %vm782_vm1, %v8073_v27, 0.0 }
0x2692   : > { %v8076_v28 = vadd.f32 %v4431_v26, %v8017_v0  ;;  %v4449_v29 = vsel %vm782_vm1, %v8070_v23, 0.0 }
0x2693   : > { %4450 = vadd.xlane.f32.xlu0 %v4449_v29 }
0x2694   : > { %v4452_v30 = vsel %vm782_vm1, %v8076_v28, 0.0 }
0x2695   : > { %4453 = vadd.xlane.f32.xlu1 %v4452_v30 }
0x2697   : > { %4456 = vadd.xlane.f32.xlu0 %v4455_v32 }
0x2720   : > { %v4451_v31 = vpop.xlane.xlu0 %4450 }
0x2721   : > { %v4458_v19 = vmul.f32 0.03125, %v4451_v31 }
0x2722   : > { %v4454_v16 = vpop.xlane.xlu1 %4453 }
0x2723   : > { %v4461_v33 = vsub.f32 %v8070_v23, %v4458_v19  ;;  %v4459_v34 = vmul.f32 0.03125, %v4454_v16 }
0x2724   : > { %v4457_v0 = vpop.xlane.xlu0 %4456 }
0x2725   : > { %v4462_v35 = vsub.f32 %v8076_v28, %v4459_v34  ;;  %v4460_v37 = vmul.f32 0.03125, %v4457_v0  ;;  %v4464_v38 = vmul.f32 %v4461_v33, %v4461_v33 }
0x2727   : > { %v4463_v40 = vsub.f32 %v8073_v27, %v4460_v37  ;;  %v4467_v41 = vsel %vm782_vm1, %v4464_v38, 0.0  ;;  %v4465_v42 = vmul.f32 %v4462_v35, %v4462_v35  ;;  %v7117_v38 = vld [vmem:[%s8307_s14 + $0x98] sm:$0xff]  }
0x2728   : > { %4468 = vadd.xlane.f32.xlu1 %v4467_v41 }
0x2729   : > { %v4470_v43 = vsel %vm782_vm1, %v4465_v42, 0.0  ;;  %v4466_v44 = vmul.f32 %v4463_v40, %v4463_v40 }
0x272a   : > { %4471 = vadd.xlane.f32.xlu0 %v4470_v43 }
0x272b   : > { %v4473_v45 = vsel %vm782_vm1, %v4466_v44, 0.0 }
0x272c   : > { %4474 = vadd.xlane.f32.xlu1 %v4473_v45 }
0x27b5   : > { %v4469_v50 = vpop.xlane.xlu1 %4468 }
0x27b6   : > { %v4476_v51 = vmul.f32 0.03125, %v4469_v50 }
0x27b7   : > { %v4472_v54 = vpop.xlane.xlu0 %4471 }
0x27b8   : > { %v4479_v57 = vadd.f32 1e-05, %v4476_v51  ;;  %v4477_v58 = vmul.f32 0.03125, %v4472_v54 }
0x27b9   : > { %v4475_v63 = vpop.xlane.xlu1 %4474 }
0x27ba   : > { %7262 = vrsqrt.f32 %v4479_v57  ;;  %v4480_v59 = vadd.f32 1e-05, %v4477_v58  ;;  %v4478_v60 = vmul.f32 0.03125, %v4475_v63 }
0x27bc   : > { %7264 = vrsqrt.f32 %v4480_v59  ;;  %v4481_v61 = vadd.f32 1e-05, %v4478_v60 }
0x27be   : > { %7266 = vrsqrt.f32 %v4481_v61 }
0x27c4   : > { %v7263_v62 = vpop.eup %7262 }
0x27c5   : > { %v4485_v2 = vmul.f32 %v7263_v62, %v4461_v33  ;;  %v7116_v33 = vld [vmem:[%s8307_s14 + $0x90] sm:$0xff]  }
0x27c6   : > { %v7265_v48 = vpop.eup %7264 }
0x27c7   : > { %v4494_v39 = vmul.f32 %v6116_v25, %v4485_v2  ;;  %v4486_v3 = vmul.f32 %v7265_v48, %v4462_v35 }
0x27c8   : > { %v7267_v53 = vpop.eup %7266 }
0x27c9   : > { %v4495_v36 = vmul.f32 %v6116_v25, %v4486_v3  ;;  %v4487_v5 = vmul.f32 %v7267_v53, %v4463_v40  ;;  %v4503_v6 = vadd.f32 %v6117_v4, %v4494_v39 }
0x27cb   : > { %v4504_v7 = vadd.f32 %v6117_v4, %v4495_v36  ;;  %v4496_v8 = vmul.f32 %v6116_v25, %v4487_v5 }
0x27cd   : > { %v4505_v9 = vadd.f32 %v6117_v4, %v4496_v8  ;;  %v8105_v52 = vpack.c.bf16 %v4504_v7, %v4503_v6  ;;  %v7118_v8 = vld [vmem:[%s8307_s14 + $0x70] sm:$0xff]  }
0x27cf   : > { %v8107_v10 = vpack.c.bf16 %v4505_v9, %v4505_v9  ;;  %6874 = vmatprep.mubr.msk.bf16.mxu0 %vm782_vm1, %v8105_v52 }
0x27d1   : > { %6875 = vmatmul.mubr.msk.bf16.vlgmr.msra.gmra.mrb[88].mxu0 %vm782_vm1, %v8107_v10 }
0x27d2   : > { %6879 = vmatpush3.bf16.msra.mxu0 %v7112_v49  ;;  %6882 = vmatprep.mubr.msk.bf16.mxu0 %vm782_vm1, %v8105_v52 }
0x27d3   : > { %6880 = vmatprep.subr.bf16.mxu0 %v7113_v11 }
0x27d6   : > { %6881 = vmatpush3.bf16.msra.mxu0 %v7113_v11 }
0x27d7   : > { %6886 = vmatprep.subr.bf16.mxu0 %v7114_v12 }
0x27d9   : > { %6883 = vmatmul.mubr.msk.bf16.vlgmr.msra.gmra.mrb[92].mxu0 %vm782_vm1, %v8107_v10 }
0x27da   : > { %6887 = vmatpush3.bf16.msra.mxu0 %v7114_v12  ;;  %6890 = vmatprep.mubr.msk.bf16.mxu0 %vm782_vm1, %v8105_v52 }
0x27db   : > { %6888 = vmatprep.subr.bf16.mxu0 %v7115_v13 }
0x27de   : > { %6889 = vmatpush3.bf16.msra.mxu0 %v7115_v13 }
0x27e1   : > { %6891 = vmatmul.mubr.msk.bf16.vlgmr.msra.gmra.mrb[96].mxu0 %vm782_vm1, %v8107_v10 }
0x28a4   : > { %v6876_v14 = vpop.f32.mrb[88].mxu0 }
0x28a5   : > { %v4565_v56 = vpop.f32.mrb[89].mxu0  ;;  %v4710_v37 = vpack.c.bf16 %v6876_v14, %v6876_v14 }
0x28a6   : > { %v6877_v55 = vpop.f32.mrb[90].mxu0 }
0x28a7   : > { %v4568_v15 = vpop.f32.mrb[91].mxu0 }
0x28a8   : > { %v4709_v17 = vpack.c.bf16 %v4568_v15, %v4565_v56 }
0x28aa   : > { %6898 = vmatprep.mubr.msk.bf16.mxu0 %vm1047_vm3, %v4709_v17 }
0x28ac   : > { %v6884_v18 = vpop.f32.mrb[92].mxu0 }
0x28ad   : > { %v4630_v20 = vpop.f32.mrb[93].mxu0  ;;  %v4712_v26 = vpack.c.bf16 %v6884_v18, %v6884_v18 }
0x28ae   : > { %v6885_v21 = vpop.f32.mrb[94].mxu0 }
0x28af   : > { %v4633_v22 = vpop.f32.mrb[95].mxu0  ;;  %v4723_v34 = vsel %vm1047_vm3, %v4712_v26, 0  ;;  %v7119_v21 = vld [vmem:[%s8307_s14 + $0x78] sm:$0xff]  }
0x28b0   : > { %v4711_v24 = vpack.c.bf16 %v4633_v22, %v4630_v20  ;;  %v7120_v22 = vld [vmem:[%s8307_s14 + $0xb0] sm:$0xff]  }
0x28b2   : > { %v4720_v29 = vsel %vm1047_vm3, %v4711_v24, 0  ;;  %7016 = vmatprep.subr.msk.bf16.mxu0 %vm1047_vm3, %v4711_v24  ;;  %v7121_v24 = vld [vmem:[%s8307_s14 + $0xb8] sm:$0xff]  }
0x28b3   : > { %6895 = vmatpush3.bf16.xpose.msra.mxu0 %v4720_v29 }
0x28b4   : > { %v6892_v30 = vpop.f32.mrb[96].mxu0  ;;  %7017 = vmatprep.subr.msk.bf16.mxu0 %vm1047_vm3, %v4712_v26  ;;  %v7122_v26 = vld [vmem:[%s8308_s15 + $0x10] sm:$0xff]  }
0x28b5   : > { %v4695_v32 = vpop.f32.mrb[97].mxu0  ;;  %v4809_v0 = vpack.c.bf16 %v6892_v30, %v6892_v30 }
0x28b6   : > { %v6893_v31 = vpop.f32.mrb[98].mxu0 }
0x28b7   : > { %v4698_v19 = vpop.f32.mrb[99].mxu0  ;;  %v4817_v35 = vsel %vm1152_vm4, %v4809_v0, 0 }
0x28b8   : > { %v4808_v16 = vpack.c.bf16 %v4698_v19, %v4695_v32 }
0x28ba   : > { %6902 = vmatprep.subr.bf16.mxu1 %v4808_v16 }
0x28bb   : > { %6897 = vmatpush3.bf16.xpose.msra.mxu0 %v4723_v34  ;;  %6903 = vmatpush3.bf16.msra.mxu1 %v4808_v16 }
0x28bc   : > { %7018 = vmatprep.subr.msk.bf16.mxu1 %vm1152_vm4, %v4809_v0  ;;  %6918 = vmatprep.subr.bf16.mxu0 %v7116_v33 }
0x28bf   : > { %6905 = vmatpush3.bf16.msra.mxu1 %v4817_v35 }
0x28c0   : > { %6910 = vmatprep.subr.bf16.mxu1 %v7118_v8 }
0x28c2   : > { %6899 = vmatmul.mubr.msk.bf16.vlgmr.msra.gmra.mrb[100].mxu0 %vm1047_vm3, %v4710_v37 }
0x28c3   : > { %6919 = vmatpush3.bf16.msra.mxu0 %v7116_v33  ;;  %6922 = vmatprep.mubr.msk.bf16.mxu0 %vm782_vm1, %v8105_v52 }
0x28c4   : > { %6920 = vmatprep.subr.bf16.mxu0 %v7117_v38 }
0x28c7   : > { %6921 = vmatpush3.bf16.msra.mxu0 %v7117_v38 }
0x28ca   : > { %6923 = vmatmul.mubr.msk.bf16.vlgmr.msra.gmra.mrb[104].mxu0 %vm782_vm1, %v8107_v10 }
0x2995   : > { %v6900_v40 = vpop.f32.mrb[100].mxu0 }
0x2996   : > { %v4759_v41 = vpop.f32.mrb[101].mxu0  ;;  %v4779_v46 = vsel %vm1108_vm5, %v6900_v40, -inf }
0x2997   : > { %v6901_v42 = vpop.f32.mrb[102].mxu0  ;;  %v4773_v43 = vsel %vm1108_vm5, %v4759_v41, -inf }
0x2998   : > { %4774 = vmax.xlane.f32.xlu0 %v4773_v43  ;;  %v4762_v44 = vpop.f32.mrb[103].mxu0 }
0x2999   : > { %v4776_v45 = vsel %vm1108_vm5, %v4762_v44, -inf }
0x299a   : > { %4777 = vmax.xlane.f32.xlu1 %v4776_v45 }
0x299c   : > { %4780 = vmax.xlane.f32.xlu0 %v4779_v46 }
0x299d   : > { %v6924_v47 = vpop.f32.mrb[104].mxu0 }
0x299e   : > { %v4988_v49 = vpop.f32.mrb[105].mxu0  ;;  %v5070_v57 = vpack.c.bf16 %v6924_v47, %v6924_v47 }
0x299f   : > { %v6925_v50 = vpop.f32.mrb[106].mxu0 }
0x29a0   : > { %v4991_v51 = vpop.f32.mrb[107].mxu0  ;;  %v5081_v63 = vsel %vm1047_vm3, %v5070_v57, 0 }
0x29a1   : > { %v5069_v54 = vpack.c.bf16 %v4991_v51, %v4988_v49 }
0x29a3   : > { %v5078_v58 = vsel %vm1047_vm3, %v5069_v54, 0  ;;  %7019 = vmatprep.subr.msk.bf16.mxu0 %vm1047_vm3, %v5069_v54 }
0x29a4   : > { %6935 = vmatpush3.bf16.xpose.msra.mxu0 %v5078_v58 }
0x29a5   : > { %7020 = vmatprep.subr.msk.bf16.mxu0 %vm1047_vm3, %v5070_v57 }
0x29ac   : > { %6937 = vmatpush3.bf16.xpose.msra.mxu0 %v5081_v63 }
0x29ad   : > { %6956 = vmatprep.subr.bf16.mxu0 %v7122_v26 }
0x2a25   : > { %v4775_v59 = vpop.xlane.xlu0 %4774 }
0x2a26   : > { %v4782_v60 = vsub.f32 %v4759_v41, %v4775_v59 }
0x2a27   : > { %v4778_v61 = vpop.xlane.xlu1 %4777 }
0x2a28   : > { %v4785_v62 = vmul.f32 1.442695, %v4782_v60  ;;  %v4783_v25 = vsub.f32 %v4762_v44, %v4778_v61 }
0x2a29   : > { %v4781_v2 = vpop.xlane.xlu0 %4780 }
0x2a2a   : > { %7268 = vpow2.f32 %v4785_v62  ;;  %v4787_v48 = vmul.f32 1.442695, %v4783_v25  ;;  %v4784_v39 = vsub.f32 %v6900_v40, %v4781_v2 }
0x2a2c   : > { %7270 = vpow2.f32 %v4787_v48  ;;  %v4789_v3 = vmul.f32 1.442695, %v4784_v39 }
0x2a2e   : > { %7272 = vpow2.f32 %v4789_v3 }
0x2a34   : > { %v7269_v53 = vpop.eup %7268 }
0x2a35   : > { %v4791_v4 = vsel %vm1108_vm5, %v7269_v53, 0.0 }
0x2a36   : > { %v7271_v36 = vpop.eup %7270  ;;  %4792 = vadd.xlane.f32.xlu1 %v4791_v4 }
0x2a37   : > { %v4794_v5 = vsel %vm1108_vm5, %v7271_v36, 0.0 }
0x2a38   : > { %v7273_v6 = vpop.eup %7272  ;;  %4795 = vadd.xlane.f32.xlu0 %v4794_v5 }
0x2a39   : > { %v4797_v7 = vsel %vm1108_vm5, %v7273_v6, 0.0 }
0x2a3a   : > { %4798 = vadd.xlane.f32.xlu1 %v4797_v7 }
0x2ac3   : > { %v4793_v9 = vpop.xlane.xlu1 %4792 }
0x2ac4   : > { %7274 = vrcp.f32 %v4793_v9  ;;  %v7123_v9 = vld [vmem:[%s8308_s15 + $0x18] sm:$0xff]  }
0x2ac5   : > { %v4796_v11 = vpop.xlane.xlu0 %4795 }
0x2ac6   : > { %7276 = vrcp.f32 %v4796_v11 }
0x2ac7   : > { %v4799_v12 = vpop.xlane.xlu1 %4798 }
0x2ac8   : > { %7278 = vrcp.f32 %v4799_v12 }
0x2ace   : > { %v7275_v13 = vpop.eup %7274 }
0x2acf   : > { %v4803_v56 = vmul.f32 %v7275_v13, %v7269_v53 }
0x2ad0   : > { %v7277_v14 = vpop.eup %7276 }
0x2ad1   : > { %v4804_v55 = vmul.f32 %v7277_v14, %v7271_v36 }
0x2ad2   : > { %v7279_v15 = vpop.eup %7278 }
0x2ad3   : > { %v4805_v17 = vmul.f32 %v7279_v15, %v7273_v6  ;;  %v4806_v18 = vpack.c.bf16 %v4804_v55, %v4803_v56 }
0x2ad5   : > { %6906 = vmatprep.mubr.msk.bf16.mxu1 %vm1108_vm5, %v4806_v18  ;;  %v4807_v20 = vpack.c.bf16 %v4805_v17, %v4805_v17 }
0x2ad7   : > { %6907 = vmatmul.mubr.msk.bf16.vlgmr.msra.gmra.mrb[92].mxu1 %vm1108_vm5, %v4807_v20 }
0x2ad8   : > { %6911 = vmatpush3.bf16.msra.mxu1 %v7118_v8  ;;  %6914 = vmatprep.mubr.msk.bf16.mxu1 %vm782_vm1, %v8105_v52 }
0x2ad9   : > { %6912 = vmatprep.subr.bf16.mxu1 %v7119_v21 }
0x2adc   : > { %6913 = vmatpush3.bf16.msra.mxu1 %v7119_v21 }
0x2add   : > { %6926 = vmatprep.subr.bf16.mxu1 %v7120_v22 }
0x2adf   : > { %6915 = vmatmul.mubr.msk.bf16.vlgmr.msra.gmra.mrb[96].mxu1 %vm782_vm1, %v8107_v10 }
0x2ae0   : > { %6927 = vmatpush3.bf16.msra.mxu1 %v7120_v22  ;;  %6930 = vmatprep.mubr.msk.bf16.mxu1 %vm782_vm1, %v8105_v52 }
0x2ae1   : > { %6928 = vmatprep.subr.bf16.mxu1 %v7121_v24 }
0x2ae4   : > { %6929 = vmatpush3.bf16.msra.mxu1 %v7121_v24 }
0x2ae7   : > { %6931 = vmatmul.mubr.msk.bf16.vlgmr.msra.gmra.mrb[100].mxu1 %vm782_vm1, %v8107_v10 }
0x2baa   : > { %v6908_v29 = vpop.f32.mrb[92].mxu1 }
0x2bab   : > { %v4853_v30 = vpop.f32.mrb[93].mxu1  ;;  %v4871_v42 = vpack.c.bf16 %v6908_v29, %v6908_v29 }
0x2bac   : > { %v6909_v32 = vpop.f32.mrb[94].mxu1 }
0x2bad   : > { %v4856_v31 = vpop.f32.mrb[95].mxu1 }
0x2bae   : > { %v4870_v19 = vpack.c.bf16 %v4856_v31, %v4853_v30 }
0x2bb2   : > { %v6916_v16 = vpop.f32.mrb[96].mxu1 }
0x2bb3   : > { %v4923_v33 = vpop.f32.mrb[97].mxu1  ;;  %v5068_v35 = vpack.c.bf16 %v6916_v16, %v6916_v16 }
0x2bb4   : > { %v6917_v34 = vpop.f32.mrb[98].mxu1 }
0x2bb5   : > { %v4926_v0 = vpop.f32.mrb[99].mxu1 }
0x2bb6   : > { %v5067_v52 = vpack.c.bf16 %v4926_v0, %v4923_v33 }
0x2bb8   : > { %6938 = vmatprep.mubr.msk.bf16.mxu0 %vm1047_vm3, %v5067_v52 }
0x2bb9   : > { %6939 = vmatmul.mubr.msk.bf16.vlgmr.msra.gmra.mrb[108].mxu0 %vm1047_vm3, %v5068_v35 }
0x2bba   : > { %v6932_v10 = vpop.f32.mrb[100].mxu1  ;;  %6958 = vmatprep.mubr.msk.bf16.mxu0 %vm1047_vm3, %v4870_v19  ;;  %6957 = vmatpush3.bf16.msra.mxu0 %v7122_v26 }
0x2bbb   : > { %v5053_v37 = vpop.f32.mrb[101].mxu1  ;;  %v5167_v43 = vpack.c.bf16 %v6932_v10, %v6932_v10 }
0x2bbc   : > { %v6933_v38 = vpop.f32.mrb[102].mxu1 }
0x2bbd   : > { %v5056_v40 = vpop.f32.mrb[103].mxu1  ;;  %v5175_v44 = vsel %vm1152_vm4, %v5167_v43, 0 }
0x2bbe   : > { %v5166_v41 = vpack.c.bf16 %v5056_v40, %v5053_v37 }
0x2bc0   : > { %6942 = vmatprep.subr.bf16.mxu1 %v5166_v41 }
0x2bc1   : > { %6943 = vmatpush3.bf16.msra.mxu1 %v5166_v41  ;;  %6959 = vmatmul.mubr.msk.bf16.vlgmr.msra.gmra.mrb[112].mxu0 %vm1047_vm3, %v4871_v42 }
0x2bc2   : > { %7021 = vmatprep.subr.msk.bf16.mxu1 %vm1152_vm4, %v5167_v43 }
0x2bc5   : > { %6945 = vmatpush3.bf16.msra.mxu1 %v5175_v44 }
0x2bc6   : > { %6950 = vmatprep.subr.bf16.mxu1 %v7123_v9 }
0x2c8c   : > { %v6940_v45 = vpop.f32.mrb[108].mxu0 }
0x2c8d   : > { %v5117_v46 = vpop.f32.mrb[109].mxu0  ;;  %v5137_v54 = vsel %vm1108_vm5, %v6940_v45, -inf }
0x2c8e   : > { %v6941_v47 = vpop.f32.mrb[110].mxu0  ;;  %v5131_v49 = vsel %vm1108_vm5, %v5117_v46, -inf }
0x2c8f   : > { %5132 = vmax.xlane.f32.xlu0 %v5131_v49  ;;  %v5120_v50 = vpop.f32.mrb[111].mxu0 }
0x2c90   : > { %v5134_v51 = vsel %vm1108_vm5, %v5120_v50, -inf }
0x2c91   : > { %5135 = vmax.xlane.f32.xlu1 %v5134_v51 }
0x2c93   : > { %5138 = vmax.xlane.f32.xlu0 %v5137_v54 }
0x2c94   : > { %v6960_v57 = vpop.f32.mrb[112].mxu0 }
0x2c95   : > { %v5336_v58 = vpop.f32.mrb[113].mxu0 }
0x2c96   : > { %v6961_v63 = vpop.f32.mrb[114].mxu0 }
0x2c97   : > { %v5339_v59 = vpop.f32.mrb[115].mxu0  ;;  %v7124_v63 = vld [vmem:[%s8309_s16 + $0x10] sm:$0xff]  }
0x2d1c   : > { %v5133_v60 = vpop.xlane.xlu0 %5132 }
0x2d1d   : > { %v5140_v61 = vsub.f32 %v5117_v46, %v5133_v60 }
0x2d1e   : > { %v5136_v62 = vpop.xlane.xlu1 %5135 }
0x2d1f   : > { %v5143_v25 = vmul.f32 1.442695, %v5140_v61  ;;  %v5141_v2 = vsub.f32 %v5120_v50, %v5136_v62 }
0x2d20   : > { %v5139_v48 = vpop.xlane.xlu0 %5138 }
0x2d21   : > { %7280 = vpow2.f32 %v5143_v25  ;;  %v5145_v39 = vmul.f32 1.442695, %v5141_v2  ;;  %v5142_v3 = vsub.f32 %v6940_v45, %v5139_v48 }
0x2d23   : > { %7282 = vpow2.f32 %v5145_v39  ;;  %v5147_v53 = vmul.f32 1.442695, %v5142_v3 }
0x2d25   : > { %7284 = vpow2.f32 %v5147_v53 }
0x2d2b   : > { %v7281_v4 = vpop.eup %7280 }
0x2d2c   : > { %v5149_v36 = vsel %vm1108_vm5, %v7281_v4, 0.0 }
0x2d2d   : > { %v7283_v5 = vpop.eup %7282  ;;  %5150 = vadd.xlane.f32.xlu1 %v5149_v36  ;;  %v6186_v36 = vld [vmem:[%s8306_s13 + $0x6] ss:$0 sm:$0xff] }
0x2d2e   : > { %v5152_v6 = vsel %vm1108_vm5, %v7283_v5, 0.0 }
0x2d2f   : > { %v7285_v7 = vpop.eup %7284  ;;  %5153 = vadd.xlane.f32.xlu0 %v5152_v6 }
0x2d30   : > { %v5155_v8 = vsel %vm1108_vm5, %v7285_v7, 0.0 }
0x2d31   : > { %5156 = vadd.xlane.f32.xlu1 %v5155_v8 }
0x2dba   : > { %v5151_v11 = vpop.xlane.xlu1 %5150 }
0x2dbb   : > { %7286 = vrcp.f32 %v5151_v11  ;;  %v6187_v11 = vld [vmem:[%s8306_s13 + $0x7] ss:$0 sm:$0xff] }
0x2dbc   : > { %v5154_v12 = vpop.xlane.xlu0 %5153 }
0x2dbd   : > { %7288 = vrcp.f32 %v5154_v12 }
0x2dbe   : > { %v5157_v13 = vpop.xlane.xlu1 %5156 }
0x2dbf   : > { %7290 = vrcp.f32 %v5157_v13 }
0x2dc5   : > { %v7287_v14 = vpop.eup %7286 }
0x2dc6   : > { %v5161_v55 = vmul.f32 %v7287_v14, %v7281_v4 }
0x2dc7   : > { %v7289_v56 = vpop.eup %7288 }
0x2dc8   : > { %v5162_v15 = vmul.f32 %v7289_v56, %v7283_v5 }
0x2dc9   : > { %v7291_v17 = vpop.eup %7290 }
0x2dca   : > { %v5163_v18 = vmul.f32 %v7291_v17, %v7285_v7  ;;  %v5164_v20 = vpack.c.bf16 %v5162_v15, %v5161_v55 }
0x2dcc   : > { %6946 = vmatprep.mubr.msk.bf16.mxu1 %vm1108_vm5, %v5164_v20  ;;  %v5165_v21 = vpack.c.bf16 %v5163_v18, %v5163_v18  ;;  %v7126_v20 = vld [vmem:[%s8310_s17 + $0x40] sm:$0xff]  }
0x2dcd   : > { %6970 = vmatprep.subr.bf16.mxu0 %v7126_v20 }
0x2dce   : > { %6947 = vmatmul.mubr.msk.bf16.vlgmr.msra.gmra.mrb[104].mxu1 %vm1108_vm5, %v5165_v21  ;;  %6971 = vmatpush3.bf16.msra.mxu0 %v7126_v20  ;;  %v7127_v21 = vld [vmem:[%s8310_s17 + $0x48] sm:$0xff]  }
0x2dcf   : > { %6951 = vmatpush3.bf16.msra.mxu1 %v7123_v9  ;;  %6972 = vmatprep.subr.bf16.mxu0 %v7127_v21 }
0x2dd0   : > { %6962 = vmatprep.subr.bf16.mxu1 %v7124_v63 }
0x2dd2   : > { %6973 = vmatpush3.bf16.msra.mxu0 %v7127_v21 }
0x2ea1   : > { %v6948_v22 = vpop.f32.mrb[104].mxu1 }
0x2ea2   : > { %v5211_v24 = vpop.f32.mrb[105].mxu1  ;;  %v5229_v32 = vpack.c.bf16 %v6948_v22, %v6948_v22  ;;  %v7128_v22 = vld [vmem:[%s8310_s17 + $0x50] sm:$0xff]  }
0x2ea3   : > { %v6949_v26 = vpop.f32.mrb[106].mxu1  ;;  %6974 = vmatprep.subr.bf16.mxu0 %v7128_v22 }
0x2ea4   : > { %v5214_v29 = vpop.f32.mrb[107].mxu1  ;;  %6975 = vmatpush3.bf16.msra.mxu0 %v7128_v22  ;;  %v7130_v26 = vld [vmem:[%s8310_s17 + $0x60] sm:$0xff]  }
0x2ea5   : > { %v5228_v30 = vpack.c.bf16 %v5214_v29, %v5211_v24  ;;  %v7129_v24 = vld [vmem:[%s8310_s17 + $0x58] sm:$0xff]   ;;  %v7131_v29 = vld [vmem:[%s8310_s17 + $0x68] sm:$0xff]  }
0x2ea6   : > { %6976 = vmatprep.subr.bf16.mxu0 %v7129_v24 }
0x2ea7   : > { %6952 = vmatprep.mubr.msk.bf16.mxu1 %vm1047_vm3, %v5228_v30  ;;  %v7132_v30 = vld [vmem:[%s8310_s17 + $0x70] sm:$0xff]  }
0x2ea8   : > { %6953 = vmatmul.mubr.msk.bf16.vlgmr.msra.gmra.mrb[108].mxu1 %vm1047_vm3, %v5229_v32  ;;  %6977 = vmatpush3.bf16.msra.mxu0 %v7129_v24  ;;  %v7133_v32 = vld [vmem:[%s8310_s17 + $0x78] sm:$0xff]  }
0x2ea9   : > { %6963 = vmatpush3.bf16.msra.mxu1 %v7124_v63  ;;  %6978 = vmatprep.subr.bf16.mxu0 %v7130_v26 }
0x2eac   : > { %6979 = vmatpush3.bf16.msra.mxu0 %v7130_v26 }
0x2ead   : > { %6980 = vmatprep.subr.bf16.mxu0 %v7131_v29 }
0x2eb0   : > { %6981 = vmatpush3.bf16.msra.mxu0 %v7131_v29  ;;  %v6221_v29 = vld [vmem:[%s8311_s18] ss:$0 sm:$0xff] }
0x2eb1   : > { %6982 = vmatprep.subr.bf16.mxu0 %v7132_v30 }
0x2eb4   : > { %6983 = vmatpush3.bf16.msra.mxu0 %v7132_v30 }
0x2eb5   : > { %6984 = vmatprep.subr.bf16.mxu0 %v7133_v32 }
0x2eb8   : > { %6985 = vmatpush3.bf16.msra.mxu0 %v7133_v32 }
0x2f7b   : > { %v6954_v31 = vpop.f32.mrb[108].mxu1 }
0x2f7c   : > { %v5345_v19 = vadd.f32 %v6960_v57, %v6954_v31  ;;  %v5276_v16 = vpop.f32.mrb[109].mxu1 }
0x2f7d   : > { %v5337_v33 = vadd.f32 %v5336_v58, %v5276_v16  ;;  %v6955_v34 = vpop.f32.mrb[110].mxu1 }
0x2f7e   : > { %v5279_v0 = vpop.f32.mrb[111].mxu1  ;;  %v8204_v10 = vadd.f32 %v5345_v19, %v8073_v27 }
0x2f7f   : > { %v5340_v52 = vadd.f32 %v5339_v59, %v5279_v0  ;;  %v5350_v35 = vadd.f32 %v5337_v33, %v8070_v23  ;;  %v7125_v59 = vld [vmem:[%s8309_s16 + $0x18] sm:$0xff]  }
0x2f80   : > { %v5363_v41 = vsel %vm782_vm1, %v8204_v10, 0.0  ;;  %6964 = vmatprep.subr.bf16.mxu1 %v7125_v59 }
0x2f81   : > { %v8207_v37 = vadd.f32 %v5340_v52, %v8076_v28  ;;  %v5357_v38 = vsel %vm782_vm1, %v5350_v35, 0.0  ;;  %6965 = vmatpush3.bf16.msra.mxu1 %v7125_v59 }
0x2f82   : > { %5358 = vadd.xlane.f32.xlu0 %v5357_v38  ;;  %6990 = vmatprep.subr.bf16.mxu1 %v7317_v1 }
0x2f83   : > { %v5360_v40 = vsel %vm782_vm1, %v8207_v37, 0.0 }
0x2f84   : > { %5361 = vadd.xlane.f32.xlu1 %v5360_v40 }
0x2f86   : > { %5364 = vadd.xlane.f32.xlu0 %v5363_v41 }
0x300f   : > { %v5359_v42 = vpop.xlane.xlu0 %5358 }
0x3010   : > { %v5366_v43 = vmul.f32 0.03125, %v5359_v42 }
0x3011   : > { %v5362_v23 = vpop.xlane.xlu1 %5361 }
0x3012   : > { %v5369_v44 = vsub.f32 %v5350_v35, %v5366_v43  ;;  %v5367_v27 = vmul.f32 0.03125, %v5362_v23 }
0x3013   : > { %v5365_v45 = vpop.xlane.xlu0 %5364 }
0x3014   : > { %v5370_v28 = vsub.f32 %v8207_v37, %v5367_v27  ;;  %v5368_v46 = vmul.f32 0.03125, %v5365_v45  ;;  %v5372_v47 = vmul.f32 %v5369_v44, %v5369_v44 }
0x3016   : > { %v5371_v49 = vsub.f32 %v8204_v10, %v5368_v46  ;;  %v5375_v50 = vsel %vm782_vm1, %v5372_v47, 0.0  ;;  %v5373_v51 = vmul.f32 %v5370_v28, %v5370_v28 }
0x3017   : > { %5376 = vadd.xlane.f32.xlu1 %v5375_v50 }
0x3018   : > { %v5378_v54 = vsel %vm782_vm1, %v5373_v51, 0.0  ;;  %v5374_v57 = vmul.f32 %v5371_v49, %v5371_v49 }
0x3019   : > { %5379 = vadd.xlane.f32.xlu0 %v5378_v54 }
0x301a   : > { %v5381_v58 = vsel %vm782_vm1, %v5374_v57, 0.0 }
0x301b   : > { %5382 = vadd.xlane.f32.xlu1 %v5381_v58 }
0x30a4   : > { %v5377_v60 = vpop.xlane.xlu1 %5376 }
0x30a5   : > { %v5384_v61 = vmul.f32 0.03125, %v5377_v60 }
0x30a6   : > { %v5380_v62 = vpop.xlane.xlu0 %5379 }
0x30a7   : > { %v5387_v25 = vadd.f32 1e-05, %v5384_v61  ;;  %v5385_v2 = vmul.f32 0.03125, %v5380_v62 }
0x30a8   : > { %v5383_v48 = vpop.xlane.xlu1 %5382 }
0x30a9   : > { %7292 = vrsqrt.f32 %v5387_v25  ;;  %v5388_v39 = vadd.f32 1e-05, %v5385_v2  ;;  %v5386_v3 = vmul.f32 0.03125, %v5383_v48 }
0x30ab   : > { %7294 = vrsqrt.f32 %v5388_v39  ;;  %v5389_v53 = vadd.f32 1e-05, %v5386_v3 }
0x30ad   : > { %7296 = vrsqrt.f32 %v5389_v53 }
0x30b3   : > { %v7293_v4 = vpop.eup %7292 }
0x30b4   : > { %v5393_v5 = vmul.f32 %v7293_v4, %v5369_v44 }
0x30b5   : > { %v7295_v6 = vpop.eup %7294 }
0x30b6   : > { %v5394_v7 = vmul.f32 %v7295_v6, %v5370_v28  ;;  %v5402_v8 = vmul.f32 %v6186_v36, %v5393_v5 }
0x30b7   : > { %v7297_v9 = vpop.eup %7296 }
0x30b8   : > { %v5395_v12 = vmul.f32 %v7297_v9, %v5371_v49  ;;  %v5403_v13 = vmul.f32 %v6186_v36, %v5394_v7  ;;  %v5411_v14 = vadd.f32 %v6187_v11, %v5402_v8 }
0x30ba   : > { %v5412_v56 = vadd.f32 %v6187_v11, %v5403_v13  ;;  %v5404_v55 = vmul.f32 %v6186_v36, %v5395_v12 }
0x30bc   : > { %v5419_v15 = vpack.c.bf16 %v5412_v56, %v5411_v14  ;;  %v5413_v17 = vadd.f32 %v6187_v11, %v5404_v55 }
0x30be   : > { %6966 = vmatprep.mubr.msk.bf16.mxu1 %vm782_vm1, %v5419_v15  ;;  %v5420_v18 = vpack.c.bf16 %v5413_v17, %v5413_v17  ;;  %v7135_v15 = vld [vmem:[%s8312_s19 + $0x8] sm:$0xff]  }
0x30c0   : > { %6967 = vmatmul.mubr.msk.bf16.vlgmr.msra.gmra.mrb[112].mxu1 %vm782_vm1, %v5420_v18 }
0x30c1   : > { %6994 = vmatprep.mubr.msk.bf16.mxu1 %vm7318_vm0, %v7317_v1 }
0x3193   : > { %v6968_v31 = vpop.f32.mrb[112].mxu1 }
0x3194   : > { %v5489_v19 = vmul.f32 %v6968_v31, %v6968_v31  ;;  %v5473_v16 = vpop.f32.mrb[113].mxu1 }
0x3195   : > { %v5487_v33 = vmul.f32 %v5473_v16, %v5473_v16  ;;  %v6969_v34 = vpop.f32.mrb[114].mxu1 }
0x3196   : > { %v5492_v0 = vmul.f32 %v6968_v31, %v5489_v19  ;;  %v5476_v52 = vpop.f32.mrb[115].mxu1  ;;  %v6222_v19 = vld [vmem:[%s8311_s18 + $0x1] ss:$0 sm:$0xff] }
0x3197   : > { %v5490_v35 = vmul.f32 %v5487_v33, %v5473_v16  ;;  %v5488_v38 = vmul.f32 %v5476_v52, %v5476_v52 }
0x3198   : > { %v5495_v40 = vmul.f32 0.044715, %v5492_v0 }
0x3199   : > { %v5493_v41 = vmul.f32 0.044715, %v5490_v35  ;;  %v5491_v42 = vmul.f32 %v5488_v38, %v5476_v52 }
0x319a   : > { %v5498_v43 = vadd.f32 %v6968_v31, %v5495_v40 }
0x319b   : > { %v5496_v23 = vadd.f32 %v5493_v41, %v5473_v16  ;;  %v5494_v44 = vmul.f32 0.044715, %v5491_v42 }
0x319c   : > { %v5501_v27 = vmul.f32 0.7978846, %v5498_v43 }
0x319d   : > { %v5499_v45 = vmul.f32 0.7978846, %v5496_v23  ;;  %v5497_v28 = vadd.f32 %v5494_v44, %v5476_v52 }
0x319e   : > { %7298 = vtanh.f32 %v5501_v27 }
0x319f   : > { %7300 = vtanh.f32 %v5499_v45  ;;  %v5500_v46 = vmul.f32 0.7978846, %v5497_v28 }
0x31a1   : > { %7302 = vtanh.f32 %v5500_v46 }
0x31a8   : > { %v7299_v47 = vpop.eup %7298 }
0x31a9   : > { %v7301_v49 = vpop.eup %7300  ;;  %v5507_v50 = vadd.f32 1.0, %v7299_v47 }
0x31aa   : > { %v5505_v51 = vadd.f32 1.0, %v7301_v49 }
0x31ab   : > { %v7303_v54 = vpop.eup %7302  ;;  %v5510_v57 = vmul.f32 0.5, %v5507_v50 }
0x31ac   : > { %v5508_v58 = vmul.f32 0.5, %v5505_v51  ;;  %v5506_v63 = vadd.f32 1.0, %v7303_v54 }
0x31ad   : > { %v5513_v60 = vmul.f32 %v6968_v31, %v5510_v57 }
0x31ae   : > { %v5509_v59 = vmul.f32 0.5, %v5506_v63  ;;  %v5511_v61 = vmul.f32 %v5508_v58, %v5473_v16 }
0x31af   : > { %v5532_v2 = vpack.c.bf16 %v5513_v60, %v5513_v60 }
0x31b0   : > { %v5512_v62 = vmul.f32 %v5509_v59, %v5476_v52  ;;  %v6223_v52 = vld [vmem:[%s8313_s20] ss:$0 sm:$0xff] }
0x31b2   : > { %v5531_v25 = vpack.c.bf16 %v5512_v62, %v5511_v61 }
0x31b4   : > { %6986 = vmatprep.mubr.bf16.mxu0 %v5531_v25 }
0x31b5   : > { %6987 = vmatmul.mubr.bf16.vlgmr.msra.gmra.mrb[116].mxu0 %v5532_v2 }
0x3288   : > { %v6988_v48 = vpop.f32.mrb[116].mxu0 }
0x3289   : > { %v5629_v39 = vadd.f32 %v6988_v48, %v8204_v10  ;;  %v5615_v3 = vpop.f32.mrb[117].mxu0 }
0x328a   : > { %v6989_v53 = vpop.f32.mrb[118].mxu0 }
0x328b   : > { %v5617_v4 = vpop.f32.mrb[119].mxu0  ;;  %v5636_v36 = vsel %vm782_vm1, %v5629_v39, 0.0 }
0x328c   : > { %v5628_v5 = vadd.f32 %v5617_v4, %v8207_v37  ;;  %5637 = vadd.xlane.f32.xlu1 %v5636_v36  ;;  %v7134_v37 = vld [vmem:[%s8312_s19] sm:$0xff]  }
0x328d   : > { %6991 = vmatpush3.bf16.msra.mxu1 %v7134_v37 }
0x328e   : > { %v5633_v6 = vsel %vm782_vm1, %v5628_v5, 0.0  ;;  %6992 = vmatprep.subr.bf16.mxu1 %v7317_v1 }
0x328f   : > { %5634 = vadd.xlane.f32.xlu0 %v5633_v6 }
0x3291   : > { %6993 = vmatpush3.bf16.msra.mxu1 %v7135_v15 }
0x3319   : > { %v5638_v7 = vpop.xlane.xlu1 %5637 }
0x331a   : > { %v5640_v8 = vmul.f32 0.03125, %v5638_v7 }
0x331c   : > { %v5642_v9 = vsub.f32 %v5629_v39, %v5640_v8  ;;  %v5635_v11 = vpop.xlane.xlu0 %5634 }
0x331d   : > { %v5639_v12 = vmul.f32 0.03125, %v5635_v11 }
0x331e   : > { %v5644_v13 = vmul.f32 %v5642_v9, %v5642_v9 }
0x331f   : > { %v5641_v14 = vsub.f32 %v5628_v5, %v5639_v12 }
0x3320   : > { %v5648_v10 = vsel %vm782_vm1, %v5644_v13, 0.0 }
0x3321   : > { %5649 = vadd.xlane.f32.xlu1 %v5648_v10  ;;  %v5643_v56 = vmul.f32 %v5641_v14, %v5641_v14 }
0x3323   : > { %v5645_v55 = vsel %vm782_vm1, %v5643_v56, 0.0 }
0x3324   : > { %5646 = vadd.xlane.f32.xlu0 %v5645_v55 }
0x33ae   : > { %v5650_v17 = vpop.xlane.xlu1 %5649 }
0x33af   : > { %v5652_v18 = vmul.f32 0.03125, %v5650_v17 }
0x33b1   : > { %v5654_v20 = vadd.f32 1e-05, %v5652_v18  ;;  %v5647_v21 = vpop.xlane.xlu0 %5646 }
0x33b2   : > { %v5651_v22 = vmul.f32 0.03125, %v5647_v21 }
0x33b3   : > { %7304 = vrsqrt.f32 %v5654_v20 }
0x33b4   : > { %v5653_v24 = vadd.f32 1e-05, %v5651_v22 }
0x33b6   : > { %7306 = vrsqrt.f32 %v5653_v24 }
0x33bd   : > { %v7305_v26 = vpop.eup %7304 }
0x33be   : > { %v5658_v1 = vmul.f32 %v7305_v26, %v5642_v9 }
0x33c0   : > { %v7307_v30 = vpop.eup %7306  ;;  %v5666_v32 = vmul.f32 %v6221_v29, %v5658_v1 }
0x33c1   : > { %v5657_v31 = vmul.f32 %v7307_v30, %v5641_v14 }
0x33c2   : > { %v5674_v34 = vadd.f32 %v6222_v19, %v5666_v32 }
0x33c3   : > { %v5665_v16 = vmul.f32 %v6221_v29, %v5657_v31 }
0x33c5   : > { %v5673_v33 = vadd.f32 %v6222_v19, %v5665_v16 }
0x33c7   : > { %v5679_v0 = vpack.c.bf16 %v5674_v34, %v5673_v33 }
0x33c9   : > { %6995 = vmatmul.mubr.msk.bf16.vlgmr.msra.gmra.mrb[116].mxu1 %vm782_vm1, %v5679_v0 }
0x349c   : > { %v5736_v35 = vpop.f32.mrb[116].mxu1 }
0x349d   : > { %v5737_v38 = vadd.f32 %v6223_v52, %v5736_v35  ;;  %v6996_v40 = vpop.f32.mrb[117].mxu1 }
0x349e   : > { %v5739_v41 = vpop.f32.mrb[118].mxu1 }
0x349f   : > { %5743 = vst.msk [vmem:[%s690_s27] sm:$0xff] %vm733_vm2, %v5737_v38  ;;  %v5740_v42 = vadd.f32 %v6223_v52, %v5739_v41  ;;  %v6997_v43 = vpop.f32.mrb[119].mxu1 }
0x34a1   : > { %5744 = vst.msk [vmem:[%s690_s27 + $0x8] sm:$0xff] %vm733_vm2, %v5740_v42 }
0x34a2 PF: > { %s33_s3 = sadd.s32 1, %s7315_s3  }
0x34a3   : > { %p30_p4 = scmp.ge.s32.totalorder %s33_s3, 4  }
0x34a5   :  { %32 = sbr.rel (!%p30_p4) target bundleno = 8 (0x8), region = 193 }

</bundles_post_ra>
